<compile_context>
chip_gen: v7x
topology: tpu7x:2x2x1
jax: 0.10.0
libtpu: 0.0.40
codegen_flags: <defaults>
</compile_context>

<pallas_src>
import functools

import jax
import jax.numpy as jnp
from jax import lax
from jax.experimental import pallas as pl
from jax.experimental.pallas import tpu as pltpu

EPS = 1e-5                      # PyTorch BatchNorm2d default
LANE = 128                      # TPU lane width -> lane-dense channel padding
LPAD = 8                        # left spatial pad inside scratch (8-aligned store)
VMEM_LIMIT = 32 * 1024 * 1024   # safe default on v5e / v6e / v7x


def _round_up(n, m):
    return ((n + m - 1) // m) * m


def _pad_axis(x, axis, size):
    pad = [(0, 0)] * x.ndim
    pad[axis] = (0, size - x.shape[axis])
    return jnp.pad(x, pad)


# ---------------------------------------------------------------------------
# Kernel 1: fused [producer BN+ReLU] -> 3x3 conv (9 shifted MXU dots) -> stats
# ---------------------------------------------------------------------------
def _conv3x3_kernel(x_ref, w_ref, scale_ref, shift_ref, y_ref, stats_ref, xs_ref,
                    *, H, W, apply_input_act):
    # x_ref:     (1, H, W, Ci_p)         raw producer output (pre-BN) / block input
    # w_ref:     (9, Ci_p, Co_p) bf16    taps, k = kh*3 + kw
    # scale/shift: (1, Ci_p)             fused producer-BN affine (unused for conv1)
    # y_ref:     (1, H, W, Co_p) bf16    raw conv output (pre-BN, no bias)
    # stats_ref: (1, 2, Co_p) f32        per-image partial [sum ; sum_sq]
    # xs_ref:    (H+2, LPAD+W+1, Ci_p)   f32 scratch: zero-padded activated image
    x = x_ref[0].astype(jnp.float32)
    if apply_input_act:
        # BN+ReLU of the previous layer, fused here (VPU work hidden under MXU).
        x = jnp.maximum(x * scale_ref[...] + shift_ref[...], 0.0)

    # Zero scratch every grid step (megacore-safe), then an 8-aligned interior
    # store -> unmasked sublane stores.
    xs_ref[...] = jnp.zeros_like(xs_ref)
    xs_ref[1:H + 1, LPAD:LPAD + W, :] = x

    co = w_ref.shape[-1]
    acc = jnp.zeros((H * W, co), jnp.float32)
    for kh in range(3):
        for kw in range(3):
            patch = xs_ref[kh:kh + H, LPAD - 1 + kw:LPAD - 1 + kw + W, :]
            acc = acc + jnp.dot(
                patch.reshape(H * W, -1).astype(jnp.bfloat16),
                w_ref[kh * 3 + kw],
                preferred_element_type=jnp.float32)

    # Per-grid-step BN stat partials (combined in the wrapper -> megacore-safe).
    stats_ref[0, 0:1, :] = jnp.sum(acc, axis=0, keepdims=True)
    stats_ref[0, 1:2, :] = jnp.sum(acc * acc, axis=0, keepdims=True)

    y_ref[...] = acc.reshape(1, H, W, co).astype(y_ref.dtype)


def conv3x3_fused(x, w9, scale, shift, *, apply_input_act):
    """x: (N,H,W,Ci_p); w9: (9,Ci_p,Co_p) bf16 -> (y_raw bf16, stats f32)."""
    N, H, W, Cip = x.shape
    Cop = w9.shape[-1]
    kern = functools.partial(_conv3x3_kernel, H=H, W=W,
                             apply_input_act=apply_input_act)
    return pl.pallas_call(
        kern,
        out_shape=(
            jax.ShapeDtypeStruct((N, H, W, Cop), jnp.bfloat16),
            jax.ShapeDtypeStruct((N, 2, Cop), jnp.float32),
        ),
        grid=(N,),
        in_specs=[
            pl.BlockSpec((1, H, W, Cip), lambda n: (n, 0, 0, 0)),
            pl.BlockSpec((9, Cip, Cop), lambda n: (0, 0, 0)),
            pl.BlockSpec((1, Cip), lambda n: (0, 0)),
            pl.BlockSpec((1, Cip), lambda n: (0, 0)),
        ],
        out_specs=(
            pl.BlockSpec((1, H, W, Cop), lambda n: (n, 0, 0, 0)),
            pl.BlockSpec((1, 2, Cop), lambda n: (n, 0, 0)),
        ),
        scratch_shapes=[pltpu.VMEM((H + 2, LPAD + W + 1, Cip), jnp.float32)],
        compiler_params=pltpu.CompilerParams(
            dimension_semantics=("parallel",),
            vmem_limit_bytes=VMEM_LIMIT),
    )(x, w9, scale, shift)


# ---------------------------------------------------------------------------
# Kernel 2: fused [BN2+ReLU] -> ConvTranspose2d(k=2,s=2) as ONE lane-dense matmul
# ---------------------------------------------------------------------------
def _deconv2x2_kernel(y_ref, scale_ref, shift_ref, w_ref, b_ref, o_ref, *, H, W):
    # y_ref: (1,H,W,Cm_p) bf16 raw conv2 output; w_ref: (Cm_p, 4*Co_p) bf16
    # o_ref: (1,H,W,4*Co_p) f32, tap-major blocks of Co_p (k = kh*2 + kw).
    z = jnp.maximum(y_ref[0].astype(jnp.float32) * scale_ref[...] + shift_ref[...],
                    0.0)
    zb = z.reshape(H * W, -1).astype(jnp.bfloat16)
    r = jnp.dot(zb, w_ref[...], preferred_element_type=jnp.float32) + b_ref[...]
    o_ref[...] = r.reshape(1, H, W, -1)


def deconv2x2_fused(y2, scale, shift, w_stack, b_stack):
    N, H, W, Cmp = y2.shape
    Cop4 = w_stack.shape[-1]
    kern = functools.partial(_deconv2x2_kernel, H=H, W=W)
    return pl.pallas_call(
        kern,
        out_shape=jax.ShapeDtypeStruct((N, H, W, Cop4), jnp.float32),
        grid=(N,),
        in_specs=[
            pl.BlockSpec((1, H, W, Cmp), lambda n: (n, 0, 0, 0)),
            pl.BlockSpec((1, Cmp), lambda n: (0, 0)),
            pl.BlockSpec((1, Cmp), lambda n: (0, 0)),
            pl.BlockSpec((Cmp, Cop4), lambda n: (0, 0)),
            pl.BlockSpec((1, Cop4), lambda n: (0, 0)),
        ],
        out_specs=pl.BlockSpec((1, H, W, Cop4), lambda n: (n, 0, 0, 0)),
        compiler_params=pltpu.CompilerParams(
            dimension_semantics=("parallel",),
            vmem_limit_bytes=VMEM_LIMIT),
    )(y2, scale, shift, w_stack, b_stack)


# ---------------------------------------------------------------------------
# Wrapper: parameter plumbing + BN affine from fused stats
# ---------------------------------------------------------------------------
def decoder_block_forward(x_nchw, params):
    N, Cin, H, W = x_nchw.shape
    Cmid = params["w1"].shape[0]
    Cout = params["wt"].shape[1]
    M = N * H * W

    Cinp = _round_up(Cin, LANE)
    Cmp = _round_up(Cmid, LANE)
    Cop = _round_up(Cout, LANE)

    # NCHW -> NHWC, pad channels to lane width (lane-dense loads/stores).
    x = jnp.transpose(x_nchw, (0, 2, 3, 1)).astype(jnp.float32)
    x = _pad_axis(x, 3, Cinp)

    def conv_w(w_oihw, cip, cop):
        co, ci = w_oihw.shape[:2]
        w = jnp.transpose(w_oihw, (2, 3, 1, 0)).reshape(9, ci, co)  # k = kh*3+kw
        return _pad_axis(_pad_axis(w, 1, cip), 2, cop).astype(jnp.bfloat16)

    w1 = conv_w(params["w1"], Cinp, Cmp)
    w2 = conv_w(params["w2"], Cmp, Cmp)

    def bn_affine(stats, gamma, beta, cp):
        s = jnp.sum(stats[:, 0, :], axis=0)
        sq = jnp.sum(stats[:, 1, :], axis=0)
        mean = s / M
        var = sq / M - mean * mean          # biased var (BN train-mode normalization)
        g = _pad_axis(gamma.astype(jnp.float32), 0, cp)
        b = _pad_axis(beta.astype(jnp.float32), 0, cp)
        scale = g * lax.rsqrt(var + EPS)
        shift = b - mean * scale
        return scale.reshape(1, cp), shift.reshape(1, cp)

    ones = jnp.ones((1, Cinp), jnp.float32)      # dummies (conv1 has no input act)
    zeros = jnp.zeros((1, Cinp), jnp.float32)

    # conv1: bias dropped (cancelled by train-mode BN); stats fused in-kernel.
    y1, st1 = conv3x3_fused(x, w1, ones, zeros, apply_input_act=False)
    scale1, shift1 = bn_affine(st1, params["g1"], params["be1"], Cmp)

    # conv2: BN1+ReLU fused on the input side; stats fused; bias dropped.
    y2, st2 = conv3x3_fused(y1, w2, scale1, shift1, apply_input_act=True)
    scale2, shift2 = bn_affine(st2, params["g2"], params["be2"], Cmp)

    # ConvTranspose2d(k=2,s=2): stack the 4 taps on the output axis (tap-major).
    wt = params["wt"]                                  # (Cmid, Cout, 2, 2)
    w4 = jnp.transpose(wt, (0, 2, 3, 1))               # (Cmid, kh, kw, Cout)
    w4 = _pad_axis(_pad_axis(w4, 0, Cmp), 3, Cop)      # (Cmp, 2, 2, Cop)
    w4 = w4.reshape(Cmp, 4 * Cop).astype(jnp.bfloat16)
    bt = _pad_axis(params["bt"].astype(jnp.float32), 0, Cop)
    bt = jnp.tile(bt, 4).reshape(1, 4 * Cop)

    out = deconv2x2_fused(y2, scale2, shift2, w4, bt)  # (N, H, W, 4*Cop)

    # Single output pass: tap interleave + NHWC->NCHW in one XLA transpose.
    out = out.reshape(N, H, W, 2, 2, Cop)[..., :Cout]  # (N,H,W,kh,kw,Cout)
    out = jnp.transpose(out, (0, 5, 1, 3, 2, 4)).reshape(N, Cout, 2 * H, 2 * W)
    return out


# ---------------------------------------------------------------------------
# Pure-JAX f32 reference (PyTorch semantics, biases included)
# ---------------------------------------------------------------------------
def ref_forward(x_nchw, params):
    x = jnp.transpose(x_nchw, (0, 2, 3, 1)).astype(jnp.float32)

    def conv3x3(h, w_oihw, b):
        w_hwio = jnp.transpose(w_oihw, (2, 3, 1, 0))
        y = lax.conv_general_dilated(
            h, w_hwio, window_strides=(1, 1), padding=((1, 1), (1, 1)),
            dimension_numbers=("NHWC", "HWIO", "NHWC"))
        return y + b

    def bnr(y, gamma, beta):
        mean = y.mean(axis=(0, 1, 2))
        var = y.var(axis=(0, 1, 2))
        return jnp.maximum((y - mean) * lax.rsqrt(var + EPS) * gamma + beta, 0.0)

    h = bnr(conv3x3(x, params["w1"], params["b1"]), params["g1"], params["be1"])
    h = bnr(conv3x3(h, params["w2"], params["b2"]), params["g2"], params["be2"])
    wt, bt = params["wt"], params["bt"]
    N, H, W, _ = h.shape
    Co = wt.shape[1]
    y = jnp.einsum("nhwc,cokl->nhkwlo", h, wt).reshape(N, 2 * H, 2 * W, Co) + bt
    return jnp.transpose(y, (0, 3, 1, 2))


# ---------------------------------------------------------------------------
if __name__ == "__main__":
    key = jax.random.PRNGKey(0)
    N, Cin, Cmid, Cout, H, W = 2, 4, 8, 4, 16, 16
    ks = jax.random.split(key, 11)
    params = {
        "w1": 0.1 * jax.random.normal(ks[0], (Cmid, Cin, 3, 3), jnp.float32),
        "b1": 0.1 * jax.random.normal(ks[1], (Cmid,), jnp.float32),
        "g1": 1.0 + 0.1 * jax.random.normal(ks[2], (Cmid,), jnp.float32),
        "be1": 0.1 * jax.random.normal(ks[3], (Cmid,), jnp.float32),
        "w2": 0.1 * jax.random.normal(ks[4], (Cmid, Cmid, 3, 3), jnp.float32),
        "b2": 0.1 * jax.random.normal(ks[5], (Cmid,), jnp.float32),
        "g2": 1.0 + 0.1 * jax.random.normal(ks[6], (Cmid,), jnp.float32),
        "be2": 0.1 * jax.random.normal(ks[7], (Cmid,), jnp.float32),
        "wt": 0.1 * jax.random.normal(ks[8], (Cmid, Cout, 2, 2), jnp.float32),
        "bt": 0.1 * jax.random.normal(ks[9], (Cout,), jnp.float32),
    }
    x = jax.random.normal(ks[10], (N, Cin, H, W), jnp.float32)

    out = jax.jit(decoder_block_forward)(x, params)
    jax.block_until_ready(out)

    assert out.shape == (N, Cout, 2 * H, 2 * W), out.shape
    ref = ref_forward(x, params)
    # bf16 MXU operands / bf16-stored intermediates -> relaxed tolerance vs f32 ref.
    assert jnp.allclose(out, ref, rtol=5e-2, atol=5e-2), float(
        jnp.max(jnp.abs(out - ref)))
    print("KERNEL_OK")
</pallas_src>

<mosaic_0001>
module attributes {stable_mosaic.version = 11 : i64} {
  func.func @_conv3x3_kernel(%arg0: i32, %arg1: memref<1x16x16x128xf32, #tpu.memory_space<vmem>>, %arg2: memref<9x128x128xbf16, #tpu.memory_space<vmem>>, %arg3: memref<1x128xf32, #tpu.memory_space<vmem>>, %arg4: memref<1x128xf32, #tpu.memory_space<vmem>>, %arg5: memref<1x16x16x128xbf16, #tpu.memory_space<vmem>>, %arg6: memref<1x2x128xf32, #tpu.memory_space<vmem>>, %arg7: memref<18x25x128xf32, #tpu.memory_space<vmem>>) attributes {dimension_semantics = [#tpu.dimension_semantics<parallel>], iteration_bounds = array<i64: 2>, scalar_prefetch = 0 : i64, scratch_operands = 1 : i64, tpu.core_type = #tpu.core_type<tc>, window_params = [{transform_indices = @transform_0, window_bounds = array<i64: 1, 16, 16, 128>}, {pipeline_mode = #tpu.pipeline_mode<synchronous>, transform_indices = @transform_1, window_bounds = array<i64: 9, 128, 128>}, {pipeline_mode = #tpu.pipeline_mode<synchronous>, transform_indices = @transform_2, window_bounds = array<i64: 1, 128>}, {pipeline_mode = #tpu.pipeline_mode<synchronous>, transform_indices = @transform_3, window_bounds = array<i64: 1, 128>}, {transform_indices = @transform_4, window_bounds = array<i64: 1, 16, 16, 128>}, {transform_indices = @transform_5, window_bounds = array<i64: 1, 2, 128>}]} {
    %c0 = arith.constant 0 : index
    %c0_0 = arith.constant 0 : index
    %c0_1 = arith.constant 0 : index
    %c0_2 = arith.constant 0 : index
    %0 = vector.load %arg1[%c0, %c0_0, %c0_1, %c0_2] : memref<1x16x16x128xf32, #tpu.memory_space<vmem>>, vector<1x16x16x128xf32>
    %1 = vector.shape_cast %0 : vector<1x16x16x128xf32> to vector<16x16x128xf32>
    %cst = arith.constant 0.000000e+00 : f32
    %2 = vector.broadcast %cst : f32 to vector<18x25x128xf32>
    %c0_3 = arith.constant 0 : index
    %c0_4 = arith.constant 0 : index
    %c0_5 = arith.constant 0 : index
    %3 = vector.load %arg7[%c0_3, %c0_4, %c0_5] : memref<18x25x128xf32, #tpu.memory_space<vmem>>, vector<18x25x128xf32>
    tpu.vector_store %arg7[%c0_3, %c0_4, %c0_5], %2 {strides = array<i32>} : memref<18x25x128xf32, #tpu.memory_space<vmem>>, vector<18x25x128xf32>,
    %c1 = arith.constant 1 : index
    %c8 = arith.constant 8 : index
    %c0_6 = arith.constant 0 : index
    %4 = vector.load %arg7[%c1, %c8, %c0_6] : memref<18x25x128xf32, #tpu.memory_space<vmem>>, vector<16x16x128xf32>
    tpu.vector_store %arg7[%c1, %c8, %c0_6], %1 {strides = array<i32>} : memref<18x25x128xf32, #tpu.memory_space<vmem>>, vector<16x16x128xf32>,
    %cst_7 = arith.constant 0.000000e+00 : f32
    %5 = vector.broadcast %cst_7 : f32 to vector<256x128xf32>
    %c0_8 = arith.constant 0 : index
    %c7 = arith.constant 7 : index
    %c0_9 = arith.constant 0 : index
    %6 = vector.load %arg7[%c0_8, %c7, %c0_9] : memref<18x25x128xf32, #tpu.memory_space<vmem>>, vector<16x16x128xf32>
    %7 = vector.shape_cast %6 : vector<16x16x128xf32> to vector<256x128xf32>
    %8 = arith.truncf %7 : vector<256x128xf32> to vector<256x128xbf16>
    %c0_10 = arith.constant 0 : index
    %c0_11 = arith.constant 0 : index
    %c0_12 = arith.constant 0 : index
    %9 = vector.load %arg2[%c0_10, %c0_11, %c0_12] : memref<9x128x128xbf16, #tpu.memory_space<vmem>>, vector<1x128x128xbf16>
    %10 = vector.shape_cast %9 : vector<1x128x128xbf16> to vector<128x128xbf16>
    %cst_13 = arith.constant dense<0.000000e+00> : vector<256x128xf32>
    %11 = tpu.matmul %8, %10, %cst_13 {dimension_numbers = #tpu.dot_dimension_numbers<[1], [0], [0], [1], [0, 0, 1, 1], [], []>} : vector<256x128xbf16>, vector<128x128xbf16>, vector<256x128xf32> -> vector<256x128xf32>
    %12 = arith.addf %5, %11 : vector<256x128xf32>
    %c0_14 = arith.constant 0 : index
    %c8_15 = arith.constant 8 : index
    %c0_16 = arith.constant 0 : index
    %13 = vector.load %arg7[%c0_14, %c8_15, %c0_16] : memref<18x25x128xf32, #tpu.memory_space<vmem>>, vector<16x16x128xf32>
    %14 = vector.shape_cast %13 : vector<16x16x128xf32> to vector<256x128xf32>
    %15 = arith.truncf %14 : vector<256x128xf32> to vector<256x128xbf16>
    %c1_17 = arith.constant 1 : index
    %c0_18 = arith.constant 0 : index
    %c0_19 = arith.constant 0 : index
    %16 = vector.load %arg2[%c1_17, %c0_18, %c0_19] : memref<9x128x128xbf16, #tpu.memory_space<vmem>>, vector<1x128x128xbf16>
    %17 = vector.shape_cast %16 : vector<1x128x128xbf16> to vector<128x128xbf16>
    %cst_20 = arith.constant dense<0.000000e+00> : vector<256x128xf32>
    %18 = tpu.matmul %15, %17, %cst_20 {dimension_numbers = #tpu.dot_dimension_numbers<[1], [0], [0], [1], [0, 0, 1, 1], [], []>} : vector<256x128xbf16>, vector<128x128xbf16>, vector<256x128xf32> -> vector<256x128xf32>
    %19 = arith.addf %12, %18 : vector<256x128xf32>
    %c0_21 = arith.constant 0 : index
    %c9 = arith.constant 9 : index
    %c0_22 = arith.constant 0 : index
    %20 = vector.load %arg7[%c0_21, %c9, %c0_22] : memref<18x25x128xf32, #tpu.memory_space<vmem>>, vector<16x16x128xf32>
    %21 = vector.shape_cast %20 : vector<16x16x128xf32> to vector<256x128xf32>
    %22 = arith.truncf %21 : vector<256x128xf32> to vector<256x128xbf16>
    %c2 = arith.constant 2 : index
    %c0_23 = arith.constant 0 : index
    %c0_24 = arith.constant 0 : index
    %23 = vector.load %arg2[%c2, %c0_23, %c0_24] : memref<9x128x128xbf16, #tpu.memory_space<vmem>>, vector<1x128x128xbf16>
    %24 = vector.shape_cast %23 : vector<1x128x128xbf16> to vector<128x128xbf16>
    %cst_25 = arith.constant dense<0.000000e+00> : vector<256x128xf32>
    %25 = tpu.matmul %22, %24, %cst_25 {dimension_numbers = #tpu.dot_dimension_numbers<[1], [0], [0], [1], [0, 0, 1, 1], [], []>} : vector<256x128xbf16>, vector<128x128xbf16>, vector<256x128xf32> -> vector<256x128xf32>
    %26 = arith.addf %19, %25 : vector<256x128xf32>
    %c1_26 = arith.constant 1 : index
    %c7_27 = arith.constant 7 : index
    %c0_28 = arith.constant 0 : index
    %27 = vector.load %arg7[%c1_26, %c7_27, %c0_28] : memref<18x25x128xf32, #tpu.memory_space<vmem>>, vector<16x16x128xf32>
    %28 = vector.shape_cast %27 : vector<16x16x128xf32> to vector<256x128xf32>
    %29 = arith.truncf %28 : vector<256x128xf32> to vector<256x128xbf16>
    %c3 = arith.constant 3 : index
    %c0_29 = arith.constant 0 : index
    %c0_30 = arith.constant 0 : index
    %30 = vector.load %arg2[%c3, %c0_29, %c0_30] : memref<9x128x128xbf16, #tpu.memory_space<vmem>>, vector<1x128x128xbf16>
    %31 = vector.shape_cast %30 : vector<1x128x128xbf16> to vector<128x128xbf16>
    %cst_31 = arith.constant dense<0.000000e+00> : vector<256x128xf32>
    %32 = tpu.matmul %29, %31, %cst_31 {dimension_numbers = #tpu.dot_dimension_numbers<[1], [0], [0], [1], [0, 0, 1, 1], [], []>} : vector<256x128xbf16>, vector<128x128xbf16>, vector<256x128xf32> -> vector<256x128xf32>
    %33 = arith.addf %26, %32 : vector<256x128xf32>
    %c1_32 = arith.constant 1 : index
    %c8_33 = arith.constant 8 : index
    %c0_34 = arith.constant 0 : index
    %34 = vector.load %arg7[%c1_32, %c8_33, %c0_34] : memref<18x25x128xf32, #tpu.memory_space<vmem>>, vector<16x16x128xf32>
    %35 = vector.shape_cast %34 : vector<16x16x128xf32> to vector<256x128xf32>
    %36 = arith.truncf %35 : vector<256x128xf32> to vector<256x128xbf16>
    %c4 = arith.constant 4 : index
    %c0_35 = arith.constant 0 : index
    %c0_36 = arith.constant 0 : index
    %37 = vector.load %arg2[%c4, %c0_35, %c0_36] : memref<9x128x128xbf16, #tpu.memory_space<vmem>>, vector<1x128x128xbf16>
    %38 = vector.shape_cast %37 : vector<1x128x128xbf16> to vector<128x128xbf16>
    %cst_37 = arith.constant dense<0.000000e+00> : vector<256x128xf32>
    %39 = tpu.matmul %36, %38, %cst_37 {dimension_numbers = #tpu.dot_dimension_numbers<[1], [0], [0], [1], [0, 0, 1, 1], [], []>} : vector<256x128xbf16>, vector<128x128xbf16>, vector<256x128xf32> -> vector<256x128xf32>
    %40 = arith.addf %33, %39 : vector<256x128xf32>
    %c1_38 = arith.constant 1 : index
    %c9_39 = arith.constant 9 : index
    %c0_40 = arith.constant 0 : index
    %41 = vector.load %arg7[%c1_38, %c9_39, %c0_40] : memref<18x25x128xf32, #tpu.memory_space<vmem>>, vector<16x16x128xf32>
    %42 = vector.shape_cast %41 : vector<16x16x128xf32> to vector<256x128xf32>
    %43 = arith.truncf %42 : vector<256x128xf32> to vector<256x128xbf16>
    %c5 = arith.constant 5 : index
    %c0_41 = arith.constant 0 : index
    %c0_42 = arith.constant 0 : index
    %44 = vector.load %arg2[%c5, %c0_41, %c0_42] : memref<9x128x128xbf16, #tpu.memory_space<vmem>>, vector<1x128x128xbf16>
    %45 = vector.shape_cast %44 : vector<1x128x128xbf16> to vector<128x128xbf16>
    %cst_43 = arith.constant dense<0.000000e+00> : vector<256x128xf32>
    %46 = tpu.matmul %43, %45, %cst_43 {dimension_numbers = #tpu.dot_dimension_numbers<[1], [0], [0], [1], [0, 0, 1, 1], [], []>} : vector<256x128xbf16>, vector<128x128xbf16>, vector<256x128xf32> -> vector<256x128xf32>
    %47 = arith.addf %40, %46 : vector<256x128xf32>
    %c2_44 = arith.constant 2 : index
    %c7_45 = arith.constant 7 : index
    %c0_46 = arith.constant 0 : index
    %48 = vector.load %arg7[%c2_44, %c7_45, %c0_46] : memref<18x25x128xf32, #tpu.memory_space<vmem>>, vector<16x16x128xf32>
    %49 = vector.shape_cast %48 : vector<16x16x128xf32> to vector<256x128xf32>
    %50 = arith.truncf %49 : vector<256x128xf32> to vector<256x128xbf16>
    %c6 = arith.constant 6 : index
    %c0_47 = arith.constant 0 : index
    %c0_48 = arith.constant 0 : index
    %51 = vector.load %arg2[%c6, %c0_47, %c0_48] : memref<9x128x128xbf16, #tpu.memory_space<vmem>>, vector<1x128x128xbf16>
    %52 = vector.shape_cast %51 : vector<1x128x128xbf16> to vector<128x128xbf16>
    %cst_49 = arith.constant dense<0.000000e+00> : vector<256x128xf32>
    %53 = tpu.matmul %50, %52, %cst_49 {dimension_numbers = #tpu.dot_dimension_numbers<[1], [0], [0], [1], [0, 0, 1, 1], [], []>} : vector<256x128xbf16>, vector<128x128xbf16>, vector<256x128xf32> -> vector<256x128xf32>
    %54 = arith.addf %47, %53 : vector<256x128xf32>
    %c2_50 = arith.constant 2 : index
    %c8_51 = arith.constant 8 : index
    %c0_52 = arith.constant 0 : index
    %55 = vector.load %arg7[%c2_50, %c8_51, %c0_52] : memref<18x25x128xf32, #tpu.memory_space<vmem>>, vector<16x16x128xf32>
    %56 = vector.shape_cast %55 : vector<16x16x128xf32> to vector<256x128xf32>
    %57 = arith.truncf %56 : vector<256x128xf32> to vector<256x128xbf16>
    %c7_53 = arith.constant 7 : index
    %c0_54 = arith.constant 0 : index
    %c0_55 = arith.constant 0 : index
    %58 = vector.load %arg2[%c7_53, %c0_54, %c0_55] : memref<9x128x128xbf16, #tpu.memory_space<vmem>>, vector<1x128x128xbf16>
    %59 = vector.shape_cast %58 : vector<1x128x128xbf16> to vector<128x128xbf16>
    %cst_56 = arith.constant dense<0.000000e+00> : vector<256x128xf32>
    %60 = tpu.matmul %57, %59, %cst_56 {dimension_numbers = #tpu.dot_dimension_numbers<[1], [0], [0], [1], [0, 0, 1, 1], [], []>} : vector<256x128xbf16>, vector<128x128xbf16>, vector<256x128xf32> -> vector<256x128xf32>
    %61 = arith.addf %54, %60 : vector<256x128xf32>
    %c2_57 = arith.constant 2 : index
    %c9_58 = arith.constant 9 : index
    %c0_59 = arith.constant 0 : index
    %62 = vector.load %arg7[%c2_57, %c9_58, %c0_59] : memref<18x25x128xf32, #tpu.memory_space<vmem>>, vector<16x16x128xf32>
    %63 = vector.shape_cast %62 : vector<16x16x128xf32> to vector<256x128xf32>
    %64 = arith.truncf %63 : vector<256x128xf32> to vector<256x128xbf16>
    %c8_60 = arith.constant 8 : index
    %c0_61 = arith.constant 0 : index
    %c0_62 = arith.constant 0 : index
    %65 = vector.load %arg2[%c8_60, %c0_61, %c0_62] : memref<9x128x128xbf16, #tpu.memory_space<vmem>>, vector<1x128x128xbf16>
    %66 = vector.shape_cast %65 : vector<1x128x128xbf16> to vector<128x128xbf16>
    %cst_63 = arith.constant dense<0.000000e+00> : vector<256x128xf32>
    %67 = tpu.matmul %64, %66, %cst_63 {dimension_numbers = #tpu.dot_dimension_numbers<[1], [0], [0], [1], [0, 0, 1, 1], [], []>} : vector<256x128xbf16>, vector<128x128xbf16>, vector<256x128xf32> -> vector<256x128xf32>
    %68 = arith.addf %61, %67 : vector<256x128xf32>
    %cst_64 = arith.constant dense<0.000000e+00> : vector<128xf32>
    %69 = vector.multi_reduction <add>, %68, %cst_64 [0] : vector<256x128xf32> to vector<128xf32>
    %70 = vector.shape_cast %69 : vector<128xf32> to vector<1x128xf32>
    %c0_65 = arith.constant 0 : index
    %c0_66 = arith.constant 0 : index
    %c0_67 = arith.constant 0 : index
    %71 = vector.load %arg6[%c0_65, %c0_66, %c0_67] : memref<1x2x128xf32, #tpu.memory_space<vmem>>, vector<1x1x128xf32>
    %72 = vector.shape_cast %71 : vector<1x1x128xf32> to vector<1x128xf32>
    %73 = vector.shape_cast %70 : vector<1x128xf32> to vector<1x1x128xf32>
    tpu.vector_store %arg6[%c0_65, %c0_66, %c0_67], %73 {strides = array<i32>} : memref<1x2x128xf32, #tpu.memory_space<vmem>>, vector<1x1x128xf32>,
    %74 = arith.mulf %68, %68 : vector<256x128xf32>
    %cst_68 = arith.constant dense<0.000000e+00> : vector<128xf32>
    %75 = vector.multi_reduction <add>, %74, %cst_68 [0] : vector<256x128xf32> to vector<128xf32>
    %76 = vector.shape_cast %75 : vector<128xf32> to vector<1x128xf32>
    %c0_69 = arith.constant 0 : index
    %c1_70 = arith.constant 1 : index
    %c0_71 = arith.constant 0 : index
    %77 = vector.load %arg6[%c0_69, %c1_70, %c0_71] : memref<1x2x128xf32, #tpu.memory_space<vmem>>, vector<1x1x128xf32>
    %78 = vector.shape_cast %77 : vector<1x1x128xf32> to vector<1x128xf32>
    %79 = vector.shape_cast %76 : vector<1x128xf32> to vector<1x1x128xf32>
    tpu.vector_store %arg6[%c0_69, %c1_70, %c0_71], %79 {strides = array<i32>} : memref<1x2x128xf32, #tpu.memory_space<vmem>>, vector<1x1x128xf32>,
    %80 = vector.shape_cast %68 : vector<256x128xf32> to vector<1x16x16x128xf32>
    %81 = arith.truncf %80 : vector<1x16x16x128xf32> to vector<1x16x16x128xbf16>
    %c0_72 = arith.constant 0 : index
    %c0_73 = arith.constant 0 : index
    %c0_74 = arith.constant 0 : index
    %c0_75 = arith.constant 0 : index
    %82 = vector.load %arg5[%c0_72, %c0_73, %c0_74, %c0_75] : memref<1x16x16x128xbf16, #tpu.memory_space<vmem>>, vector<1x16x16x128xbf16>
    tpu.vector_store %arg5[%c0_72, %c0_73, %c0_74, %c0_75], %81 {strides = array<i32>} : memref<1x16x16x128xbf16, #tpu.memory_space<vmem>>, vector<1x16x16x128xbf16>,
    return
  }
  func.func @transform_0(%arg0: i32) -> (i32, i32, i32, i32) {
    %c0_i32 = arith.constant 0 : i32
    %c0_i32_0 = arith.constant 0 : i32
    %c0_i32_1 = arith.constant 0 : i32
    %c0_i32_2 = arith.constant 0 : i32
    return %arg0, %c0_i32, %c0_i32_0, %c0_i32_1 : i32, i32, i32, i32
  }
  func.func @transform_1(%arg0: i32) -> (i32, i32, i32) {
    %c0_i32 = arith.constant 0 : i32
    %c0_i32_0 = arith.constant 0 : i32
    %c0_i32_1 = arith.constant 0 : i32
    %c0_i32_2 = arith.constant 0 : i32
    return %c0_i32, %c0_i32_0, %c0_i32_1 : i32, i32, i32
  }
  func.func @transform_2(%arg0: i32) -> (i32, i32) {
    %c0_i32 = arith.constant 0 : i32
    %c0_i32_0 = arith.constant 0 : i32
    %c0_i32_1 = arith.constant 0 : i32
    return %c0_i32, %c0_i32_0 : i32, i32
  }
  func.func @transform_3(%arg0: i32) -> (i32, i32) {
    %c0_i32 = arith.constant 0 : i32
    %c0_i32_0 = arith.constant 0 : i32
    %c0_i32_1 = arith.constant 0 : i32
    return %c0_i32, %c0_i32_0 : i32, i32
  }
  func.func @transform_4(%arg0: i32) -> (i32, i32, i32, i32) {
    %c0_i32 = arith.constant 0 : i32
    %c0_i32_0 = arith.constant 0 : i32
    %c0_i32_1 = arith.constant 0 : i32
    %c0_i32_2 = arith.constant 0 : i32
    return %arg0, %c0_i32, %c0_i32_0, %c0_i32_1 : i32, i32, i32, i32
  }
  func.func @transform_5(%arg0: i32) -> (i32, i32, i32) {
    %c0_i32 = arith.constant 0 : i32
    %c0_i32_0 = arith.constant 0 : i32
    %c0_i32_1 = arith.constant 0 : i32
    return %arg0, %c0_i32, %c0_i32_0 : i32, i32, i32
  }
}

module attributes {stable_mosaic.version = 11 : i64} {
  func.func @_conv3x3_kernel(%arg0: i32, %arg1: memref<1x16x16x128xbf16, #tpu.memory_space<vmem>>, %arg2: memref<9x128x128xbf16, #tpu.memory_space<vmem>>, %arg3: memref<1x128xf32, #tpu.memory_space<vmem>>, %arg4: memref<1x128xf32, #tpu.memory_space<vmem>>, %arg5: memref<1x16x16x128xbf16, #tpu.memory_space<vmem>>, %arg6: memref<1x2x128xf32, #tpu.memory_space<vmem>>, %arg7: memref<18x25x128xf32, #tpu.memory_space<vmem>>) attributes {dimension_semantics = [#tpu.dimension_semantics<parallel>], iteration_bounds = array<i64: 2>, scalar_prefetch = 0 : i64, scratch_operands = 1 : i64, tpu.core_type = #tpu.core_type<tc>, window_params = [{transform_indices = @transform_0, window_bounds = array<i64: 1, 16, 16, 128>}, {pipeline_mode = #tpu.pipeline_mode<synchronous>, transform_indices = @transform_1, window_bounds = array<i64: 9, 128, 128>}, {pipeline_mode = #tpu.pipeline_mode<synchronous>, transform_indices = @transform_2, window_bounds = array<i64: 1, 128>}, {pipeline_mode = #tpu.pipeline_mode<synchronous>, transform_indices = @transform_3, window_bounds = array<i64: 1, 128>}, {transform_indices = @transform_4, window_bounds = array<i64: 1, 16, 16, 128>}, {transform_indices = @transform_5, window_bounds = array<i64: 1, 2, 128>}]} {
    %c0 = arith.constant 0 : index
    %c0_0 = arith.constant 0 : index
    %c0_1 = arith.constant 0 : index
    %c0_2 = arith.constant 0 : index
    %0 = vector.load %arg1[%c0, %c0_0, %c0_1, %c0_2] : memref<1x16x16x128xbf16, #tpu.memory_space<vmem>>, vector<1x16x16x128xbf16>
    %1 = vector.shape_cast %0 : vector<1x16x16x128xbf16> to vector<16x16x128xbf16>
    %2 = arith.extf %1 : vector<16x16x128xbf16> to vector<16x16x128xf32>
    %c0_3 = arith.constant 0 : index
    %c0_4 = arith.constant 0 : index
    %3 = vector.load %arg3[%c0_3, %c0_4] : memref<1x128xf32, #tpu.memory_space<vmem>>, vector<1x128xf32>
    %4 = vector.shape_cast %3 : vector<1x128xf32> to vector<1x1x128xf32>
    %5 = vector.broadcast %4 : vector<1x1x128xf32> to vector<16x16x128xf32>
    %6 = arith.mulf %2, %5 : vector<16x16x128xf32>
    %c0_5 = arith.constant 0 : index
    %c0_6 = arith.constant 0 : index
    %7 = vector.load %arg4[%c0_5, %c0_6] : memref<1x128xf32, #tpu.memory_space<vmem>>, vector<1x128xf32>
    %8 = vector.shape_cast %7 : vector<1x128xf32> to vector<1x1x128xf32>
    %9 = vector.broadcast %8 : vector<1x1x128xf32> to vector<16x16x128xf32>
    %10 = arith.addf %6, %9 : vector<16x16x128xf32>
    %cst = arith.constant 0.000000e+00 : f32
    %11 = vector.broadcast %cst : f32 to vector<16x16x128xf32>
    %12 = arith.maximumf %10, %11 : vector<16x16x128xf32>
    %cst_7 = arith.constant 0.000000e+00 : f32
    %13 = vector.broadcast %cst_7 : f32 to vector<18x25x128xf32>
    %c0_8 = arith.constant 0 : index
    %c0_9 = arith.constant 0 : index
    %c0_10 = arith.constant 0 : index
    %14 = vector.load %arg7[%c0_8, %c0_9, %c0_10] : memref<18x25x128xf32, #tpu.memory_space<vmem>>, vector<18x25x128xf32>
    tpu.vector_store %arg7[%c0_8, %c0_9, %c0_10], %13 {strides = array<i32>} : memref<18x25x128xf32, #tpu.memory_space<vmem>>, vector<18x25x128xf32>,
    %c1 = arith.constant 1 : index
    %c8 = arith.constant 8 : index
    %c0_11 = arith.constant 0 : index
    %15 = vector.load %arg7[%c1, %c8, %c0_11] : memref<18x25x128xf32, #tpu.memory_space<vmem>>, vector<16x16x128xf32>
    tpu.vector_store %arg7[%c1, %c8, %c0_11], %12 {strides = array<i32>} : memref<18x25x128xf32, #tpu.memory_space<vmem>>, vector<16x16x128xf32>,
    %cst_12 = arith.constant 0.000000e+00 : f32
    %16 = vector.broadcast %cst_12 : f32 to vector<256x128xf32>
    %c0_13 = arith.constant 0 : index
    %c7 = arith.constant 7 : index
    %c0_14 = arith.constant 0 : index
    %17 = vector.load %arg7[%c0_13, %c7, %c0_14] : memref<18x25x128xf32, #tpu.memory_space<vmem>>, vector<16x16x128xf32>
    %18 = vector.shape_cast %17 : vector<16x16x128xf32> to vector<256x128xf32>
    %19 = arith.truncf %18 : vector<256x128xf32> to vector<256x128xbf16>
    %c0_15 = arith.constant 0 : index
    %c0_16 = arith.constant 0 : index
    %c0_17 = arith.constant 0 : index
    %20 = vector.load %arg2[%c0_15, %c0_16, %c0_17] : memref<9x128x128xbf16, #tpu.memory_space<vmem>>, vector<1x128x128xbf16>
    %21 = vector.shape_cast %20 : vector<1x128x128xbf16> to vector<128x128xbf16>
    %cst_18 = arith.constant dense<0.000000e+00> : vector<256x128xf32>
    %22 = tpu.matmul %19, %21, %cst_18 {dimension_numbers = #tpu.dot_dimension_numbers<[1], [0], [0], [1], [0, 0, 1, 1], [], []>} : vector<256x128xbf16>, vector<128x128xbf16>, vector<256x128xf32> -> vector<256x128xf32>
    %23 = arith.addf %16, %22 : vector<256x128xf32>
    %c0_19 = arith.constant 0 : index
    %c8_20 = arith.constant 8 : index
    %c0_21 = arith.constant 0 : index
    %24 = vector.load %arg7[%c0_19, %c8_20, %c0_21] : memref<18x25x128xf32, #tpu.memory_space<vmem>>, vector<16x16x128xf32>
    %25 = vector.shape_cast %24 : vector<16x16x128xf32> to vector<256x128xf32>
    %26 = arith.truncf %25 : vector<256x128xf32> to vector<256x128xbf16>
    %c1_22 = arith.constant 1 : index
    %c0_23 = arith.constant 0 : index
    %c0_24 = arith.constant 0 : index
    %27 = vector.load %arg2[%c1_22, %c0_23, %c0_24] : memref<9x128x128xbf16, #tpu.memory_space<vmem>>, vector<1x128x128xbf16>
    %28 = vector.shape_cast %27 : vector<1x128x128xbf16> to vector<128x128xbf16>
    %cst_25 = arith.constant dense<0.000000e+00> : vector<256x128xf32>
    %29 = tpu.matmul %26, %28, %cst_25 {dimension_numbers = #tpu.dot_dimension_numbers<[1], [0], [0], [1], [0, 0, 1, 1], [], []>} : vector<256x128xbf16>, vector<128x128xbf16>, vector<256x128xf32> -> vector<256x128xf32>
    %30 = arith.addf %23, %29 : vector<256x128xf32>
    %c0_26 = arith.constant 0 : index
    %c9 = arith.constant 9 : index
    %c0_27 = arith.constant 0 : index
    %31 = vector.load %arg7[%c0_26, %c9, %c0_27] : memref<18x25x128xf32, #tpu.memory_space<vmem>>, vector<16x16x128xf32>
    %32 = vector.shape_cast %31 : vector<16x16x128xf32> to vector<256x128xf32>
    %33 = arith.truncf %32 : vector<256x128xf32> to vector<256x128xbf16>
    %c2 = arith.constant 2 : index
    %c0_28 = arith.constant 0 : index
    %c0_29 = arith.constant 0 : index
    %34 = vector.load %arg2[%c2, %c0_28, %c0_29] : memref<9x128x128xbf16, #tpu.memory_space<vmem>>, vector<1x128x128xbf16>
    %35 = vector.shape_cast %34 : vector<1x128x128xbf16> to vector<128x128xbf16>
    %cst_30 = arith.constant dense<0.000000e+00> : vector<256x128xf32>
    %36 = tpu.matmul %33, %35, %cst_30 {dimension_numbers = #tpu.dot_dimension_numbers<[1], [0], [0], [1], [0, 0, 1, 1], [], []>} : vector<256x128xbf16>, vector<128x128xbf16>, vector<256x128xf32> -> vector<256x128xf32>
    %37 = arith.addf %30, %36 : vector<256x128xf32>
    %c1_31 = arith.constant 1 : index
    %c7_32 = arith.constant 7 : index
    %c0_33 = arith.constant 0 : index
    %38 = vector.load %arg7[%c1_31, %c7_32, %c0_33] : memref<18x25x128xf32, #tpu.memory_space<vmem>>, vector<16x16x128xf32>
    %39 = vector.shape_cast %38 : vector<16x16x128xf32> to vector<256x128xf32>
    %40 = arith.truncf %39 : vector<256x128xf32> to vector<256x128xbf16>
    %c3 = arith.constant 3 : index
    %c0_34 = arith.constant 0 : index
    %c0_35 = arith.constant 0 : index
    %41 = vector.load %arg2[%c3, %c0_34, %c0_35] : memref<9x128x128xbf16, #tpu.memory_space<vmem>>, vector<1x128x128xbf16>
    %42 = vector.shape_cast %41 : vector<1x128x128xbf16> to vector<128x128xbf16>
    %cst_36 = arith.constant dense<0.000000e+00> : vector<256x128xf32>
    %43 = tpu.matmul %40, %42, %cst_36 {dimension_numbers = #tpu.dot_dimension_numbers<[1], [0], [0], [1], [0, 0, 1, 1], [], []>} : vector<256x128xbf16>, vector<128x128xbf16>, vector<256x128xf32> -> vector<256x128xf32>
    %44 = arith.addf %37, %43 : vector<256x128xf32>
    %c1_37 = arith.constant 1 : index
    %c8_38 = arith.constant 8 : index
    %c0_39 = arith.constant 0 : index
    %45 = vector.load %arg7[%c1_37, %c8_38, %c0_39] : memref<18x25x128xf32, #tpu.memory_space<vmem>>, vector<16x16x128xf32>
    %46 = vector.shape_cast %45 : vector<16x16x128xf32> to vector<256x128xf32>
    %47 = arith.truncf %46 : vector<256x128xf32> to vector<256x128xbf16>
    %c4 = arith.constant 4 : index
    %c0_40 = arith.constant 0 : index
    %c0_41 = arith.constant 0 : index
    %48 = vector.load %arg2[%c4, %c0_40, %c0_41] : memref<9x128x128xbf16, #tpu.memory_space<vmem>>, vector<1x128x128xbf16>
    %49 = vector.shape_cast %48 : vector<1x128x128xbf16> to vector<128x128xbf16>
    %cst_42 = arith.constant dense<0.000000e+00> : vector<256x128xf32>
    %50 = tpu.matmul %47, %49, %cst_42 {dimension_numbers = #tpu.dot_dimension_numbers<[1], [0], [0], [1], [0, 0, 1, 1], [], []>} : vector<256x128xbf16>, vector<128x128xbf16>, vector<256x128xf32> -> vector<256x128xf32>
    %51 = arith.addf %44, %50 : vector<256x128xf32>
    %c1_43 = arith.constant 1 : index
    %c9_44 = arith.constant 9 : index
    %c0_45 = arith.constant 0 : index
    %52 = vector.load %arg7[%c1_43, %c9_44, %c0_45] : memref<18x25x128xf32, #tpu.memory_space<vmem>>, vector<16x16x128xf32>
    %53 = vector.shape_cast %52 : vector<16x16x128xf32> to vector<256x128xf32>
    %54 = arith.truncf %53 : vector<256x128xf32> to vector<256x128xbf16>
    %c5 = arith.constant 5 : index
    %c0_46 = arith.constant 0 : index
    %c0_47 = arith.constant 0 : index
    %55 = vector.load %arg2[%c5, %c0_46, %c0_47] : memref<9x128x128xbf16, #tpu.memory_space<vmem>>, vector<1x128x128xbf16>
    %56 = vector.shape_cast %55 : vector<1x128x128xbf16> to vector<128x128xbf16>
    %cst_48 = arith.constant dense<0.000000e+00> : vector<256x128xf32>
    %57 = tpu.matmul %54, %56, %cst_48 {dimension_numbers = #tpu.dot_dimension_numbers<[1], [0], [0], [1], [0, 0, 1, 1], [], []>} : vector<256x128xbf16>, vector<128x128xbf16>, vector<256x128xf32> -> vector<256x128xf32>
    %58 = arith.addf %51, %57 : vector<256x128xf32>
    %c2_49 = arith.constant 2 : index
    %c7_50 = arith.constant 7 : index
    %c0_51 = arith.constant 0 : index
    %59 = vector.load %arg7[%c2_49, %c7_50, %c0_51] : memref<18x25x128xf32, #tpu.memory_space<vmem>>, vector<16x16x128xf32>
    %60 = vector.shape_cast %59 : vector<16x16x128xf32> to vector<256x128xf32>
    %61 = arith.truncf %60 : vector<256x128xf32> to vector<256x128xbf16>
    %c6 = arith.constant 6 : index
    %c0_52 = arith.constant 0 : index
    %c0_53 = arith.constant 0 : index
    %62 = vector.load %arg2[%c6, %c0_52, %c0_53] : memref<9x128x128xbf16, #tpu.memory_space<vmem>>, vector<1x128x128xbf16>
    %63 = vector.shape_cast %62 : vector<1x128x128xbf16> to vector<128x128xbf16>
    %cst_54 = arith.constant dense<0.000000e+00> : vector<256x128xf32>
    %64 = tpu.matmul %61, %63, %cst_54 {dimension_numbers = #tpu.dot_dimension_numbers<[1], [0], [0], [1], [0, 0, 1, 1], [], []>} : vector<256x128xbf16>, vector<128x128xbf16>, vector<256x128xf32> -> vector<256x128xf32>
    %65 = arith.addf %58, %64 : vector<256x128xf32>
    %c2_55 = arith.constant 2 : index
    %c8_56 = arith.constant 8 : index
    %c0_57 = arith.constant 0 : index
    %66 = vector.load %arg7[%c2_55, %c8_56, %c0_57] : memref<18x25x128xf32, #tpu.memory_space<vmem>>, vector<16x16x128xf32>
    %67 = vector.shape_cast %66 : vector<16x16x128xf32> to vector<256x128xf32>
    %68 = arith.truncf %67 : vector<256x128xf32> to vector<256x128xbf16>
    %c7_58 = arith.constant 7 : index
    %c0_59 = arith.constant 0 : index
    %c0_60 = arith.constant 0 : index
    %69 = vector.load %arg2[%c7_58, %c0_59, %c0_60] : memref<9x128x128xbf16, #tpu.memory_space<vmem>>, vector<1x128x128xbf16>
    %70 = vector.shape_cast %69 : vector<1x128x128xbf16> to vector<128x128xbf16>
    %cst_61 = arith.constant dense<0.000000e+00> : vector<256x128xf32>
    %71 = tpu.matmul %68, %70, %cst_61 {dimension_numbers = #tpu.dot_dimension_numbers<[1], [0], [0], [1], [0, 0, 1, 1], [], []>} : vector<256x128xbf16>, vector<128x128xbf16>, vector<256x128xf32> -> vector<256x128xf32>
    %72 = arith.addf %65, %71 : vector<256x128xf32>
    %c2_62 = arith.constant 2 : index
    %c9_63 = arith.constant 9 : index
    %c0_64 = arith.constant 0 : index
    %73 = vector.load %arg7[%c2_62, %c9_63, %c0_64] : memref<18x25x128xf32, #tpu.memory_space<vmem>>, vector<16x16x128xf32>
    %74 = vector.shape_cast %73 : vector<16x16x128xf32> to vector<256x128xf32>
    %75 = arith.truncf %74 : vector<256x128xf32> to vector<256x128xbf16>
    %c8_65 = arith.constant 8 : index
    %c0_66 = arith.constant 0 : index
    %c0_67 = arith.constant 0 : index
    %76 = vector.load %arg2[%c8_65, %c0_66, %c0_67] : memref<9x128x128xbf16, #tpu.memory_space<vmem>>, vector<1x128x128xbf16>
    %77 = vector.shape_cast %76 : vector<1x128x128xbf16> to vector<128x128xbf16>
    %cst_68 = arith.constant dense<0.000000e+00> : vector<256x128xf32>
    %78 = tpu.matmul %75, %77, %cst_68 {dimension_numbers = #tpu.dot_dimension_numbers<[1], [0], [0], [1], [0, 0, 1, 1], [], []>} : vector<256x128xbf16>, vector<128x128xbf16>, vector<256x128xf32> -> vector<256x128xf32>
    %79 = arith.addf %72, %78 : vector<256x128xf32>
    %cst_69 = arith.constant dense<0.000000e+00> : vector<128xf32>
    %80 = vector.multi_reduction <add>, %79, %cst_69 [0] : vector<256x128xf32> to vector<128xf32>
    %81 = vector.shape_cast %80 : vector<128xf32> to vector<1x128xf32>
    %c0_70 = arith.constant 0 : index
    %c0_71 = arith.constant 0 : index
    %c0_72 = arith.constant 0 : index
    %82 = vector.load %arg6[%c0_70, %c0_71, %c0_72] : memref<1x2x128xf32, #tpu.memory_space<vmem>>, vector<1x1x128xf32>
    %83 = vector.shape_cast %82 : vector<1x1x128xf32> to vector<1x128xf32>
    %84 = vector.shape_cast %81 : vector<1x128xf32> to vector<1x1x128xf32>
    tpu.vector_store %arg6[%c0_70, %c0_71, %c0_72], %84 {strides = array<i32>} : memref<1x2x128xf32, #tpu.memory_space<vmem>>, vector<1x1x128xf32>,
    %85 = arith.mulf %79, %79 : vector<256x128xf32>
    %cst_73 = arith.constant dense<0.000000e+00> : vector<128xf32>
    %86 = vector.multi_reduction <add>, %85, %cst_73 [0] : vector<256x128xf32> to vector<128xf32>
    %87 = vector.shape_cast %86 : vector<128xf32> to vector<1x128xf32>
    %c0_74 = arith.constant 0 : index
    %c1_75 = arith.constant 1 : index
    %c0_76 = arith.constant 0 : index
    %88 = vector.load %arg6[%c0_74, %c1_75, %c0_76] : memref<1x2x128xf32, #tpu.memory_space<vmem>>, vector<1x1x128xf32>
    %89 = vector.shape_cast %88 : vector<1x1x128xf32> to vector<1x128xf32>
    %90 = vector.shape_cast %87 : vector<1x128xf32> to vector<1x1x128xf32>
    tpu.vector_store %arg6[%c0_74, %c1_75, %c0_76], %90 {strides = array<i32>} : memref<1x2x128xf32, #tpu.memory_space<vmem>>, vector<1x1x128xf32>,
    %91 = vector.shape_cast %79 : vector<256x128xf32> to vector<1x16x16x128xf32>
    %92 = arith.truncf %91 : vector<1x16x16x128xf32> to vector<1x16x16x128xbf16>
    %c0_77 = arith.constant 0 : index
    %c0_78 = arith.constant 0 : index
    %c0_79 = arith.constant 0 : index
    %c0_80 = arith.constant 0 : index
    %93 = vector.load %arg5[%c0_77, %c0_78, %c0_79, %c0_80] : memref<1x16x16x128xbf16, #tpu.memory_space<vmem>>, vector<1x16x16x128xbf16>
    tpu.vector_store %arg5[%c0_77, %c0_78, %c0_79, %c0_80], %92 {strides = array<i32>} : memref<1x16x16x128xbf16, #tpu.memory_space<vmem>>, vector<1x16x16x128xbf16>,
    return
  }
  func.func @transform_0(%arg0: i32) -> (i32, i32, i32, i32) {
    %c0_i32 = arith.constant 0 : i32
    %c0_i32_0 = arith.constant 0 : i32
    %c0_i32_1 = arith.constant 0 : i32
    %c0_i32_2 = arith.constant 0 : i32
    return %arg0, %c0_i32, %c0_i32_0, %c0_i32_1 : i32, i32, i32, i32
  }
  func.func @transform_1(%arg0: i32) -> (i32, i32, i32) {
    %c0_i32 = arith.constant 0 : i32
    %c0_i32_0 = arith.constant 0 : i32
    %c0_i32_1 = arith.constant 0 : i32
    %c0_i32_2 = arith.constant 0 : i32
    return %c0_i32, %c0_i32_0, %c0_i32_1 : i32, i32, i32
  }
  func.func @transform_2(%arg0: i32) -> (i32, i32) {
    %c0_i32 = arith.constant 0 : i32
    %c0_i32_0 = arith.constant 0 : i32
    %c0_i32_1 = arith.constant 0 : i32
    return %c0_i32, %c0_i32_0 : i32, i32
  }
  func.func @transform_3(%arg0: i32) -> (i32, i32) {
    %c0_i32 = arith.constant 0 : i32
    %c0_i32_0 = arith.constant 0 : i32
    %c0_i32_1 = arith.constant 0 : i32
    return %c0_i32, %c0_i32_0 : i32, i32
  }
  func.func @transform_4(%arg0: i32) -> (i32, i32, i32, i32) {
    %c0_i32 = arith.constant 0 : i32
    %c0_i32_0 = arith.constant 0 : i32
    %c0_i32_1 = arith.constant 0 : i32
    %c0_i32_2 = arith.constant 0 : i32
    return %arg0, %c0_i32, %c0_i32_0, %c0_i32_1 : i32, i32, i32, i32
  }
  func.func @transform_5(%arg0: i32) -> (i32, i32, i32) {
    %c0_i32 = arith.constant 0 : i32
    %c0_i32_0 = arith.constant 0 : i32
    %c0_i32_1 = arith.constant 0 : i32
    return %arg0, %c0_i32, %c0_i32_0 : i32, i32, i32
  }
}

module attributes {stable_mosaic.version = 11 : i64} {
  func.func @_deconv2x2_kernel(%arg0: i32, %arg1: memref<1x16x16x128xbf16, #tpu.memory_space<vmem>>, %arg2: memref<1x128xf32, #tpu.memory_space<vmem>>, %arg3: memref<1x128xf32, #tpu.memory_space<vmem>>, %arg4: memref<128x512xbf16, #tpu.memory_space<vmem>>, %arg5: memref<1x512xf32, #tpu.memory_space<vmem>>, %arg6: memref<1x16x16x512xf32, #tpu.memory_space<vmem>>) attributes {dimension_semantics = [#tpu.dimension_semantics<parallel>], iteration_bounds = array<i64: 2>, scalar_prefetch = 0 : i64, scratch_operands = 0 : i64, tpu.core_type = #tpu.core_type<tc>, window_params = [{transform_indices = @transform_0, window_bounds = array<i64: 1, 16, 16, 128>}, {pipeline_mode = #tpu.pipeline_mode<synchronous>, transform_indices = @transform_1, window_bounds = array<i64: 1, 128>}, {pipeline_mode = #tpu.pipeline_mode<synchronous>, transform_indices = @transform_2, window_bounds = array<i64: 1, 128>}, {pipeline_mode = #tpu.pipeline_mode<synchronous>, transform_indices = @transform_3, window_bounds = array<i64: 128, 512>}, {pipeline_mode = #tpu.pipeline_mode<synchronous>, transform_indices = @transform_4, window_bounds = array<i64: 1, 512>}, {transform_indices = @transform_5, window_bounds = array<i64: 1, 16, 16, 512>}]} {
    %c0 = arith.constant 0 : index
    %c0_0 = arith.constant 0 : index
    %c0_1 = arith.constant 0 : index
    %c0_2 = arith.constant 0 : index
    %0 = vector.load %arg1[%c0, %c0_0, %c0_1, %c0_2] : memref<1x16x16x128xbf16, #tpu.memory_space<vmem>>, vector<1x16x16x128xbf16>
    %1 = vector.shape_cast %0 : vector<1x16x16x128xbf16> to vector<16x16x128xbf16>
    %2 = arith.extf %1 : vector<16x16x128xbf16> to vector<16x16x128xf32>
    %c0_3 = arith.constant 0 : index
    %c0_4 = arith.constant 0 : index
    %3 = vector.load %arg2[%c0_3, %c0_4] : memref<1x128xf32, #tpu.memory_space<vmem>>, vector<1x128xf32>
    %4 = vector.shape_cast %3 : vector<1x128xf32> to vector<1x1x128xf32>
    %5 = vector.broadcast %4 : vector<1x1x128xf32> to vector<16x16x128xf32>
    %6 = arith.mulf %2, %5 : vector<16x16x128xf32>
    %c0_5 = arith.constant 0 : index
    %c0_6 = arith.constant 0 : index
    %7 = vector.load %arg3[%c0_5, %c0_6] : memref<1x128xf32, #tpu.memory_space<vmem>>, vector<1x128xf32>
    %8 = vector.shape_cast %7 : vector<1x128xf32> to vector<1x1x128xf32>
    %9 = vector.broadcast %8 : vector<1x1x128xf32> to vector<16x16x128xf32>
    %10 = arith.addf %6, %9 : vector<16x16x128xf32>
    %cst = arith.constant 0.000000e+00 : f32
    %11 = vector.broadcast %cst : f32 to vector<16x16x128xf32>
    %12 = arith.maximumf %10, %11 : vector<16x16x128xf32>
    %13 = vector.shape_cast %12 : vector<16x16x128xf32> to vector<256x128xf32>
    %14 = arith.truncf %13 : vector<256x128xf32> to vector<256x128xbf16>
    %c0_7 = arith.constant 0 : index
    %c0_8 = arith.constant 0 : index
    %15 = vector.load %arg4[%c0_7, %c0_8] : memref<128x512xbf16, #tpu.memory_space<vmem>>, vector<128x512xbf16>
    %cst_9 = arith.constant dense<0.000000e+00> : vector<256x512xf32>
    %16 = tpu.matmul %14, %15, %cst_9 {dimension_numbers = #tpu.dot_dimension_numbers<[1], [0], [0], [1], [0, 0, 1, 1], [], []>} : vector<256x128xbf16>, vector<128x512xbf16>, vector<256x512xf32> -> vector<256x512xf32>
    %c0_10 = arith.constant 0 : index
    %c0_11 = arith.constant 0 : index
    %17 = vector.load %arg5[%c0_10, %c0_11] : memref<1x512xf32, #tpu.memory_space<vmem>>, vector<1x512xf32>
    %18 = vector.broadcast %17 : vector<1x512xf32> to vector<256x512xf32>
    %19 = arith.addf %16, %18 : vector<256x512xf32>
    %20 = vector.shape_cast %19 : vector<256x512xf32> to vector<1x16x16x512xf32>
    %c0_12 = arith.constant 0 : index
    %c0_13 = arith.constant 0 : index
    %c0_14 = arith.constant 0 : index
    %c0_15 = arith.constant 0 : index
    %21 = vector.load %arg6[%c0_12, %c0_13, %c0_14, %c0_15] : memref<1x16x16x512xf32, #tpu.memory_space<vmem>>, vector<1x16x16x512xf32>
    tpu.vector_store %arg6[%c0_12, %c0_13, %c0_14, %c0_15], %20 {strides = array<i32>} : memref<1x16x16x512xf32, #tpu.memory_space<vmem>>, vector<1x16x16x512xf32>,
    return
  }
  func.func @transform_0(%arg0: i32) -> (i32, i32, i32, i32) {
    %c0_i32 = arith.constant 0 : i32
    %c0_i32_0 = arith.constant 0 : i32
    %c0_i32_1 = arith.constant 0 : i32
    %c0_i32_2 = arith.constant 0 : i32
    return %arg0, %c0_i32, %c0_i32_0, %c0_i32_1 : i32, i32, i32, i32
  }
  func.func @transform_1(%arg0: i32) -> (i32, i32) {
    %c0_i32 = arith.constant 0 : i32
    %c0_i32_0 = arith.constant 0 : i32
    %c0_i32_1 = arith.constant 0 : i32
    return %c0_i32, %c0_i32_0 : i32, i32
  }
  func.func @transform_2(%arg0: i32) -> (i32, i32) {
    %c0_i32 = arith.constant 0 : i32
    %c0_i32_0 = arith.constant 0 : i32
    %c0_i32_1 = arith.constant 0 : i32
    return %c0_i32, %c0_i32_0 : i32, i32
  }
  func.func @transform_3(%arg0: i32) -> (i32, i32) {
    %c0_i32 = arith.constant 0 : i32
    %c0_i32_0 = arith.constant 0 : i32
    %c0_i32_1 = arith.constant 0 : i32
    return %c0_i32, %c0_i32_0 : i32, i32
  }
  func.func @transform_4(%arg0: i32) -> (i32, i32) {
    %c0_i32 = arith.constant 0 : i32
    %c0_i32_0 = arith.constant 0 : i32
    %c0_i32_1 = arith.constant 0 : i32
    return %c0_i32, %c0_i32_0 : i32, i32
  }
  func.func @transform_5(%arg0: i32) -> (i32, i32, i32, i32) {
    %c0_i32 = arith.constant 0 : i32
    %c0_i32_0 = arith.constant 0 : i32
    %c0_i32_1 = arith.constant 0 : i32
    %c0_i32_2 = arith.constant 0 : i32
    return %arg0, %c0_i32, %c0_i32_0, %c0_i32_1 : i32, i32, i32, i32
  }
}

</mosaic_0001>

<bundles_post_ra>
// kernel: tile.8
= control target key start
LH: loop header
LB: loop body
LE: loop exit
PB: predicated region body
PF: predicated region fallthrough
CT: control target
= control target key end

     0   :  { %s22_s0 = inlined_call_operand.vmem [shape: f32[128], index: 0, kind: input, shape index: {}]   ;;  %s23_s1 = inlined_call_operand.vmem [shape: f32[4,128], index: 1, kind: output, shape index: {}]  }
   0x1   :  { %v4_v0 = vld [vmem:[%s22_s0] ss:$0 sm:$0xff] }
   0x2   :  { %5 = vst [vmem:[%s23_s1] sm:$0xf] %v4_v0 }

// kernel: decoder_block_forward.5
= control target key start
LH: loop header
LB: loop body
LE: loop exit
PB: predicated region body
PF: predicated region fallthrough
CT: control target
= control target key end

     0   :  { %s1421_s18 = smov 0   ;;  %s1985_s0 = inlined_call_operand.vmem [shape: bf16[2,16,16,128], index: 0, kind: input, shape index: {}]   ;;  %s1986_s1 = inlined_call_operand.vmem [shape: f32[1,128], index: 1, kind: input, shape index: {}]   ;;  %s1987_s2 = inlined_call_operand.vmem [shape: f32[1,128], index: 2, kind: input, shape index: {}]   ;;  %s1988_s3 = inlined_call_operand.vmem [shape: bf16[128,512], index: 3, kind: input, shape index: {}]   ;;  %s1989_s4 = inlined_call_operand.vmem [shape: f32[1,512], index: 4, kind: input, shape index: {}]   ;;  %s1990_s5 = inlined_call_operand.vmem [shape: f32[2,16,16,512], index: 5, kind: output, shape index: {}]  }
   0x1 LB: > { %s1199_s19 = sadd.s32 4294967295, %s1388_s18   ;;  %p1203_p0 = scmp.ge.s32.totalorder %s1388_s18, 1  ;;  %s1388_s18 = sphi %s1421_s18, %s15_s18  }
   0x2   : > { %p187_p1 = scmp.lt.s32.totalorder %s1388_s18, 3 }
   0x4   : > { %p188_p2 = pnand %p1203_p0, %p187_p1 }
   0x5   : > { %v1334_v0 = vld [vmem:[%s1988_s3 + $0x4] ss:$16 sps:$4 sm:$0xff] (!%p188_p2)   ;;  %v1336_v1 = vld [vmem:[%s1988_s3 + $0xc] ss:$16 sps:$4 sm:$0xff] (!%p188_p2)   ;;  %v1390_v2 = vmov (!%p188_p2), 0   ;;  %p215_p3 = scmp.lt.s32.totalorder (!%p188_p2), %s1199_s19, 1 }
   0x6   : > { %191 = sbr.rel (%p188_p2) target bundleno = 377 (0x179), region = 40  ;;  %662 = vmatprep.mubr.bf16.mxu0 (!%p188_p2), %v1390_v2  ;;  %855 = vmatprep.mubr.bf16.mxu1 (!%p188_p2), %v1390_v2  ;;  %v1338_v3 = vld [vmem:[%s1988_s3] ss:$16 sps:$4 sm:$0xff] (!%p188_p2)   ;;  %v1339_v4 = vld [vmem:[%s1988_s3 + $0x8] ss:$16 sps:$4 sm:$0xff] (!%p188_p2)  }
   0x7   : > { %630 = vmatprep.subr.bf16.mxu0 (!%p188_p2), %v1334_v0  ;;  %823 = vmatprep.subr.bf16.mxu1 (!%p188_p2), %v1336_v1  ;;  %v1340_v5 = vld [vmem:[%s1988_s3 + $0x24] ss:$16 sps:$4 sm:$0xff] (!%p188_p2)   ;;  %v1342_v6 = vld [vmem:[%s1988_s3 + $0x2c] ss:$16 sps:$4 sm:$0xff] (!%p188_p2)   ;;  %v1344_v7 = vld [vmem:[%s1988_s3 + $0x20] ss:$16 sps:$4 sm:$0xff] (!%p188_p2)  }
   0x8   : > { %631 = vmatpush1.bf16.msra.mxu0 (!%p188_p2), %v1338_v3  ;;  %824 = vmatpush1.bf16.msra.mxu1 (!%p188_p2), %v1339_v4  ;;  %v1345_v8 = vld [vmem:[%s1988_s3 + $0x28] ss:$16 sps:$4 sm:$0xff] (!%p188_p2)   ;;  %v1346_v9 = vld [vmem:[%s1988_s3 + $0x44] ss:$16 sps:$4 sm:$0xff] (!%p188_p2)   ;;  %v1348_v10 = vld [vmem:[%s1988_s3 + $0x4c] ss:$16 sps:$4 sm:$0xff] (!%p188_p2)  }
   0x9   : > { %632 = vmatprep.subr.bf16.mxu0 (!%p188_p2), %v1340_v5  ;;  %825 = vmatprep.subr.bf16.mxu1 (!%p188_p2), %v1342_v6  ;;  %v1350_v11 = vld [vmem:[%s1988_s3 + $0x40] ss:$16 sps:$4 sm:$0xff] (!%p188_p2)   ;;  %v1351_v12 = vld [vmem:[%s1988_s3 + $0x48] ss:$16 sps:$4 sm:$0xff] (!%p188_p2)   ;;  %v1352_v13 = vld [vmem:[%s1988_s3 + $0x64] ss:$16 sps:$4 sm:$0xff] (!%p188_p2)  }
   0xa   : > { %v1354_v14 = vld [vmem:[%s1988_s3 + $0x6c] ss:$16 sps:$4 sm:$0xff] (!%p188_p2)   ;;  %v1356_v15 = vld [vmem:[%s1988_s3 + $0x60] ss:$16 sps:$4 sm:$0xff] (!%p188_p2)   ;;  %v1357_v16 = vld [vmem:[%s1988_s3 + $0x68] ss:$16 sps:$4 sm:$0xff] (!%p188_p2)  }
   0xb   : > { %v1358_v17 = vld [vmem:[%s1988_s3 + $0x84] ss:$16 sps:$4 sm:$0xff] (!%p188_p2)   ;;  %v1360_v18 = vld [vmem:[%s1988_s3 + $0x8c] ss:$16 sps:$4 sm:$0xff] (!%p188_p2)   ;;  %v1362_v19 = vld [vmem:[%s1988_s3 + $0x80] ss:$16 sps:$4 sm:$0xff] (!%p188_p2)  }
   0xc   : > { %633 = vmatpush1.bf16.msra.mxu0 (!%p188_p2), %v1344_v7  ;;  %826 = vmatpush1.bf16.msra.mxu1 (!%p188_p2), %v1345_v8  ;;  %v1363_v20 = vld [vmem:[%s1988_s3 + $0x88] ss:$16 sps:$4 sm:$0xff] (!%p188_p2)   ;;  %v1364_v21 = vld [vmem:[%s1988_s3 + $0xa4] ss:$16 sps:$4 sm:$0xff] (!%p188_p2)   ;;  %v1366_v22 = vld [vmem:[%s1988_s3 + $0xac] ss:$16 sps:$4 sm:$0xff] (!%p188_p2)  }
   0xd   : > { %634 = vmatprep.subr.bf16.mxu0 %v1346_v9  ;;  %827 = vmatprep.subr.bf16.mxu1 %v1348_v10  ;;  %s1992_s19 = smov (!%p215_p3, %s1199_s19), 1  ;;  %v1368_v23 = vld [vmem:[%s1988_s3 + $0xa0] ss:$16 sps:$4 sm:$0xff]   ;;  %v1369_v24 = vld [vmem:[%s1988_s3 + $0xa8] ss:$16 sps:$4 sm:$0xff]  }
   0xe   : > { %s1244_s12 = sshll.u32 %s1992_s19, 7  ;;  %v1370_v25 = vld [vmem:[%s1988_s3 + $0xc4] ss:$16 sps:$4 sm:$0xff]   ;;  %v1372_v26 = vld [vmem:[%s1988_s3 + $0xcc] ss:$16 sps:$4 sm:$0xff]   ;;  %s1245_s25 = sshll.u32 %s1992_s19, 10 }
   0xf   : > { %s1507_s21 = scalar_lea.vmem %s1985_s0, %s1244_s12  ;;  %v1525_v28 = vld [vmem:[%s1986_s1] ss:$0 sm:$0xff]  ;;  %v1375_v38 = vld [vmem:[%s1988_s3 + $0xc8] ss:$16 sps:$4 sm:$0xff]   ;;  %v1376_v43 = vld [vmem:[%s1988_s3 + $0xe4] ss:$16 sps:$4 sm:$0xff]   ;;  %s1724_s28 = scalar_lea.vmem %s1990_s5, %s1245_s25 }
  0x10   : > { %635 = vmatpush1.bf16.msra.mxu0 %v1350_v11  ;;  %828 = vmatpush1.bf16.msra.mxu1 %v1351_v12  ;;  %v1247_v27 = vld [vmem:[%s1507_s21] sm:$0xff]   ;;  %v1310_v31 = vld [vmem:[%s1507_s21 + $0x8] sm:$0xff]   ;;  %v1311_v32 = vld [vmem:[%s1507_s21 + $0x10] sm:$0xff]  }
  0x11   : > { %636 = vmatprep.subr.bf16.mxu0 %v1352_v13  ;;  %829 = vmatprep.subr.bf16.mxu1 %v1354_v14  ;;  %v1248_v29 = vunpack.c.l.bf16 %v1247_v27  ;;  %v1249_v30 = vunpack.c.h.bf16 %v1247_v27  ;;  %v1532_v33 = vld [vmem:[%s1987_s2] ss:$0 sm:$0xff]  ;;  %v1252_v34 = vunpack.c.l.bf16 %v1310_v31  ;;  %v1253_v35 = vunpack.c.h.bf16 %v1310_v31  ;;  %v1312_v36 = vld [vmem:[%s1507_s21 + $0x18] sm:$0xff]   ;;  %v1574_v11 = vld [vmem:[%s1507_s21 + $0x28] sm:$0xff]  }
  0x12   : > { %v1374_v37 = vld [vmem:[%s1988_s3 + $0xc0] ss:$16 sps:$4 sm:$0xff]   ;;  %v1256_v41 = vunpack.c.l.bf16 %v1311_v32  ;;  %v1257_v42 = vunpack.c.h.bf16 %v1311_v32  ;;  %v1378_v44 = vld [vmem:[%s1988_s3 + $0xec] ss:$16 sps:$4 sm:$0xff]   ;;  %v1260_v45 = vunpack.c.l.bf16 %v1312_v36  ;;  %v1261_v46 = vunpack.c.h.bf16 %v1312_v36  ;;  %v1381_v52 = vld [vmem:[%s1988_s3 + $0xe8] ss:$16 sps:$4 sm:$0xff]  }
  0x13   : > { %v297_v39 = vmul.f32 %v1248_v29, %v1525_v28  ;;  %v298_v40 = vmul.f32 %v1249_v30, %v1525_v28  ;;  %v299_v49 = vmul.f32 %v1252_v34, %v1525_v28  ;;  %v300_v50 = vmul.f32 %v1253_v35, %v1525_v28  ;;  %v1380_v51 = vld [vmem:[%s1988_s3 + $0xe0] ss:$16 sps:$4 sm:$0xff]  }
  0x14   : > { %637 = vmatpush1.bf16.msra.mxu0 %v1356_v15  ;;  %830 = vmatpush1.bf16.msra.mxu1 %v1357_v16  ;;  %v301_v55 = vmul.f32 %v1256_v41, %v1525_v28  ;;  %v302_v56 = vmul.f32 %v1257_v42, %v1525_v28  ;;  %v303_v57 = vmul.f32 %v1260_v45, %v1525_v28  ;;  %v1313_v0 = vld [vmem:[%s1507_s21 + $0x20] sm:$0xff]   ;;  %v1318_v15 = vld [vmem:[%s1507_s21 + $0x48] sm:$0xff]   ;;  %v1269_v29 = vunpack.c.h.bf16 %v1574_v11 }
  0x15   : > { %638 = vmatprep.subr.bf16.mxu0 %v1358_v17  ;;  %831 = vmatprep.subr.bf16.mxu1 %v1360_v18  ;;  %v336_v47 = vadd.f32 %v1532_v33, %v297_v39  ;;  %v337_v48 = vadd.f32 %v1532_v33, %v298_v40  ;;  %v304_v58 = vmul.f32 %v1261_v46, %v1525_v28  ;;  %v1317_v6 = vld [vmem:[%s1507_s21 + $0x40] sm:$0xff]   ;;  %v1264_v7 = vunpack.c.l.bf16 %v1313_v0 }
  0x16   : > { %v338_v59 = vadd.f32 %v1532_v33, %v299_v49  ;;  %v339_v60 = vadd.f32 %v1532_v33, %v300_v50  ;;  %v340_v62 = vadd.f32 %v1532_v33, %v301_v55  ;;  %v341_v63 = vadd.f32 %v1532_v33, %v302_v56 }
  0x17   : > { %v368_v53 = vmax.f32 %v336_v47, 0.0  ;;  %v369_v54 = vmax.f32 %v337_v48, 0.0  ;;  %v342_v1 = vadd.f32 %v1532_v33, %v303_v57  ;;  %v343_v3 = vadd.f32 %v1532_v33, %v304_v58 }
  0x18   : > { %639 = vmatpush1.bf16.msra.mxu0 %v1362_v19  ;;  %832 = vmatpush1.bf16.msra.mxu1 %v1363_v20  ;;  %v370_v4 = vmax.f32 %v338_v59, 0.0  ;;  %v371_v5 = vmax.f32 %v339_v60, 0.0  ;;  %v372_v8 = vmax.f32 %v340_v62, 0.0  ;;  %v373_v9 = vmax.f32 %v341_v63, 0.0  ;;  %v1323_v59 = vld [vmem:[%s1507_s21 + $0x70] sm:$0xff]  }
  0x19   : > { %640 = vmatprep.subr.bf16.mxu0 %v1364_v21  ;;  %833 = vmatprep.subr.bf16.mxu1 %v1366_v22  ;;  %v400_v61 = vpack.c.bf16 %v369_v54, %v368_v53  ;;  %v1265_v10 = vunpack.c.h.bf16 %v1313_v0  ;;  %v374_v12 = vmax.f32 %v342_v1, 0.0  ;;  %v375_v13 = vmax.f32 %v343_v3, 0.0  ;;  %v1319_v21 = vld [vmem:[%s1507_s21 + $0x50] sm:$0xff]   ;;  %v1322_v54 = vld [vmem:[%s1507_s21 + $0x68] sm:$0xff]  }
  0x1a   : > { %v1280_v14 = vunpack.c.l.bf16 %v1317_v6  ;;  %v401_v16 = vpack.c.bf16 %v371_v5, %v370_v4  ;;  %v305_v17 = vmul.f32 %v1264_v7, %v1525_v28  ;;  %v1268_v18 = vunpack.c.l.bf16 %v1574_v11 }
  0x1b   : > { %v1281_v19 = vunpack.c.h.bf16 %v1317_v6  ;;  %v402_v22 = vpack.c.bf16 %v373_v9, %v372_v8  ;;  %v1585_v27 = vpack.c.bf16 %v375_v13, %v374_v12  ;;  %v1288_v35 = vunpack.c.l.bf16 %v1319_v21  ;;  %v1324_v9 = vld [vmem:[%s1507_s21 + $0x78] sm:$0xff]  }
  0x1c   : > { %641 = vmatpush1.bf16.msra.mxu0 %v1368_v23  ;;  %834 = vmatpush1.bf16.msra.mxu1 %v1369_v24  ;;  %v313_v20 = vmul.f32 %v1280_v14, %v1525_v28  ;;  %v1582_v23 = vmul.f32 %v1265_v10, %v1525_v28  ;;  %v1284_v24 = vunpack.c.l.bf16 %v1318_v15  ;;  %v1289_v36 = vunpack.c.h.bf16 %v1319_v21 }
  0x1d   : > { %642 = vmatprep.subr.bf16.mxu0 %v1370_v25  ;;  %835 = vmatprep.subr.bf16.mxu1 %v1372_v26  ;;  %v1285_v25 = vunpack.c.h.bf16 %v1318_v15  ;;  %v1320_v26 = vld [vmem:[%s1507_s21 + $0x58] sm:$0xff]   ;;  %v314_v30 = vmul.f32 %v1281_v19, %v1525_v28  ;;  %v1300_v4 = vunpack.c.l.bf16 %v1322_v54  ;;  %v1301_v7 = vunpack.c.h.bf16 %v1322_v54 }
  0x1e   : > { %v352_v31 = vadd.f32 %v1532_v33, %v313_v20  ;;  %v315_v32 = vmul.f32 %v1284_v24, %v1525_v28  ;;  %v1292_v41 = vunpack.c.l.bf16 %v1320_v26  ;;  %v1293_v45 = vunpack.c.h.bf16 %v1320_v26 }
  0x1f   : > { %v316_v34 = vmul.f32 %v1285_v25, %v1525_v28  ;;  %v353_v39 = vadd.f32 %v1532_v33, %v314_v30  ;;  %v318_v47 = vmul.f32 %v1289_v36, %v1525_v28  ;;  %v1304_v8 = vunpack.c.l.bf16 %v1323_v59 }
  0x20   : > { %643 = vmatpush1.bf16.msra.mxu0 %v1374_v37  ;;  %836 = vmatpush1.bf16.msra.mxu1 %v1375_v38  ;;  %v1321_v37 = vld [vmem:[%s1507_s21 + $0x60] sm:$0xff]   ;;  %v1594_v38 = vadd.f32 %v1532_v33, %v305_v17  ;;  %v384_v40 = vmax.f32 %v352_v31, 0.0  ;;  %v354_v42 = vadd.f32 %v1532_v33, %v315_v32  ;;  %v319_v48 = vmul.f32 %v1292_v41, %v1525_v28 }
  0x21   : > { %644 = vmatprep.subr.bf16.mxu0 %v1376_v43  ;;  %837 = vmatprep.subr.bf16.mxu1 %v1378_v44  ;;  %v355_v43 = vadd.f32 %v1532_v33, %v316_v34  ;;  %v317_v44 = vmul.f32 %v1288_v35, %v1525_v28  ;;  %v385_v46 = vmax.f32 %v353_v39, 0.0  ;;  %v1296_v49 = vunpack.c.l.bf16 %v1321_v37 }
  0x22   : > { %v386_v50 = vmax.f32 %v354_v42, 0.0  ;;  %v320_v53 = vmul.f32 %v1293_v45, %v1525_v28  ;;  %v357_v56 = vadd.f32 %v1532_v33, %v318_v47  ;;  %v358_v57 = vadd.f32 %v1532_v33, %v319_v48  ;;  %v1315_v48 = vld [vmem:[%s1507_s21 + $0x30] sm:$0xff]  }
  0x23   : > { %v1607_v55 = vpack.c.bf16 %v385_v46, %v384_v40  ;;  %v1297_v58 = vunpack.c.h.bf16 %v1321_v37  ;;  %v321_v63 = vmul.f32 %v1296_v49, %v1525_v28  ;;  %v323_v13 = vmul.f32 %v1300_v4, %v1525_v28 }
  0x24   : > { %645 = vmatpush1.bf16.msra.mxu0 %v1380_v51  ;;  %838 = vmatpush1.bf16.msra.mxu1 %v1381_v52  ;;  %v387_v51 = vmax.f32 %v355_v43, 0.0  ;;  %v356_v52 = vadd.f32 %v1532_v33, %v317_v44  ;;  %v359_v62 = vadd.f32 %v1532_v33, %v320_v53  ;;  %v389_v0 = vmax.f32 %v357_v56, 0.0 }
  0x25   : > { %v390_v1 = vmax.f32 %v358_v57, 0.0  ;;  %v322_v3 = vmul.f32 %v1297_v58, %v1525_v28  ;;  %v360_v6 = vadd.f32 %v1532_v33, %v321_v63  ;;  %v1305_v14 = vunpack.c.h.bf16 %v1323_v59  ;;  %v1316_v58 = vld [vmem:[%s1507_s21 + $0x38] sm:$0xff]  }
  0x26   : > { %v1612_v60 = vpack.c.bf16 %v387_v51, %v386_v50  ;;  %v391_v5 = vmax.f32 %v359_v62, 0.0  ;;  %v324_v17 = vmul.f32 %v1301_v7, %v1525_v28  ;;  %v325_v19 = vmul.f32 %v1304_v8, %v1525_v28 }
  0x27   : > { %663 = vmatmul.mubr.bf16.vlgmr.msra.gmra.mrb[0].mxu0 %v400_v61  ;;  %856 = vmatmul.mubr.bf16.vlgmr.msra.gmra.mrb[0].mxu1 %v400_v61  ;;  %v388_v61 = vmax.f32 %v356_v52, 0.0  ;;  %v361_v12 = vadd.f32 %v1532_v33, %v322_v3  ;;  %v362_v21 = vadd.f32 %v1532_v33, %v323_v13  ;;  %v1308_v24 = vunpack.c.l.bf16 %v1324_v9 }
  0x28   : > { %672 = vmatprep.mubr.bf16.mxu0 %v1390_v2  ;;  %865 = vmatprep.mubr.bf16.mxu1 %v1390_v2  ;;  %v1625_v15 = vpack.c.bf16 %v391_v5, %v390_v1  ;;  %v345_v25 = vadd.f32 %v1532_v33, %v1582_v23  ;;  %v363_v26 = vadd.f32 %v1532_v33, %v324_v17  ;;  %v1309_v31 = vunpack.c.h.bf16 %v1324_v9 }
  0x29   : > { %v1619_v10 = vpack.c.bf16 %v389_v0, %v388_v61  ;;  %v393_v20 = vmax.f32 %v361_v12, 0.0  ;;  %v364_v30 = vadd.f32 %v1532_v33, %v325_v19  ;;  %v394_v34 = vmax.f32 %v362_v21, 0.0 }
  0x2a   : > { %v327_v36 = vmul.f32 %v1308_v24, %v1525_v28  ;;  %v395_v37 = vmax.f32 %v363_v26, 0.0  ;;  %v328_v40 = vmul.f32 %v1309_v31, %v1525_v28  ;;  %v307_v42 = vmul.f32 %v1268_v18, %v1525_v28 }
  0x2b   : > { %v396_v39 = vmax.f32 %v364_v30, 0.0  ;;  %v308_v43 = vmul.f32 %v1269_v29, %v1525_v28  ;;  %v376_v46 = vmax.f32 %v1594_v38, 0.0  ;;  %v377_v47 = vmax.f32 %v345_v25, 0.0 }
  0x2c   : > { %v366_v23 = vadd.f32 %v1532_v33, %v327_v36  ;;  %v1647_v44 = vpack.c.bf16 %v395_v37, %v394_v34  ;;  %v367_v45 = vadd.f32 %v1532_v33, %v328_v40  ;;  %v1272_v18 = vunpack.c.l.bf16 %v1315_v48 }
  0x2d   : > { %v404_v51 = vpack.c.bf16 %v377_v47, %v376_v46  ;;  %v346_v52 = vadd.f32 %v1532_v33, %v307_v42  ;;  %v1273_v38 = vunpack.c.h.bf16 %v1315_v48  ;;  %v1276_v59 = vunpack.c.l.bf16 %v1316_v58 }
  0x2e   : > { %v398_v50 = vmax.f32 %v366_v23, 0.0  ;;  %v399_v11 = vmax.f32 %v367_v45, 0.0  ;;  %v309_v56 = vmul.f32 %v1272_v18, %v1525_v28  ;;  %v1277_v0 = vunpack.c.h.bf16 %v1316_v58 }
  0x2f   : > { %673 = vmatmul.mubr.bf16.gmra.mrb[4].mxu0 %v401_v16  ;;  %866 = vmatmul.mubr.bf16.gmra.mrb[4].mxu1 %v401_v16  ;;  %v392_v16 = vmax.f32 %v360_v6, 0.0  ;;  %v378_v53 = vmax.f32 %v346_v52, 0.0  ;;  %v310_v57 = vmul.f32 %v1273_v38, %v1525_v28  ;;  %v311_v4 = vmul.f32 %v1276_v59, %v1525_v28 }
  0x30   : > { %682 = vmatprep.mubr.bf16.mxu0 %v1390_v2  ;;  %875 = vmatprep.mubr.bf16.mxu1 %v1390_v2  ;;  %v1658_v29 = vpack.c.bf16 %v399_v11, %v398_v50  ;;  %v348_v62 = vadd.f32 %v1532_v33, %v309_v56  ;;  %v312_v5 = vmul.f32 %v1277_v0, %v1525_v28 }
  0x31   : > { %v1635_v32 = vpack.c.bf16 %v393_v20, %v392_v16  ;;  %v349_v63 = vadd.f32 %v1532_v33, %v310_v57  ;;  %v350_v7 = vadd.f32 %v1532_v33, %v311_v4 }
  0x32   : > { %v380_v1 = vmax.f32 %v348_v62, 0.0  ;;  %v351_v8 = vadd.f32 %v1532_v33, %v312_v5 }
  0x33   : > { %v381_v3 = vmax.f32 %v349_v63, 0.0  ;;  %v382_v9 = vmax.f32 %v350_v7, 0.0 }
  0x34   : > { %v383_v12 = vmax.f32 %v351_v8, 0.0 }
  0x35   : > { %v406_v6 = vpack.c.bf16 %v381_v3, %v380_v1 }
  0x36   : > { %v407_v13 = vpack.c.bf16 %v383_v12, %v382_v9 }
  0x37   : > { %683 = vmatmul.mubr.bf16.gmra.mrb[8].mxu0 %v402_v22  ;;  %876 = vmatmul.mubr.bf16.gmra.mrb[8].mxu1 %v402_v22  ;;  %v326_v22 = vmul.f32 %v1305_v14, %v1525_v28  ;;  %v450_v28 = vlaneseq }
  0x38   : > { %692 = vmatprep.mubr.bf16.mxu0 %v1390_v2  ;;  %885 = vmatprep.mubr.bf16.mxu1 %v1390_v2 }
  0x39   : > { %v365_v35 = vadd.f32 %v1532_v33, %v326_v22 }
  0x3b   : > { %v397_v41 = vmax.f32 %v365_v35, 0.0 }
  0x3d   : > { %v1654_v49 = vpack.c.bf16 %v397_v41, %v396_v39 }
  0x3f   : > { %693 = vmatmul.mubr.bf16.gmra.mrb[12].mxu0 %v1585_v27  ;;  %886 = vmatmul.mubr.bf16.gmra.mrb[12].mxu1 %v1585_v27  ;;  %v347_v27 = vadd.f32 %v1532_v33, %v308_v43  ;;  %v451_v33 = vshrl.u32 %v450_v28, 7 }
  0x40   : > { %702 = vmatprep.mubr.bf16.mxu0 %v1390_v2  ;;  %895 = vmatprep.mubr.bf16.mxu1 %v1390_v2 }
  0x41   : > { %v379_v54 = vmax.f32 %v347_v27, 0.0  ;;  %v456_v14 = vsub.s32 1, %v451_v33 }
  0x43   : > { %v405_v61 = vpack.c.bf16 %v379_v54, %v378_v53 }
  0x47   : > { %703 = vmatmul.mubr.bf16.gmra.mrb[16].mxu0 %v404_v51  ;;  %896 = vmatmul.mubr.bf16.gmra.mrb[16].mxu1 %v404_v51 }
  0x48   : > { %712 = vmatprep.mubr.bf16.mxu0 %v1390_v2  ;;  %905 = vmatprep.mubr.bf16.mxu1 %v1390_v2 }
  0x4f   : > { %713 = vmatmul.mubr.bf16.gmra.mrb[20].mxu0 %v405_v61  ;;  %906 = vmatmul.mubr.bf16.gmra.mrb[20].mxu1 %v405_v61 }
  0x50   : > { %722 = vmatprep.mubr.bf16.mxu0 %v1390_v2  ;;  %915 = vmatprep.mubr.bf16.mxu1 %v1390_v2 }
  0x57   : > { %723 = vmatmul.mubr.bf16.gmra.mrb[24].mxu0 %v406_v6  ;;  %916 = vmatmul.mubr.bf16.gmra.mrb[24].mxu1 %v406_v6 }
  0x58   : > { %732 = vmatprep.mubr.bf16.mxu0 %v1390_v2  ;;  %925 = vmatprep.mubr.bf16.mxu1 %v1390_v2 }
  0x5f   : > { %733 = vmatmul.mubr.bf16.gmra.mrb[28].mxu0 %v407_v13  ;;  %926 = vmatmul.mubr.bf16.gmra.mrb[28].mxu1 %v407_v13 }
  0x60   : > { %742 = vmatprep.mubr.bf16.mxu0 %v1390_v2  ;;  %935 = vmatprep.mubr.bf16.mxu1 %v1390_v2 }
  0x67   : > { %743 = vmatmul.mubr.bf16.gmra.mrb[32].mxu0 %v1607_v55  ;;  %936 = vmatmul.mubr.bf16.gmra.mrb[32].mxu1 %v1607_v55  ;;  %v452_v55 = vsub.s32 0, %v451_v33 }
  0x68   : > { %752 = vmatprep.mubr.bf16.mxu0 %v1390_v2  ;;  %945 = vmatprep.mubr.bf16.mxu1 %v1390_v2 }
  0x6f   : > { %753 = vmatmul.mubr.bf16.gmra.mrb[36].mxu0 %v1612_v60  ;;  %946 = vmatmul.mubr.bf16.gmra.mrb[36].mxu1 %v1612_v60  ;;  %v460_v60 = vsub.s32 2, %v451_v33 }
  0x70   : > { %762 = vmatprep.mubr.bf16.mxu0 %v1390_v2  ;;  %955 = vmatprep.mubr.bf16.mxu1 %v1390_v2 }
  0x77   : > { %763 = vmatmul.mubr.bf16.gmra.mrb[40].mxu0 %v1619_v10  ;;  %956 = vmatmul.mubr.bf16.gmra.mrb[40].mxu1 %v1619_v10  ;;  %v448_v10 = vld [vmem:[%s1989_s4] sm:$0xf] }
  0x78   : > { %772 = vmatprep.mubr.bf16.mxu0 %v1390_v2  ;;  %965 = vmatprep.mubr.bf16.mxu1 %v1390_v2  ;;  %v1713_v16 = vrot.slane %v448_v10, %v452_v55  ;;  %v1715_v17 = vrot.slane %v448_v10, %v460_v60 }
  0x7f   : > { %773 = vmatmul.mubr.bf16.gmra.mrb[44].mxu0 %v1625_v15  ;;  %966 = vmatmul.mubr.bf16.gmra.mrb[44].mxu1 %v1625_v15  ;;  %v464_v15 = vsub.s32 3, %v451_v33 }
  0x80   : > { %782 = vmatprep.mubr.bf16.mxu0 %v1390_v2  ;;  %975 = vmatprep.mubr.bf16.mxu1 %v1390_v2 }
  0x81   : > { %v1719_v19 = vrot.slane %v448_v10, %v464_v15 }
  0x87   : > { %783 = vmatmul.mubr.bf16.gmra.mrb[48].mxu0 %v1635_v32  ;;  %976 = vmatmul.mubr.bf16.gmra.mrb[48].mxu1 %v1635_v32 }
  0x88   : > { %792 = vmatprep.mubr.bf16.mxu0 %v1390_v2  ;;  %985 = vmatprep.mubr.bf16.mxu1 %v1390_v2 }
  0x8f   : > { %793 = vmatmul.mubr.bf16.gmra.mrb[52].mxu0 %v1647_v44  ;;  %986 = vmatmul.mubr.bf16.gmra.mrb[52].mxu1 %v1647_v44 }
  0x90   : > { %802 = vmatprep.mubr.bf16.mxu0 %v1390_v2  ;;  %995 = vmatprep.mubr.bf16.mxu1 %v1390_v2 }
  0x97   : > { %803 = vmatmul.mubr.bf16.gmra.mrb[56].mxu0 %v1654_v49  ;;  %996 = vmatmul.mubr.bf16.gmra.mrb[56].mxu1 %v1654_v49 }
  0x98   : > { %812 = vmatprep.mubr.bf16.mxu0 %v1390_v2  ;;  %1005 = vmatprep.mubr.bf16.mxu1 %v1390_v2  ;;  %v1717_v2 = vrot.slane %v448_v10, %v456_v14 }
  0x9f   : > { %813 = vmatmul.mubr.bf16.gmra.mrb[60].mxu0 %v1658_v29  ;;  %1006 = vmatmul.mubr.bf16.gmra.mrb[60].mxu1 %v1658_v29 }
  0xfa   : > { %v664_v20 = vpop.f32.mrb[0].mxu0  ;;  %v857_v21 = vpop.f32.mrb[0].mxu1 }
  0xfb   : > { %v665_v22 = vadd.f32 %v664_v20, %v1713_v16  ;;  %v858_v24 = vadd.f32 %v857_v21, %v1715_v17  ;;  %v666_v25 = vpop.f32.mrb[1].mxu0  ;;  %v859_v26 = vpop.f32.mrb[1].mxu1 }
  0xfc   : > { %v667_v30 = vadd.f32 %v666_v25, %v1717_v2  ;;  %v860_v31 = vadd.f32 %v859_v26, %v1719_v19  ;;  %v668_v32 = vpop.f32.mrb[2].mxu0  ;;  %v861_v34 = vpop.f32.mrb[2].mxu1 }
  0xfd   : > { %1016 = vst [vmem:[%s1724_s28] sm:$0xff] %v665_v22  ;;  %1018 = vst [vmem:[%s1724_s28 + $0x10] sm:$0xff] %v858_v24  ;;  %v669_v35 = vadd.f32 %v668_v32, %v1713_v16  ;;  %v862_v36 = vadd.f32 %v861_v34, %v1715_v17  ;;  %v670_v37 = vpop.f32.mrb[3].mxu0  ;;  %v863_v39 = vpop.f32.mrb[3].mxu1 }
  0xfe   : > { %1017 = vst [vmem:[%s1724_s28 + $0x8] sm:$0xff] %v667_v30  ;;  %1019 = vst [vmem:[%s1724_s28 + $0x18] sm:$0xff] %v860_v31  ;;  %v671_v40 = vadd.f32 %v670_v37, %v1717_v2  ;;  %v864_v41 = vadd.f32 %v863_v39, %v1719_v19 }
  0xff   : > { %1020 = vst [vmem:[%s1724_s28 + $0x20] sm:$0xff] %v669_v35  ;;  %1022 = vst [vmem:[%s1724_s28 + $0x30] sm:$0xff] %v862_v36 }
 0x100   : > { %1021 = vst [vmem:[%s1724_s28 + $0x28] sm:$0xff] %v671_v40  ;;  %1023 = vst [vmem:[%s1724_s28 + $0x38] sm:$0xff] %v864_v41 }
 0x102   : > { %v674_v23 = vpop.f32.mrb[4].mxu0  ;;  %v867_v42 = vpop.f32.mrb[4].mxu1 }
 0x103   : > { %v675_v43 = vadd.f32 %v674_v23, %v1713_v16  ;;  %v868_v44 = vadd.f32 %v867_v42, %v1715_v17  ;;  %v676_v45 = vpop.f32.mrb[5].mxu0  ;;  %v869_v46 = vpop.f32.mrb[5].mxu1 }
 0x104   : > { %v677_v47 = vadd.f32 %v676_v45, %v1717_v2  ;;  %v870_v48 = vadd.f32 %v869_v46, %v1719_v19  ;;  %v678_v49 = vpop.f32.mrb[6].mxu0  ;;  %v871_v50 = vpop.f32.mrb[6].mxu1 }
 0x105   : > { %1024 = vst [vmem:[%s1724_s28 + $0x40] sm:$0xff] %v675_v43  ;;  %1026 = vst [vmem:[%s1724_s28 + $0x50] sm:$0xff] %v868_v44  ;;  %v679_v11 = vadd.f32 %v678_v49, %v1713_v16  ;;  %v872_v18 = vadd.f32 %v871_v50, %v1715_v17  ;;  %v680_v29 = vpop.f32.mrb[7].mxu0  ;;  %v873_v51 = vpop.f32.mrb[7].mxu1 }
 0x106   : > { %1025 = vst [vmem:[%s1724_s28 + $0x48] sm:$0xff] %v677_v47  ;;  %1027 = vst [vmem:[%s1724_s28 + $0x58] sm:$0xff] %v870_v48  ;;  %v681_v52 = vadd.f32 %v680_v29, %v1717_v2  ;;  %v874_v27 = vadd.f32 %v873_v51, %v1719_v19 }
 0x107   : > { %1028 = vst [vmem:[%s1724_s28 + $0x60] sm:$0xff] %v679_v11  ;;  %1030 = vst [vmem:[%s1724_s28 + $0x70] sm:$0xff] %v872_v18 }
 0x108   : > { %1029 = vst [vmem:[%s1724_s28 + $0x68] sm:$0xff] %v681_v52  ;;  %1031 = vst [vmem:[%s1724_s28 + $0x78] sm:$0xff] %v874_v27 }
 0x10a   : > { %v684_v38 = vpop.f32.mrb[8].mxu0  ;;  %v877_v53 = vpop.f32.mrb[8].mxu1 }
 0x10b   : > { %v685_v54 = vadd.f32 %v684_v38, %v1713_v16  ;;  %v878_v56 = vadd.f32 %v877_v53, %v1715_v17  ;;  %v686_v57 = vpop.f32.mrb[9].mxu0  ;;  %v879_v58 = vpop.f32.mrb[9].mxu1 }
 0x10c   : > { %v687_v59 = vadd.f32 %v686_v57, %v1717_v2  ;;  %v880_v61 = vadd.f32 %v879_v58, %v1719_v19  ;;  %v688_v62 = vpop.f32.mrb[10].mxu0  ;;  %v881_v63 = vpop.f32.mrb[10].mxu1 }
 0x10d   : > { %1032 = vst [vmem:[%s1724_s28 + $0x80] sm:$0xff] %v685_v54  ;;  %1034 = vst [vmem:[%s1724_s28 + $0x90] sm:$0xff] %v878_v56  ;;  %v689_v0 = vadd.f32 %v688_v62, %v1713_v16  ;;  %v882_v1 = vadd.f32 %v881_v63, %v1715_v17  ;;  %v690_v3 = vpop.f32.mrb[11].mxu0  ;;  %v883_v4 = vpop.f32.mrb[11].mxu1 }
 0x10e   : > { %1033 = vst [vmem:[%s1724_s28 + $0x88] sm:$0xff] %v687_v59  ;;  %1035 = vst [vmem:[%s1724_s28 + $0x98] sm:$0xff] %v880_v61  ;;  %v691_v5 = vadd.f32 %v690_v3, %v1717_v2  ;;  %v884_v6 = vadd.f32 %v883_v4, %v1719_v19 }
 0x10f   : > { %1036 = vst [vmem:[%s1724_s28 + $0xa0] sm:$0xff] %v689_v0  ;;  %1038 = vst [vmem:[%s1724_s28 + $0xb0] sm:$0xff] %v882_v1 }
 0x110   : > { %1037 = vst [vmem:[%s1724_s28 + $0xa8] sm:$0xff] %v691_v5  ;;  %1039 = vst [vmem:[%s1724_s28 + $0xb8] sm:$0xff] %v884_v6 }
 0x112   : > { %v694_v7 = vpop.f32.mrb[12].mxu0  ;;  %v887_v8 = vpop.f32.mrb[12].mxu1 }
 0x113   : > { %v695_v9 = vadd.f32 %v694_v7, %v1713_v16  ;;  %v888_v12 = vadd.f32 %v887_v8, %v1715_v17  ;;  %v696_v13 = vpop.f32.mrb[13].mxu0  ;;  %v889_v28 = vpop.f32.mrb[13].mxu1 }
 0x114   : > { %v697_v33 = vadd.f32 %v696_v13, %v1717_v2  ;;  %v890_v55 = vadd.f32 %v889_v28, %v1719_v19  ;;  %v698_v60 = vpop.f32.mrb[14].mxu0  ;;  %v891_v10 = vpop.f32.mrb[14].mxu1 }
 0x115   : > { %1040 = vst [vmem:[%s1724_s28 + $0xc0] sm:$0xff] %v695_v9  ;;  %1042 = vst [vmem:[%s1724_s28 + $0xd0] sm:$0xff] %v888_v12  ;;  %v699_v14 = vadd.f32 %v698_v60, %v1713_v16  ;;  %v892_v15 = vadd.f32 %v891_v10, %v1715_v17  ;;  %v700_v20 = vpop.f32.mrb[15].mxu0  ;;  %v893_v21 = vpop.f32.mrb[15].mxu1 }
 0x116   : > { %1041 = vst [vmem:[%s1724_s28 + $0xc8] sm:$0xff] %v697_v33  ;;  %1043 = vst [vmem:[%s1724_s28 + $0xd8] sm:$0xff] %v890_v55  ;;  %v701_v22 = vadd.f32 %v700_v20, %v1717_v2  ;;  %v894_v24 = vadd.f32 %v893_v21, %v1719_v19 }
 0x117   : > { %1044 = vst [vmem:[%s1724_s28 + $0xe0] sm:$0xff] %v699_v14  ;;  %1046 = vst [vmem:[%s1724_s28 + $0xf0] sm:$0xff] %v892_v15 }
 0x118   : > { %1045 = vst [vmem:[%s1724_s28 + $0xe8] sm:$0xff] %v701_v22  ;;  %1047 = vst [vmem:[%s1724_s28 + $0xf8] sm:$0xff] %v894_v24 }
 0x11a   : > { %v704_v25 = vpop.f32.mrb[16].mxu0  ;;  %v897_v26 = vpop.f32.mrb[16].mxu1 }
 0x11b   : > { %v705_v30 = vadd.f32 %v704_v25, %v1713_v16  ;;  %v898_v31 = vadd.f32 %v897_v26, %v1715_v17  ;;  %v706_v32 = vpop.f32.mrb[17].mxu0  ;;  %v899_v34 = vpop.f32.mrb[17].mxu1 }
 0x11c   : > { %v707_v35 = vadd.f32 %v706_v32, %v1717_v2  ;;  %v900_v36 = vadd.f32 %v899_v34, %v1719_v19  ;;  %v708_v37 = vpop.f32.mrb[18].mxu0  ;;  %v901_v39 = vpop.f32.mrb[18].mxu1 }
 0x11d   : > { %1048 = vst [vmem:[%s1724_s28 + $0x100] sm:$0xff] %v705_v30  ;;  %1050 = vst [vmem:[%s1724_s28 + $0x110] sm:$0xff] %v898_v31  ;;  %v709_v40 = vadd.f32 %v708_v37, %v1713_v16  ;;  %v902_v41 = vadd.f32 %v901_v39, %v1715_v17  ;;  %v710_v23 = vpop.f32.mrb[19].mxu0  ;;  %v903_v42 = vpop.f32.mrb[19].mxu1 }
 0x11e   : > { %1049 = vst [vmem:[%s1724_s28 + $0x108] sm:$0xff] %v707_v35  ;;  %1051 = vst [vmem:[%s1724_s28 + $0x118] sm:$0xff] %v900_v36  ;;  %v711_v43 = vadd.f32 %v710_v23, %v1717_v2  ;;  %v904_v44 = vadd.f32 %v903_v42, %v1719_v19 }
 0x11f   : > { %1052 = vst [vmem:[%s1724_s28 + $0x120] sm:$0xff] %v709_v40  ;;  %1054 = vst [vmem:[%s1724_s28 + $0x130] sm:$0xff] %v902_v41 }
 0x120   : > { %1053 = vst [vmem:[%s1724_s28 + $0x128] sm:$0xff] %v711_v43  ;;  %1055 = vst [vmem:[%s1724_s28 + $0x138] sm:$0xff] %v904_v44 }
 0x122   : > { %v714_v45 = vpop.f32.mrb[20].mxu0  ;;  %v907_v46 = vpop.f32.mrb[20].mxu1 }
 0x123   : > { %v715_v47 = vadd.f32 %v714_v45, %v1713_v16  ;;  %v908_v48 = vadd.f32 %v907_v46, %v1715_v17  ;;  %v716_v49 = vpop.f32.mrb[21].mxu0  ;;  %v909_v50 = vpop.f32.mrb[21].mxu1 }
 0x124   : > { %v717_v11 = vadd.f32 %v716_v49, %v1717_v2  ;;  %v910_v18 = vadd.f32 %v909_v50, %v1719_v19  ;;  %v718_v29 = vpop.f32.mrb[22].mxu0  ;;  %v911_v51 = vpop.f32.mrb[22].mxu1 }
 0x125   : > { %1056 = vst [vmem:[%s1724_s28 + $0x140] sm:$0xff] %v715_v47  ;;  %1058 = vst [vmem:[%s1724_s28 + $0x150] sm:$0xff] %v908_v48  ;;  %v719_v52 = vadd.f32 %v718_v29, %v1713_v16  ;;  %v912_v27 = vadd.f32 %v911_v51, %v1715_v17  ;;  %v720_v38 = vpop.f32.mrb[23].mxu0  ;;  %v913_v53 = vpop.f32.mrb[23].mxu1 }
 0x126   : > { %1057 = vst [vmem:[%s1724_s28 + $0x148] sm:$0xff] %v717_v11  ;;  %1059 = vst [vmem:[%s1724_s28 + $0x158] sm:$0xff] %v910_v18  ;;  %v721_v54 = vadd.f32 %v720_v38, %v1717_v2  ;;  %v914_v56 = vadd.f32 %v913_v53, %v1719_v19 }
 0x127   : > { %1060 = vst [vmem:[%s1724_s28 + $0x160] sm:$0xff] %v719_v52  ;;  %1062 = vst [vmem:[%s1724_s28 + $0x170] sm:$0xff] %v912_v27 }
 0x128   : > { %1061 = vst [vmem:[%s1724_s28 + $0x168] sm:$0xff] %v721_v54  ;;  %1063 = vst [vmem:[%s1724_s28 + $0x178] sm:$0xff] %v914_v56 }
 0x12a   : > { %v724_v57 = vpop.f32.mrb[24].mxu0  ;;  %v917_v58 = vpop.f32.mrb[24].mxu1 }
 0x12b   : > { %v725_v59 = vadd.f32 %v724_v57, %v1713_v16  ;;  %v918_v61 = vadd.f32 %v917_v58, %v1715_v17  ;;  %v726_v62 = vpop.f32.mrb[25].mxu0  ;;  %v919_v63 = vpop.f32.mrb[25].mxu1 }
 0x12c   : > { %v727_v0 = vadd.f32 %v726_v62, %v1717_v2  ;;  %v920_v1 = vadd.f32 %v919_v63, %v1719_v19  ;;  %v728_v3 = vpop.f32.mrb[26].mxu0  ;;  %v921_v4 = vpop.f32.mrb[26].mxu1 }
 0x12d   : > { %1064 = vst [vmem:[%s1724_s28 + $0x180] sm:$0xff] %v725_v59  ;;  %1066 = vst [vmem:[%s1724_s28 + $0x190] sm:$0xff] %v918_v61  ;;  %v729_v5 = vadd.f32 %v728_v3, %v1713_v16  ;;  %v922_v6 = vadd.f32 %v921_v4, %v1715_v17  ;;  %v730_v7 = vpop.f32.mrb[27].mxu0  ;;  %v923_v8 = vpop.f32.mrb[27].mxu1 }
 0x12e   : > { %1065 = vst [vmem:[%s1724_s28 + $0x188] sm:$0xff] %v727_v0  ;;  %1067 = vst [vmem:[%s1724_s28 + $0x198] sm:$0xff] %v920_v1  ;;  %v731_v9 = vadd.f32 %v730_v7, %v1717_v2  ;;  %v924_v12 = vadd.f32 %v923_v8, %v1719_v19 }
 0x12f   : > { %1068 = vst [vmem:[%s1724_s28 + $0x1a0] sm:$0xff] %v729_v5  ;;  %1070 = vst [vmem:[%s1724_s28 + $0x1b0] sm:$0xff] %v922_v6 }
 0x130   : > { %1069 = vst [vmem:[%s1724_s28 + $0x1a8] sm:$0xff] %v731_v9  ;;  %1071 = vst [vmem:[%s1724_s28 + $0x1b8] sm:$0xff] %v924_v12 }
 0x132   : > { %v734_v13 = vpop.f32.mrb[28].mxu0  ;;  %v927_v28 = vpop.f32.mrb[28].mxu1 }
 0x133   : > { %v735_v33 = vadd.f32 %v734_v13, %v1713_v16  ;;  %v928_v55 = vadd.f32 %v927_v28, %v1715_v17  ;;  %v736_v60 = vpop.f32.mrb[29].mxu0  ;;  %v929_v10 = vpop.f32.mrb[29].mxu1 }
 0x134   : > { %v737_v14 = vadd.f32 %v736_v60, %v1717_v2  ;;  %v930_v15 = vadd.f32 %v929_v10, %v1719_v19  ;;  %v738_v20 = vpop.f32.mrb[30].mxu0  ;;  %v931_v21 = vpop.f32.mrb[30].mxu1 }
 0x135   : > { %1072 = vst [vmem:[%s1724_s28 + $0x1c0] sm:$0xff] %v735_v33  ;;  %1074 = vst [vmem:[%s1724_s28 + $0x1d0] sm:$0xff] %v928_v55  ;;  %v739_v22 = vadd.f32 %v738_v20, %v1713_v16  ;;  %v932_v24 = vadd.f32 %v931_v21, %v1715_v17  ;;  %v740_v25 = vpop.f32.mrb[31].mxu0  ;;  %v933_v26 = vpop.f32.mrb[31].mxu1 }
 0x136   : > { %1073 = vst [vmem:[%s1724_s28 + $0x1c8] sm:$0xff] %v737_v14  ;;  %1075 = vst [vmem:[%s1724_s28 + $0x1d8] sm:$0xff] %v930_v15  ;;  %v741_v30 = vadd.f32 %v740_v25, %v1717_v2  ;;  %v934_v31 = vadd.f32 %v933_v26, %v1719_v19 }
 0x137   : > { %1076 = vst [vmem:[%s1724_s28 + $0x1e0] sm:$0xff] %v739_v22  ;;  %1078 = vst [vmem:[%s1724_s28 + $0x1f0] sm:$0xff] %v932_v24 }
 0x138   : > { %1077 = vst [vmem:[%s1724_s28 + $0x1e8] sm:$0xff] %v741_v30  ;;  %1079 = vst [vmem:[%s1724_s28 + $0x1f8] sm:$0xff] %v934_v31 }
 0x13a   : > { %v744_v32 = vpop.f32.mrb[32].mxu0  ;;  %v937_v34 = vpop.f32.mrb[32].mxu1 }
 0x13b   : > { %v745_v35 = vadd.f32 %v744_v32, %v1713_v16  ;;  %v938_v36 = vadd.f32 %v937_v34, %v1715_v17  ;;  %v746_v37 = vpop.f32.mrb[33].mxu0  ;;  %v939_v39 = vpop.f32.mrb[33].mxu1 }
 0x13c   : > { %v747_v40 = vadd.f32 %v746_v37, %v1717_v2  ;;  %v940_v41 = vadd.f32 %v939_v39, %v1719_v19  ;;  %v748_v23 = vpop.f32.mrb[34].mxu0  ;;  %v941_v42 = vpop.f32.mrb[34].mxu1 }
 0x13d   : > { %1080 = vst [vmem:[%s1724_s28 + $0x200] sm:$0xff] %v745_v35  ;;  %1082 = vst [vmem:[%s1724_s28 + $0x210] sm:$0xff] %v938_v36  ;;  %v749_v43 = vadd.f32 %v748_v23, %v1713_v16  ;;  %v942_v44 = vadd.f32 %v941_v42, %v1715_v17  ;;  %v750_v45 = vpop.f32.mrb[35].mxu0  ;;  %v943_v46 = vpop.f32.mrb[35].mxu1 }
 0x13e   : > { %1081 = vst [vmem:[%s1724_s28 + $0x208] sm:$0xff] %v747_v40  ;;  %1083 = vst [vmem:[%s1724_s28 + $0x218] sm:$0xff] %v940_v41  ;;  %v751_v47 = vadd.f32 %v750_v45, %v1717_v2  ;;  %v944_v48 = vadd.f32 %v943_v46, %v1719_v19 }
 0x13f   : > { %1084 = vst [vmem:[%s1724_s28 + $0x220] sm:$0xff] %v749_v43  ;;  %1086 = vst [vmem:[%s1724_s28 + $0x230] sm:$0xff] %v942_v44 }
 0x140   : > { %1085 = vst [vmem:[%s1724_s28 + $0x228] sm:$0xff] %v751_v47  ;;  %1087 = vst [vmem:[%s1724_s28 + $0x238] sm:$0xff] %v944_v48 }
 0x142   : > { %v754_v49 = vpop.f32.mrb[36].mxu0  ;;  %v947_v50 = vpop.f32.mrb[36].mxu1 }
 0x143   : > { %v755_v11 = vadd.f32 %v754_v49, %v1713_v16  ;;  %v948_v18 = vadd.f32 %v947_v50, %v1715_v17  ;;  %v756_v29 = vpop.f32.mrb[37].mxu0  ;;  %v949_v51 = vpop.f32.mrb[37].mxu1 }
 0x144   : > { %v757_v52 = vadd.f32 %v756_v29, %v1717_v2  ;;  %v950_v27 = vadd.f32 %v949_v51, %v1719_v19  ;;  %v758_v38 = vpop.f32.mrb[38].mxu0  ;;  %v951_v53 = vpop.f32.mrb[38].mxu1 }
 0x145   : > { %1088 = vst [vmem:[%s1724_s28 + $0x240] sm:$0xff] %v755_v11  ;;  %1090 = vst [vmem:[%s1724_s28 + $0x250] sm:$0xff] %v948_v18  ;;  %v759_v54 = vadd.f32 %v758_v38, %v1713_v16  ;;  %v952_v56 = vadd.f32 %v951_v53, %v1715_v17  ;;  %v760_v57 = vpop.f32.mrb[39].mxu0  ;;  %v953_v58 = vpop.f32.mrb[39].mxu1 }
 0x146   : > { %1089 = vst [vmem:[%s1724_s28 + $0x248] sm:$0xff] %v757_v52  ;;  %1091 = vst [vmem:[%s1724_s28 + $0x258] sm:$0xff] %v950_v27  ;;  %v761_v59 = vadd.f32 %v760_v57, %v1717_v2  ;;  %v954_v61 = vadd.f32 %v953_v58, %v1719_v19 }
 0x147   : > { %1092 = vst [vmem:[%s1724_s28 + $0x260] sm:$0xff] %v759_v54  ;;  %1094 = vst [vmem:[%s1724_s28 + $0x270] sm:$0xff] %v952_v56 }
 0x148   : > { %1093 = vst [vmem:[%s1724_s28 + $0x268] sm:$0xff] %v761_v59  ;;  %1095 = vst [vmem:[%s1724_s28 + $0x278] sm:$0xff] %v954_v61 }
 0x14a   : > { %v764_v62 = vpop.f32.mrb[40].mxu0  ;;  %v957_v63 = vpop.f32.mrb[40].mxu1 }
 0x14b   : > { %v765_v0 = vadd.f32 %v764_v62, %v1713_v16  ;;  %v958_v1 = vadd.f32 %v957_v63, %v1715_v17  ;;  %v766_v3 = vpop.f32.mrb[41].mxu0  ;;  %v959_v4 = vpop.f32.mrb[41].mxu1 }
 0x14c   : > { %v767_v5 = vadd.f32 %v766_v3, %v1717_v2  ;;  %v960_v6 = vadd.f32 %v959_v4, %v1719_v19  ;;  %v768_v7 = vpop.f32.mrb[42].mxu0  ;;  %v961_v8 = vpop.f32.mrb[42].mxu1 }
 0x14d   : > { %1096 = vst [vmem:[%s1724_s28 + $0x280] sm:$0xff] %v765_v0  ;;  %1098 = vst [vmem:[%s1724_s28 + $0x290] sm:$0xff] %v958_v1  ;;  %v769_v9 = vadd.f32 %v768_v7, %v1713_v16  ;;  %v962_v12 = vadd.f32 %v961_v8, %v1715_v17  ;;  %v770_v13 = vpop.f32.mrb[43].mxu0  ;;  %v963_v28 = vpop.f32.mrb[43].mxu1 }
 0x14e   : > { %1097 = vst [vmem:[%s1724_s28 + $0x288] sm:$0xff] %v767_v5  ;;  %1099 = vst [vmem:[%s1724_s28 + $0x298] sm:$0xff] %v960_v6  ;;  %v771_v33 = vadd.f32 %v770_v13, %v1717_v2  ;;  %v964_v55 = vadd.f32 %v963_v28, %v1719_v19 }
 0x14f   : > { %1100 = vst [vmem:[%s1724_s28 + $0x2a0] sm:$0xff] %v769_v9  ;;  %1102 = vst [vmem:[%s1724_s28 + $0x2b0] sm:$0xff] %v962_v12 }
 0x150   : > { %1101 = vst [vmem:[%s1724_s28 + $0x2a8] sm:$0xff] %v771_v33  ;;  %1103 = vst [vmem:[%s1724_s28 + $0x2b8] sm:$0xff] %v964_v55 }
 0x152   : > { %v774_v60 = vpop.f32.mrb[44].mxu0  ;;  %v967_v10 = vpop.f32.mrb[44].mxu1 }
 0x153   : > { %v775_v14 = vadd.f32 %v774_v60, %v1713_v16  ;;  %v968_v15 = vadd.f32 %v967_v10, %v1715_v17  ;;  %v776_v20 = vpop.f32.mrb[45].mxu0  ;;  %v969_v21 = vpop.f32.mrb[45].mxu1 }
 0x154   : > { %v777_v22 = vadd.f32 %v776_v20, %v1717_v2  ;;  %v970_v24 = vadd.f32 %v969_v21, %v1719_v19  ;;  %v778_v25 = vpop.f32.mrb[46].mxu0  ;;  %v971_v26 = vpop.f32.mrb[46].mxu1 }
 0x155   : > { %1104 = vst [vmem:[%s1724_s28 + $0x2c0] sm:$0xff] %v775_v14  ;;  %1106 = vst [vmem:[%s1724_s28 + $0x2d0] sm:$0xff] %v968_v15  ;;  %v779_v30 = vadd.f32 %v778_v25, %v1713_v16  ;;  %v972_v31 = vadd.f32 %v971_v26, %v1715_v17  ;;  %v780_v32 = vpop.f32.mrb[47].mxu0  ;;  %v973_v34 = vpop.f32.mrb[47].mxu1 }
 0x156   : > { %1105 = vst [vmem:[%s1724_s28 + $0x2c8] sm:$0xff] %v777_v22  ;;  %1107 = vst [vmem:[%s1724_s28 + $0x2d8] sm:$0xff] %v970_v24  ;;  %v781_v35 = vadd.f32 %v780_v32, %v1717_v2  ;;  %v974_v36 = vadd.f32 %v973_v34, %v1719_v19 }
 0x157   : > { %1108 = vst [vmem:[%s1724_s28 + $0x2e0] sm:$0xff] %v779_v30  ;;  %1110 = vst [vmem:[%s1724_s28 + $0x2f0] sm:$0xff] %v972_v31 }
 0x158   : > { %1109 = vst [vmem:[%s1724_s28 + $0x2e8] sm:$0xff] %v781_v35  ;;  %1111 = vst [vmem:[%s1724_s28 + $0x2f8] sm:$0xff] %v974_v36 }
 0x15a   : > { %v784_v37 = vpop.f32.mrb[48].mxu0  ;;  %v977_v39 = vpop.f32.mrb[48].mxu1 }
 0x15b   : > { %v785_v40 = vadd.f32 %v784_v37, %v1713_v16  ;;  %v978_v41 = vadd.f32 %v977_v39, %v1715_v17  ;;  %v786_v23 = vpop.f32.mrb[49].mxu0  ;;  %v979_v42 = vpop.f32.mrb[49].mxu1 }
 0x15c   : > { %v787_v43 = vadd.f32 %v786_v23, %v1717_v2  ;;  %v980_v44 = vadd.f32 %v979_v42, %v1719_v19  ;;  %v788_v45 = vpop.f32.mrb[50].mxu0  ;;  %v981_v46 = vpop.f32.mrb[50].mxu1 }
 0x15d   : > { %1112 = vst [vmem:[%s1724_s28 + $0x300] sm:$0xff] %v785_v40  ;;  %1114 = vst [vmem:[%s1724_s28 + $0x310] sm:$0xff] %v978_v41  ;;  %v789_v47 = vadd.f32 %v788_v45, %v1713_v16  ;;  %v982_v48 = vadd.f32 %v981_v46, %v1715_v17  ;;  %v790_v49 = vpop.f32.mrb[51].mxu0  ;;  %v983_v50 = vpop.f32.mrb[51].mxu1 }
 0x15e   : > { %1113 = vst [vmem:[%s1724_s28 + $0x308] sm:$0xff] %v787_v43  ;;  %1115 = vst [vmem:[%s1724_s28 + $0x318] sm:$0xff] %v980_v44  ;;  %v791_v11 = vadd.f32 %v790_v49, %v1717_v2  ;;  %v984_v18 = vadd.f32 %v983_v50, %v1719_v19 }
 0x15f   : > { %1116 = vst [vmem:[%s1724_s28 + $0x320] sm:$0xff] %v789_v47  ;;  %1118 = vst [vmem:[%s1724_s28 + $0x330] sm:$0xff] %v982_v48 }
 0x160   : > { %1117 = vst [vmem:[%s1724_s28 + $0x328] sm:$0xff] %v791_v11  ;;  %1119 = vst [vmem:[%s1724_s28 + $0x338] sm:$0xff] %v984_v18 }
 0x162   : > { %v794_v29 = vpop.f32.mrb[52].mxu0  ;;  %v987_v51 = vpop.f32.mrb[52].mxu1 }
 0x163   : > { %v795_v52 = vadd.f32 %v794_v29, %v1713_v16  ;;  %v988_v27 = vadd.f32 %v987_v51, %v1715_v17  ;;  %v796_v38 = vpop.f32.mrb[53].mxu0  ;;  %v989_v53 = vpop.f32.mrb[53].mxu1 }
 0x164   : > { %v797_v54 = vadd.f32 %v796_v38, %v1717_v2  ;;  %v990_v56 = vadd.f32 %v989_v53, %v1719_v19  ;;  %v798_v57 = vpop.f32.mrb[54].mxu0  ;;  %v991_v58 = vpop.f32.mrb[54].mxu1 }
 0x165   : > { %1120 = vst [vmem:[%s1724_s28 + $0x340] sm:$0xff] %v795_v52  ;;  %1122 = vst [vmem:[%s1724_s28 + $0x350] sm:$0xff] %v988_v27  ;;  %v799_v59 = vadd.f32 %v798_v57, %v1713_v16  ;;  %v992_v61 = vadd.f32 %v991_v58, %v1715_v17  ;;  %v800_v62 = vpop.f32.mrb[55].mxu0  ;;  %v993_v63 = vpop.f32.mrb[55].mxu1 }
 0x166   : > { %1121 = vst [vmem:[%s1724_s28 + $0x348] sm:$0xff] %v797_v54  ;;  %1123 = vst [vmem:[%s1724_s28 + $0x358] sm:$0xff] %v990_v56  ;;  %v801_v0 = vadd.f32 %v800_v62, %v1717_v2  ;;  %v994_v1 = vadd.f32 %v993_v63, %v1719_v19 }
 0x167   : > { %1124 = vst [vmem:[%s1724_s28 + $0x360] sm:$0xff] %v799_v59  ;;  %1126 = vst [vmem:[%s1724_s28 + $0x370] sm:$0xff] %v992_v61 }
 0x168   : > { %1125 = vst [vmem:[%s1724_s28 + $0x368] sm:$0xff] %v801_v0  ;;  %1127 = vst [vmem:[%s1724_s28 + $0x378] sm:$0xff] %v994_v1 }
 0x16a   : > { %v804_v3 = vpop.f32.mrb[56].mxu0  ;;  %v997_v4 = vpop.f32.mrb[56].mxu1 }
 0x16b   : > { %v805_v5 = vadd.f32 %v804_v3, %v1713_v16  ;;  %v998_v6 = vadd.f32 %v997_v4, %v1715_v17  ;;  %v806_v7 = vpop.f32.mrb[57].mxu0  ;;  %v999_v8 = vpop.f32.mrb[57].mxu1 }
 0x16c   : > { %v807_v9 = vadd.f32 %v806_v7, %v1717_v2  ;;  %v1000_v12 = vadd.f32 %v999_v8, %v1719_v19  ;;  %v808_v13 = vpop.f32.mrb[58].mxu0  ;;  %v1001_v28 = vpop.f32.mrb[58].mxu1 }
 0x16d   : > { %1128 = vst [vmem:[%s1724_s28 + $0x380] sm:$0xff] %v805_v5  ;;  %1130 = vst [vmem:[%s1724_s28 + $0x390] sm:$0xff] %v998_v6  ;;  %v809_v33 = vadd.f32 %v808_v13, %v1713_v16  ;;  %v1002_v55 = vadd.f32 %v1001_v28, %v1715_v17  ;;  %v810_v60 = vpop.f32.mrb[59].mxu0  ;;  %v1003_v10 = vpop.f32.mrb[59].mxu1 }
 0x16e   : > { %1129 = vst [vmem:[%s1724_s28 + $0x388] sm:$0xff] %v807_v9  ;;  %1131 = vst [vmem:[%s1724_s28 + $0x398] sm:$0xff] %v1000_v12  ;;  %v811_v14 = vadd.f32 %v810_v60, %v1717_v2  ;;  %v1004_v15 = vadd.f32 %v1003_v10, %v1719_v19 }
 0x16f   : > { %1132 = vst [vmem:[%s1724_s28 + $0x3a0] sm:$0xff] %v809_v33  ;;  %1134 = vst [vmem:[%s1724_s28 + $0x3b0] sm:$0xff] %v1002_v55 }
 0x170   : > { %1133 = vst [vmem:[%s1724_s28 + $0x3a8] sm:$0xff] %v811_v14  ;;  %1135 = vst [vmem:[%s1724_s28 + $0x3b8] sm:$0xff] %v1004_v15 }
 0x172   : > { %v814_v20 = vpop.f32.mrb[60].mxu0  ;;  %v1007_v21 = vpop.f32.mrb[60].mxu1 }
 0x173   : > { %v815_v22 = vadd.f32 %v814_v20, %v1713_v16  ;;  %v1008_v24 = vadd.f32 %v1007_v21, %v1715_v17  ;;  %v816_v25 = vpop.f32.mrb[61].mxu0  ;;  %v1009_v26 = vpop.f32.mrb[61].mxu1 }
 0x174   : > { %v817_v30 = vadd.f32 %v816_v25, %v1717_v2  ;;  %v1010_v31 = vadd.f32 %v1009_v26, %v1719_v19  ;;  %v818_v32 = vpop.f32.mrb[62].mxu0  ;;  %v1011_v34 = vpop.f32.mrb[62].mxu1 }
 0x175   : > { %1136 = vst [vmem:[%s1724_s28 + $0x3c0] sm:$0xff] %v815_v22  ;;  %1138 = vst [vmem:[%s1724_s28 + $0x3d0] sm:$0xff] %v1008_v24  ;;  %v819_v35 = vadd.f32 %v818_v32, %v1713_v16  ;;  %v1012_v36 = vadd.f32 %v1011_v34, %v1715_v17  ;;  %v820_v37 = vpop.f32.mrb[63].mxu0  ;;  %v1013_v39 = vpop.f32.mrb[63].mxu1 }
 0x176   : > { %1137 = vst [vmem:[%s1724_s28 + $0x3c8] sm:$0xff] %v817_v30  ;;  %1139 = vst [vmem:[%s1724_s28 + $0x3d8] sm:$0xff] %v1010_v31  ;;  %v821_v40 = vadd.f32 %v820_v37, %v1717_v2  ;;  %v1014_v41 = vadd.f32 %v1013_v39, %v1719_v19 }
 0x177   : > { %1140 = vst [vmem:[%s1724_s28 + $0x3e0] sm:$0xff] %v819_v35  ;;  %1142 = vst [vmem:[%s1724_s28 + $0x3f0] sm:$0xff] %v1012_v36 }
 0x178   : > { %1141 = vst [vmem:[%s1724_s28 + $0x3e8] sm:$0xff] %v821_v40  ;;  %1143 = vst [vmem:[%s1724_s28 + $0x3f8] sm:$0xff] %v1014_v41 }
 0x179 PF: > { %s15_s18 = sadd.s32 1, %s1388_s18  }
 0x17a   : > { %p12_p4 = scmp.ge.s32.totalorder %s15_s18, 4  }
 0x17c   :  { %14 = sbr.rel (!%p12_p4) target bundleno = 1 (0x1), region = 70 }

// kernel: decoder_block_forward.3
= control target key start
LH: loop header
LB: loop body
LE: loop exit
PB: predicated region body
PF: predicated region fallthrough
CT: control target
= control target key end

     0   :  { %s4841_s18 = smov 0   ;;  %s5447_s0 = inlined_call_operand.vmem [shape: f32[2,16,16,128], index: 0, kind: input, shape index: {}]   ;;  %s5448_s1 = inlined_call_operand.vmem [shape: bf16[9,128,128], index: 1, kind: input, shape index: {}]   ;;  %s5449_s2 = inlined_call_operand.vmem [shape: f32[1,128], index: 2, kind: input, shape index: {}]   ;;  %s5450_s3 = inlined_call_operand.vmem [shape: f32[1,128], index: 3, kind: input, shape index: {}]   ;;  %s5451_s4 = inlined_call_operand.vmem [shape: bf16[2,16,16,128], index: 4, kind: output, shape index: {0}]   ;;  %s5452_s5 = inlined_call_operand.vmem [shape: f32[2,2,128], index: 5, kind: output, shape index: {1}]  }
   0x1 LB: > { %s3418_s2 = sadd.s32 4294967295, %s4807_s18   ;;  %p3422_p0 = scmp.ge.s32.totalorder %s4807_s18, 1  ;;  %s4807_s18 = sphi %s4841_s18, %s16_s18  }
   0x2   : > { %p190_p1 = scmp.lt.s32.totalorder %s4807_s18, 3 }
   0x4   : > { %p191_p2 = pnand %p3422_p0, %p190_p1 }
   0x5   : > { %v4720_v0 = vld [vmem:[%s5448_s1 + $0x40] sm:$0xff] (!%p191_p2)   ;;  %v4809_v2 = vmov (!%p191_p2), 0.0   ;;  %v4722_v3 = vld [vmem:[%s5448_s1 + $0x48] sm:$0xff] (!%p191_p2)   ;;  %p222_p3 = scmp.lt.s32.totalorder (!%p191_p2), %s3418_s2, 1  ;;  %v4724_v5 = vld [vmem:[%s5448_s1 + $0x50] sm:$0xff] (!%p191_p2)   ;;  %v4810_v7 = vmov (!%p191_p2), 0.0|0.0  }
   0x6   : > { %194 = sbr.rel (%p191_p2) target bundleno = 557 (0x22d), region = 36  ;;  %v4721_v1 = vld [vmem:[%s5448_s1 + $0x100] sm:$0xff] (!%p191_p2)   ;;  %270 = vst [vmem:[#allocation2 + $0x8] sm:$0xff] (!%p191_p2), %v4809_v2  ;;  %271 = vst [vmem:[#allocation2 + $0x10] sm:$0xff] (!%p191_p2), %v4809_v2  ;;  %4007 = vmatprep.subr.bf16.mxu1 (!%p191_p2), %v4720_v0  ;;  %v4723_v4 = vld [vmem:[%s5448_s1 + $0x108] sm:$0xff] (!%p191_p2)   ;;  %4023 = vmatprep.mubr.bf16.mxu1 (!%p191_p2), %v4810_v7 }
   0x7   : > { %269 = vst [vmem:[#allocation2] sm:$0xff] (!%p191_p2), %v4809_v2  ;;  %272 = vst [vmem:[#allocation2 + $0x18] sm:$0x1] (!%p191_p2), %v4809_v2  ;;  %4199 = vmatprep.subr.bf16.mxu0 (!%p191_p2), %v4721_v1  ;;  %4008 = vmatpush3.bf16.msra.mxu1 (!%p191_p2), %v4720_v0  ;;  %v4725_v6 = vld [vmem:[%s5448_s1 + $0x110] sm:$0xff] (!%p191_p2)   ;;  %v4726_v8 = vld [vmem:[%s5448_s1 + $0x58] sm:$0xff] (!%p191_p2)  }
   0x8   : > { %273 = vst [vmem:[#allocation2 + $0x20] sm:$0xff] (!%p191_p2), %v4809_v2  ;;  %276 = vst [vmem:[#allocation2 + $0x38] sm:$0x1] (!%p191_p2), %v4809_v2  ;;  %4200 = vmatpush3.bf16.msra.mxu0 (!%p191_p2), %v4721_v1  ;;  %4009 = vmatprep.subr.bf16.mxu1 (!%p191_p2), %v4722_v3  ;;  %v4727_v9 = vld [vmem:[%s5448_s1 + $0x118] sm:$0xff] (!%p191_p2)   ;;  %v4728_v10 = vld [vmem:[%s5448_s1 + $0x60] sm:$0xff] (!%p191_p2)  }
   0x9   : > { %277 = vst [vmem:[#allocation2 + $0x40] sm:$0xff] (!%p191_p2), %v4809_v2  ;;  %280 = vst [vmem:[#allocation2 + $0x58] sm:$0x1] (!%p191_p2), %v4809_v2  ;;  %4201 = vmatprep.subr.bf16.mxu0 (!%p191_p2), %v4723_v4  ;;  %v4729_v11 = vld [vmem:[%s5448_s1 + $0x120] sm:$0xff] (!%p191_p2)   ;;  %v4730_v12 = vld [vmem:[%s5448_s1 + $0x68] sm:$0xff] (!%p191_p2)  }
   0xa   : > { %281 = vst [vmem:[#allocation2 + $0x60] sm:$0xff] (!%p191_p2), %v4809_v2  ;;  %284 = vst [vmem:[#allocation2 + $0x78] sm:$0x1] (!%p191_p2), %v4809_v2  ;;  %v4731_v15 = vld [vmem:[%s5448_s1 + $0x128] sm:$0xff] (!%p191_p2)   ;;  %v4732_v19 = vld [vmem:[%s5448_s1 + $0x70] sm:$0xff] (!%p191_p2)  }
   0xb   : > { %285 = vst [vmem:[#allocation2 + $0x80] sm:$0xff] (!%p191_p2), %v4809_v2  ;;  %288 = vst [vmem:[#allocation2 + $0x98] sm:$0x1] (!%p191_p2), %v4809_v2  ;;  %4010 = vmatpush3.bf16.msra.mxu1 (!%p191_p2), %v4722_v3  ;;  %v4733_v22 = vld [vmem:[%s5448_s1 + $0x130] sm:$0xff] (!%p191_p2)   ;;  %v4734_v25 = vld [vmem:[%s5448_s1 + $0x78] sm:$0xff] (!%p191_p2)  }
   0xc   : > { %289 = vst [vmem:[#allocation2 + $0xa0] sm:$0xff] (!%p191_p2), %v4809_v2  ;;  %292 = vst [vmem:[#allocation2 + $0xb8] sm:$0x1] (!%p191_p2), %v4809_v2  ;;  %4202 = vmatpush3.bf16.msra.mxu0 (!%p191_p2), %v4723_v4  ;;  %4011 = vmatprep.subr.bf16.mxu1 (!%p191_p2), %v4724_v5  ;;  %v4735_v26 = vld [vmem:[%s5448_s1 + $0x138] sm:$0xff] (!%p191_p2)   ;;  %v4736_v31 = vld [vmem:[%s5448_s1] sm:$0xff] (!%p191_p2)  }
   0xd   : > { %293 = vst [vmem:[#allocation2 + $0xc0] sm:$0xff] %v4809_v2  ;;  %296 = vst [vmem:[#allocation2 + $0xd8] sm:$0x1] %v4809_v2  ;;  %s5454_s2 = smov (!%p222_p3, %s3418_s2), 1  ;;  %4203 = vmatprep.subr.bf16.mxu0 %v4725_v6  ;;  %v4737_v32 = vld [vmem:[%s5448_s1 + $0x140] sm:$0xff]   ;;  %v4738_v38 = vld [vmem:[%s5448_s1 + $0x148] sm:$0xff]  }
   0xe   : > { %297 = vst [vmem:[#allocation2 + $0xe0] sm:$0xff] %v4809_v2  ;;  %300 = vst [vmem:[#allocation2 + $0xf8] sm:$0x1] %v4809_v2  ;;  %s3662_s9 = sshll.u32 %s5454_s2, 8  ;;  %v4739_v40 = vld [vmem:[%s5448_s1 + $0x8] sm:$0xff]   ;;  %v4742_v43 = vld [vmem:[%s5448_s1 + $0x10] sm:$0xff]  }
   0xf   : > { %301 = vst [vmem:[#allocation2 + $0x100] sm:$0xff] %v4809_v2  ;;  %304 = vst [vmem:[#allocation2 + $0x118] sm:$0x1] %v4809_v2  ;;  %4012 = vmatpush3.bf16.msra.mxu1 %v4724_v5  ;;  %s4889_s16 = scalar_lea.vmem %s5447_s0, %s3662_s9  ;;  %v4740_v44 = vld [vmem:[%s5448_s1 + $0x150] sm:$0xff]   ;;  %v4741_v51 = vld [vmem:[%s5448_s1 + $0x158] sm:$0xff]   ;;  %s3663_s8 = sshll.u32 %s5454_s2, 7 }
  0x10   : > { %305 = vst [vmem:[#allocation2 + $0x120] sm:$0xff] %v4809_v2  ;;  %308 = vst [vmem:[#allocation2 + $0x138] sm:$0x1] %v4809_v2  ;;  %4204 = vmatpush3.bf16.msra.mxu0 %v4725_v6  ;;  %4013 = vmatprep.subr.bf16.mxu1 %v4726_v8  ;;  %v237_v13 = vld [vmem:[%s4889_s16] sm:$0xff]  ;;  %v238_v14 = vld [vmem:[%s4889_s16 + $0x8] sm:$0xff]  ;;  %s5418_s11 = scalar_lea.vmem %s5451_s4, %s3663_s8  ;;  %s3427_s12 = sshll.u32 %s5454_s2, 1 }
  0x11   : > { %309 = vst [vmem:[#allocation2 + $0x140] sm:$0xff] %v4809_v2  ;;  %312 = vst [vmem:[#allocation2 + $0x158] sm:$0x1] %v4809_v2  ;;  %4205 = vmatprep.subr.bf16.mxu0 %v4727_v9  ;;  %v1565_v16 = vpack.c.bf16 %v238_v14, %v237_v13  ;;  %v239_v17 = vld [vmem:[%s4889_s16 + $0x10] sm:$0xff]  ;;  %v240_v18 = vld [vmem:[%s4889_s16 + $0x18] sm:$0xff]  ;;  %s235_s15 = scalar_lea.vmem %s5452_s5, %s3427_s12 }
  0x12   : > { %313 = vst [vmem:[#allocation2 + $0x160] sm:$0xff] %v4809_v2  ;;  %316 = vst [vmem:[#allocation2 + $0x178] sm:$0x1] %v4809_v2  ;;  %v241_v20 = vld [vmem:[%s4889_s16 + $0x20] sm:$0xff]  ;;  %v242_v21 = vld [vmem:[%s4889_s16 + $0x28] sm:$0xff]  ;;  %v1566_v36 = vpack.c.bf16 %v240_v18, %v239_v17 }
  0x13   : > { %317 = vst [vmem:[#allocation2 + $0x180] sm:$0xff] %v4809_v2  ;;  %320 = vst [vmem:[#allocation2 + $0x198] sm:$0x1] %v4809_v2  ;;  %4014 = vmatpush3.bf16.msra.mxu1 %v4726_v8  ;;  %4215 = vmatprep.mubr.bf16.mxu0 %v1565_v16  ;;  %v243_v23 = vld [vmem:[%s4889_s16 + $0x30] sm:$0xff]  ;;  %v244_v24 = vld [vmem:[%s4889_s16 + $0x38] sm:$0xff]  ;;  %v1567_v39 = vpack.c.bf16 %v242_v21, %v241_v20 }
  0x14   : > { %321 = vst [vmem:[#allocation2 + $0x1a0] sm:$0xff] %v4809_v2  ;;  %324 = vst [vmem:[#allocation2 + $0x1b8] sm:$0x1] %v4809_v2  ;;  %4206 = vmatpush3.bf16.msra.mxu0 %v4727_v9  ;;  %4015 = vmatprep.subr.bf16.mxu1 %v4728_v10  ;;  %v245_v27 = vld [vmem:[%s4889_s16 + $0x40] sm:$0xff]  ;;  %v246_v28 = vld [vmem:[%s4889_s16 + $0x48] sm:$0xff]  ;;  %v1568_v48 = vpack.c.bf16 %v244_v24, %v243_v23 }
  0x15   : > { %325 = vst [vmem:[#allocation2 + $0x1c0] sm:$0xff] %v4809_v2  ;;  %328 = vst [vmem:[#allocation2 + $0x1d8] sm:$0x1] %v4809_v2  ;;  %4207 = vmatprep.subr.bf16.mxu0 %v4729_v11  ;;  %v4920_v29 = vld [vmem:[%s4889_s16 + $0x50] sm:$0xff]  ;;  %v4923_v30 = vld [vmem:[%s4889_s16 + $0x58] sm:$0xff]  ;;  %v1569_v50 = vpack.c.bf16 %v246_v28, %v245_v27 }
  0x16   : > { %329 = vst [vmem:[#allocation2 + $0x1e0] sm:$0xff] %v4809_v2  ;;  %332 = vst [vmem:[#allocation2 + $0x1f8] sm:$0x1] %v4809_v2  ;;  %v4934_v33 = vld [vmem:[%s4889_s16 + $0x60] sm:$0xff]  ;;  %v4937_v34 = vld [vmem:[%s4889_s16 + $0x68] sm:$0xff]  ;;  %v1570_v60 = vpack.c.bf16 %v4923_v30, %v4920_v29 }
  0x17   : > { %333 = vst [vmem:[#allocation2 + $0x200] sm:$0xff] %v4809_v2  ;;  %336 = vst [vmem:[#allocation2 + $0x218] sm:$0x1] %v4809_v2  ;;  %4016 = vmatpush3.bf16.msra.mxu1 %v4728_v10  ;;  %v4942_v35 = vld [vmem:[%s4889_s16 + $0x70] sm:$0xff]  ;;  %v4945_v37 = vld [vmem:[%s4889_s16 + $0x78] sm:$0xff]  ;;  %v1571_v62 = vpack.c.bf16 %v4937_v34, %v4934_v33 }
  0x18   : > { %337 = vst [vmem:[#allocation2 + $0x220] sm:$0xff] %v4809_v2  ;;  %338 = vst [vmem:[#allocation2 + $0x228] sm:$0xff] %v4809_v2  ;;  %4208 = vmatpush3.bf16.msra.mxu0 %v4729_v11  ;;  %4017 = vmatprep.subr.bf16.mxu1 %v4730_v12  ;;  %v4956_v41 = vld [vmem:[%s4889_s16 + $0x80] sm:$0xff]  ;;  %v4959_v42 = vld [vmem:[%s4889_s16 + $0x88] sm:$0xff]  ;;  %v1572_v7 = vpack.c.bf16 %v4945_v37, %v4942_v35 }
  0x19   : > { %339 = vst [vmem:[#allocation2 + $0x230] sm:$0xff] %v4809_v2  ;;  %340 = vst [vmem:[#allocation2 + $0x238] sm:$0x1] %v4809_v2  ;;  %4209 = vmatprep.subr.bf16.mxu0 %v4731_v15  ;;  %v4970_v45 = vld [vmem:[%s4889_s16 + $0x90] sm:$0xff]  ;;  %v4973_v46 = vld [vmem:[%s4889_s16 + $0x98] sm:$0xff] }
  0x1a   : > { %342 = vst [vmem:[#allocation2 + $0x28] sm:$0xff] %v237_v13  ;;  %343 = vst [vmem:[#allocation2 + $0x30] sm:$0xff] %v238_v14  ;;  %v4978_v47 = vld [vmem:[%s4889_s16 + $0xa0] sm:$0xff]  ;;  %v4981_v49 = vld [vmem:[%s4889_s16 + $0xa8] sm:$0xff] }
  0x1b   : > { %344 = vst [vmem:[#allocation2 + $0x48] sm:$0xff] %v239_v17  ;;  %345 = vst [vmem:[#allocation2 + $0x50] sm:$0xff] %v240_v18  ;;  %4018 = vmatpush3.bf16.msra.mxu1 %v4730_v12  ;;  %v4745_v52 = vld [vmem:[%s5448_s1 + $0x18] sm:$0xff]   ;;  %v4992_v53 = vld [vmem:[%s4889_s16 + $0xb0] sm:$0xff] }
  0x1c   : > { %346 = vst [vmem:[#allocation2 + $0x68] sm:$0xff] %v241_v20  ;;  %347 = vst [vmem:[#allocation2 + $0x70] sm:$0xff] %v242_v21  ;;  %4210 = vmatpush3.bf16.msra.mxu0 %v4731_v15  ;;  %4019 = vmatprep.subr.bf16.mxu1 %v4732_v19  ;;  %v4995_v54 = vld [vmem:[%s4889_s16 + $0xb8] sm:$0xff]  ;;  %v5000_v55 = vld [vmem:[%s4889_s16 + $0xc0] sm:$0xff] }
  0x1d   : > { %348 = vst [vmem:[#allocation2 + $0x88] sm:$0xff] %v243_v23  ;;  %349 = vst [vmem:[#allocation2 + $0x90] sm:$0xff] %v244_v24  ;;  %4211 = vmatprep.subr.bf16.mxu0 %v4733_v22  ;;  %v5003_v56 = vld [vmem:[%s4889_s16 + $0xc8] sm:$0xff]  ;;  %v4743_v57 = vld [vmem:[%s5448_s1 + $0x160] sm:$0xff]  }
  0x1e   : > { %350 = vst [vmem:[#allocation2 + $0xa8] sm:$0xff] %v245_v27  ;;  %351 = vst [vmem:[#allocation2 + $0xb0] sm:$0xff] %v246_v28  ;;  %v4748_v58 = vld [vmem:[%s5448_s1 + $0x20] sm:$0xff]   ;;  %v5014_v59 = vld [vmem:[%s4889_s16 + $0xd0] sm:$0xff] }
  0x1f   : > { %4020 = vmatpush3.bf16.msra.mxu1 %v4732_v19  ;;  %352 = vst [vmem:[#allocation2 + $0xc8] sm:$0xff] %v4920_v29  ;;  %353 = vst [vmem:[#allocation2 + $0xd0] sm:$0xff] %v4923_v30  ;;  %v5019_v61 = vld [vmem:[%s4889_s16 + $0xd8] sm:$0xff]  ;;  %v5026_v63 = vld [vmem:[%s4889_s16 + $0xe0] sm:$0xff]  ;;  %v480_v19 = vpack.c.bf16 %v4973_v46, %v4970_v45  ;;  %v481_v29 = vpack.c.bf16 %v4981_v49, %v4978_v47 }
  0x20   : > { %4212 = vmatpush3.bf16.msra.mxu0 %v4733_v22  ;;  %4021 = vmatprep.subr.bf16.mxu1 %v4734_v25  ;;  %354 = vst [vmem:[#allocation2 + $0xe8] sm:$0xff] %v4934_v33  ;;  %355 = vst [vmem:[#allocation2 + $0xf0] sm:$0xff] %v4937_v34  ;;  %v5029_v0 = vld [vmem:[%s4889_s16 + $0xe8] sm:$0xff]  ;;  %v4746_v3 = vld [vmem:[%s5448_s1 + $0x170] sm:$0xff]  }
  0x21   : > { %4213 = vmatprep.subr.bf16.mxu0 %v4735_v26  ;;  %356 = vst [vmem:[#allocation2 + $0x108] sm:$0xff] %v4942_v35  ;;  %357 = vst [vmem:[#allocation2 + $0x110] sm:$0xff] %v4945_v37  ;;  %v4744_v1 = vld [vmem:[%s5448_s1 + $0x168] sm:$0xff]   ;;  %v1840_v5 = vld [vmem:[#allocation2 + $0x31] sm:$0xff] }
  0x22   : > { %358 = vst [vmem:[#allocation2 + $0x128] sm:$0xff] %v4956_v41  ;;  %359 = vst [vmem:[#allocation2 + $0x130] sm:$0xff] %v4959_v42  ;;  %v4750_v2 = vld [vmem:[%s5448_s1 + $0x28] sm:$0xff]   ;;  %v4752_v6 = vld [vmem:[%s5448_s1 + $0x30] sm:$0xff]  }
  0x23   : > { %4022 = vmatpush3.bf16.msra.mxu1 %v4734_v25  ;;  %360 = vst [vmem:[#allocation2 + $0x148] sm:$0xff] %v4970_v45  ;;  %361 = vst [vmem:[#allocation2 + $0x150] sm:$0xff] %v4973_v46  ;;  %v1839_v4 = vld [vmem:[#allocation2 + $0x29] sm:$0xff]  ;;  %v4747_v9 = vld [vmem:[%s5448_s1 + $0x178] sm:$0xff]  }
  0x24   : > { %4214 = vmatpush3.bf16.msra.mxu0 %v4735_v26  ;;  %4055 = vmatprep.subr.bf16.mxu1 %v4736_v31  ;;  %362 = vst [vmem:[#allocation2 + $0x168] sm:$0xff] %v4978_v47  ;;  %363 = vst [vmem:[#allocation2 + $0x170] sm:$0xff] %v4981_v49  ;;  %v5047_v8 = vpack.c.bf16 %v1840_v5, %v1839_v4  ;;  %v4754_v10 = vld [vmem:[%s5448_s1 + $0x38] sm:$0xff]   ;;  %v1841_v11 = vld [vmem:[#allocation2 + $0x49] sm:$0xff] }
  0x25   : > { %4247 = vmatprep.subr.bf16.mxu0 %v4737_v32  ;;  %364 = vst [vmem:[#allocation2 + $0x188] sm:$0xff] %v4992_v53  ;;  %365 = vst [vmem:[#allocation2 + $0x190] sm:$0xff] %v4995_v54  ;;  %v1842_v12 = vld [vmem:[#allocation2 + $0x51] sm:$0xff]  ;;  %v4749_v13 = vld [vmem:[%s5448_s1 + $0x180] sm:$0xff]  }
  0x26   : > { %4024 = vmatmul.mubr.bf16.vlgmr.msra.gmra.mrb[0].mxu1 %v1565_v16  ;;  %366 = vst [vmem:[#allocation2 + $0x1a8] sm:$0xff] %v5000_v55  ;;  %367 = vst [vmem:[#allocation2 + $0x1b0] sm:$0xff] %v5003_v56  ;;  %v1843_v14 = vld [vmem:[#allocation2 + $0x69] sm:$0xff]  ;;  %v1844_v15 = vld [vmem:[#allocation2 + $0x71] sm:$0xff]  ;;  %v479_v16 = vpack.c.bf16 %v4959_v42, %v4956_v41  ;;  %v5066_v18 = vpack.c.bf16 %v1842_v12, %v1841_v11  ;;  %v5113_v41 = vpack.c.bf16 %v5019_v61, %v5014_v59 }
  0x27   : > { %4216 = vmatmul.mubr.bf16.vlgmr.msra.gmra.mrb[0].mxu0 %v1566_v36  ;;  %4056 = vmatpush3.bf16.msra.mxu1 %v4736_v31  ;;  %368 = vst [vmem:[#allocation2 + $0x1c8] sm:$0xff] %v5014_v59  ;;  %369 = vst [vmem:[#allocation2 + $0x1d0] sm:$0xff] %v5019_v61  ;;  %v5064_v17 = vld [vmem:[%s5448_s1 + $0x80] sm:$0xff]   ;;  %v5070_v20 = vpack.c.bf16 %v1844_v15, %v1843_v14  ;;  %v4751_v21 = vld [vmem:[%s5448_s1 + $0x188] sm:$0xff]   ;;  %v482_v31 = vpack.c.bf16 %v4995_v54, %v4992_v53 }
  0x28   : > { %4248 = vmatpush3.bf16.msra.mxu0 %v4737_v32  ;;  %4027 = vmatprep.mubr.bf16.mxu1 %v1566_v36  ;;  %370 = vst [vmem:[#allocation2 + $0x1e8] sm:$0xff] %v5026_v63  ;;  %371 = vst [vmem:[#allocation2 + $0x1f0] sm:$0xff] %v5029_v0  ;;  %v1845_v22 = vld [vmem:[#allocation2 + $0x89] sm:$0xff]  ;;  %v1846_v23 = vld [vmem:[#allocation2 + $0x91] sm:$0xff] }
  0x29   : > { %4249 = vmatprep.subr.bf16.mxu0 %v4738_v38  ;;  %4219 = vmatprep.mubr.bf16.mxu0 %v1567_v39  ;;  %v1847_v24 = vld [vmem:[#allocation2 + $0xa9] sm:$0xff]  ;;  %v1848_v25 = vld [vmem:[#allocation2 + $0xb1] sm:$0xff]  ;;  %v5091_v30 = vpack.c.bf16 %v1846_v23, %v1845_v22 }
  0x2a   : > { %4057 = vmatprep.subr.bf16.mxu1 %v4739_v40  ;;  %v5079_v26 = vld [vmem:[%s4889_s16 + $0xf0] sm:$0xff]  ;;  %v5082_v27 = vld [vmem:[%s4889_s16 + $0xf8] sm:$0xff]  ;;  %v5095_v32 = vpack.c.bf16 %v1848_v25, %v1847_v24  ;;  %v374_v46 = vld [vmem:[#allocation2 + $0x7] sm:$0xff] }
  0x2b   : > { %4058 = vmatpush3.bf16.msra.mxu1 %v4739_v40  ;;  %v4753_v28 = vld [vmem:[%s5448_s1 + $0x190] sm:$0xff]   ;;  %372 = vst [vmem:[#allocation2 + $0x208] sm:$0xff] %v5079_v26  ;;  %373 = vst [vmem:[#allocation2 + $0x210] sm:$0xff] %v5082_v27  ;;  %v4755_v33 = vld [vmem:[%s5448_s1 + $0x198] sm:$0xff]  }
  0x2c   : > { %4250 = vmatpush3.bf16.msra.mxu0 %v4738_v38  ;;  %4059 = vmatprep.subr.bf16.mxu1 %v4742_v43  ;;  %v1849_v34 = vld [vmem:[#allocation2 + $0xc9] sm:$0xff]  ;;  %v1850_v35 = vld [vmem:[#allocation2 + $0xd1] sm:$0xff]  ;;  %v4757_v38 = vld [vmem:[%s5448_s1 + $0x1a0] sm:$0xff]  }
  0x2d   : > { %4251 = vmatprep.subr.bf16.mxu0 %v4740_v44  ;;  %v1851_v36 = vld [vmem:[#allocation2 + $0xe9] sm:$0xff]  ;;  %v1852_v37 = vld [vmem:[#allocation2 + $0xf1] sm:$0xff]  ;;  %v5109_v40 = vpack.c.bf16 %v1850_v35, %v1849_v34  ;;  %v4764_v35 = vld [vmem:[%s5448_s1 + $0xa0] sm:$0xff]  }
  0x2e   : > { %4028 = vmatmul.mubr.bf16.gmra.mrb[4].mxu1 %v1567_v39  ;;  %v5107_v39 = vpack.c.bf16 %v5003_v56, %v5000_v55  ;;  %v5115_v42 = vpack.c.bf16 %v1852_v37, %v1851_v36  ;;  %v1854_v45 = vld [vmem:[#allocation2 + $0x111] sm:$0xff]  ;;  %v376_v55 = vld [vmem:[#allocation2 + $0x27] sm:$0xff] }
  0x2f   : > { %4220 = vmatmul.mubr.bf16.gmra.mrb[4].mxu0 %v1568_v48  ;;  %4031 = vmatprep.mubr.bf16.mxu1 %v1568_v48  ;;  %v375_v47 = vld [vmem:[#allocation2 + $0xf] sm:$0xff]  ;;  %v380_v5 = vld [vmem:[#allocation2 + $0x67] sm:$0xff]  ;;  %v4762_v23 = vld [vmem:[%s5448_s1 + $0x98] sm:$0xff]  }
  0x30   : > { %4252 = vmatpush3.bf16.msra.mxu0 %v4740_v44  ;;  %4223 = vmatprep.mubr.bf16.mxu0 %v1569_v50  ;;  %v1853_v44 = vld [vmem:[#allocation2 + $0x109] sm:$0xff]  ;;  %v1856_v49 = vld [vmem:[#allocation2 + $0x131] sm:$0xff]  ;;  %v406_v53 = vpack.c.bf16 %v375_v47, %v374_v46 }
  0x31   : > { %4253 = vmatprep.subr.bf16.mxu0 %v4741_v51  ;;  %4060 = vmatpush3.bf16.msra.mxu1 %v4742_v43  ;;  %v4759_v43 = vld [vmem:[%s5448_s1 + $0x1a8] sm:$0xff]   ;;  %v1858_v59 = vld [vmem:[#allocation2 + $0x151] sm:$0xff] }
  0x32   : > { %4061 = vmatprep.subr.bf16.mxu1 %v4745_v52  ;;  %v1855_v48 = vld [vmem:[#allocation2 + $0x129] sm:$0xff]  ;;  %v1864_v15 = vld [vmem:[#allocation2 + $0x1b1] sm:$0xff] }
  0x33   : > { %v5133_v54 = vpack.c.bf16 %v1856_v49, %v1855_v48  ;;  %v377_v56 = vld [vmem:[#allocation2 + $0x2f] sm:$0xff]  ;;  %v382_v11 = vld [vmem:[#allocation2 + $0x87] sm:$0xff]  ;;  %v2498_v48 = vpack.c.bf16 %v5082_v27, %v5079_v26 }
  0x34   : > { %4254 = vmatpush3.bf16.msra.mxu0 %v4741_v51  ;;  %v5129_v51 = vpack.c.bf16 %v5029_v0, %v5026_v63  ;;  %v379_v61 = vld [vmem:[#allocation2 + $0x4f] sm:$0xff]  ;;  %v5144_v0 = vld [vmem:[%s5448_s1 + $0x1c0] sm:$0xff]  }
  0x35   : > { %4255 = vmatprep.subr.bf16.mxu0 %v4743_v57  ;;  %4062 = vmatpush3.bf16.msra.mxu1 %v4745_v52  ;;  %v5131_v52 = vpack.c.bf16 %v1854_v45, %v1853_v44  ;;  %v1860_v63 = vld [vmem:[#allocation2 + $0x171] sm:$0xff]  ;;  %v384_v22 = vld [vmem:[#allocation2 + $0xa7] sm:$0xff] }
  0x36   : > { %4032 = vmatmul.mubr.bf16.gmra.mrb[8].mxu1 %v1569_v50  ;;  %4063 = vmatprep.subr.bf16.mxu1 %v4748_v58  ;;  %v4761_v50 = vld [vmem:[%s5448_s1 + $0x1b0] sm:$0xff]   ;;  %v4766_v44 = vld [vmem:[%s5448_s1 + $0xa8] sm:$0xff]  }
  0x37   : > { %4224 = vmatmul.mubr.bf16.gmra.mrb[8].mxu0 %v1570_v60  ;;  %4035 = vmatprep.mubr.bf16.mxu1 %v1570_v60  ;;  %v378_v60 = vld [vmem:[#allocation2 + $0x47] sm:$0xff]  ;;  %v383_v12 = vld [vmem:[#allocation2 + $0x8f] sm:$0xff] }
  0x38   : > { %4256 = vmatpush3.bf16.msra.mxu0 %v4743_v57  ;;  %4227 = vmatprep.mubr.bf16.mxu0 %v1571_v62  ;;  %v4763_v57 = vld [vmem:[%s5448_s1 + $0x1b8] sm:$0xff]   ;;  %v4760_v14 = vld [vmem:[%s5448_s1 + $0x90] sm:$0xff]   ;;  %v388_v45 = vld [vmem:[#allocation2 + $0xe7] sm:$0xff] }
  0x39   : > { %4257 = vmatprep.subr.bf16.mxu0 %v4744_v1  ;;  %4064 = vmatpush3.bf16.msra.mxu1 %v4748_v58  ;;  %v1857_v58 = vld [vmem:[#allocation2 + $0x149] sm:$0xff]  ;;  %v1868_v34 = vld [vmem:[#allocation2 + $0x1f1] sm:$0xff] }
  0x3a   : > { %4065 = vmatprep.subr.bf16.mxu1 %v4750_v2  ;;  %v385_v24 = vld [vmem:[#allocation2 + $0xaf] sm:$0xff]  ;;  %v390_v47 = vld [vmem:[#allocation2 + $0x107] sm:$0xff] }
  0x3b   : > { %v1865_v25 = vld [vmem:[#allocation2 + $0x1c9] sm:$0xff]  ;;  %v5184_v36 = vpack.c.bf16 %v385_v24, %v384_v22  ;;  %v2761_v27 = vld [vmem:[#allocation2 + $0x71] sm:$0xff] }
  0x3c   : > { %4258 = vmatpush3.bf16.msra.mxu0 %v4744_v1  ;;  %v5146_v1 = vpack.c.bf16 %v377_v56, %v376_v55  ;;  %v389_v46 = vld [vmem:[#allocation2 + $0xef] sm:$0xff] }
  0x3d   : > { %4259 = vmatprep.subr.bf16.mxu0 %v4746_v3  ;;  %4066 = vmatpush3.bf16.msra.mxu1 %v4750_v2  ;;  %v5148_v2 = vpack.c.bf16 %v1858_v59, %v1857_v58  ;;  %v1869_v49 = vld [vmem:[#allocation2 + $0x209] sm:$0xff]  ;;  %v5204_v56 = vpack.c.bf16 %v389_v46, %v388_v45  ;;  %v4770_v59 = vld [vmem:[%s5448_s1 + $0xb8] sm:$0xff]  }
  0x3e   : > { %4036 = vmatmul.mubr.bf16.gmra.mrb[12].mxu1 %v1571_v62  ;;  %4067 = vmatprep.subr.bf16.mxu1 %v4752_v6  ;;  %v1859_v62 = vld [vmem:[#allocation2 + $0x169] sm:$0xff]  ;;  %v922_v46 = vld [vmem:[#allocation2 + $0x11] sm:$0xff] }
  0x3f   : > { %4228 = vmatmul.mubr.bf16.gmra.mrb[12].mxu0 %v1572_v7  ;;  %4039 = vmatprep.mubr.bf16.mxu1 %v1572_v7  ;;  %v5152_v4 = vpack.c.bf16 %v1860_v63, %v1859_v62  ;;  %v4758_v7 = vld [vmem:[%s5448_s1 + $0x88] sm:$0xff]   ;;  %v4768_v55 = vld [vmem:[%s5448_s1 + $0xb0] sm:$0xff]  }
  0x40   : > { %4260 = vmatpush3.bf16.msra.mxu0 %v4746_v3  ;;  %4263 = vmatprep.mubr.bf16.mxu0 %v5047_v8  ;;  %v5150_v3 = vpack.c.bf16 %v379_v61, %v378_v60  ;;  %v392_v60 = vld [vmem:[#allocation2 + $0x127] sm:$0xff]  ;;  %v393_v61 = vld [vmem:[#allocation2 + $0x12f] sm:$0xff] }
  0x41   : > { %4261 = vmatprep.subr.bf16.mxu0 %v4747_v9  ;;  %4068 = vmatpush3.bf16.msra.mxu1 %v4752_v6  ;;  %v381_v6 = vld [vmem:[#allocation2 + $0x6f] sm:$0xff]  ;;  %v394_v62 = vld [vmem:[#allocation2 + $0x147] sm:$0xff] }
  0x42   : > { %4069 = vmatprep.subr.bf16.mxu1 %v4754_v10  ;;  %v395_v63 = vld [vmem:[#allocation2 + $0x14f] sm:$0xff] }
  0x43   : > { %v401_v24 = vld [vmem:[#allocation2 + $0x1af] sm:$0xff] }
  0x44   : > { %4262 = vmatpush3.bf16.msra.mxu0 %v4747_v9  ;;  %v1861_v9 = vld [vmem:[#allocation2 + $0x189] sm:$0xff] }
  0x45   : > { %4295 = vmatprep.subr.bf16.mxu0 %v4749_v13  ;;  %4070 = vmatpush3.bf16.msra.mxu1 %v4754_v10  ;;  %v1862_v10 = vld [vmem:[#allocation2 + $0x191] sm:$0xff]  ;;  %v921_v45 = vld [vmem:[#allocation2 + $0x9] sm:$0xff] }
  0x46   : > { %4040 = vmatmul.mubr.bf16.gmra.mrb[16].mxu1 %v479_v16  ;;  %4103 = vmatprep.subr.bf16.mxu1 %v5064_v17  ;;  %v5166_v16 = vpack.c.bf16 %v381_v6, %v380_v5  ;;  %v5217_v5 = vld [vmem:[%s5448_s1 + $0xc0] sm:$0xff]   ;;  %v5219_v6 = vpack.c.bf16 %v393_v61, %v392_v60  ;;  %v4778_v60 = vld [vmem:[%s5448_s1 + $0xd8] sm:$0xff]   ;;  %v2760_v26 = vld [vmem:[#allocation2 + $0x69] sm:$0xff] }
  0x47   : > { %4264 = vmatmul.mubr.bf16.vlgmr.msra.gmra.mrb[0].mxu0 %v5066_v18  ;;  %4043 = vmatprep.mubr.bf16.mxu1 %v480_v19  ;;  %v5168_v19 = vpack.c.bf16 %v1862_v10, %v1861_v9  ;;  %v4767_v9 = vld [vmem:[%s5448_s1 + $0x1c8] sm:$0xff]   ;;  %v4780_v61 = vld [vmem:[%s5448_s1 + $0xe0] sm:$0xff]  }
  0x48   : > { %4296 = vmatpush3.bf16.msra.mxu0 %v4749_v13  ;;  %4267 = vmatprep.mubr.bf16.mxu0 %v5070_v20  ;;  %v1863_v13 = vld [vmem:[#allocation2 + $0x1a9] sm:$0xff] }
  0x49   : > { %4297 = vmatprep.subr.bf16.mxu0 %v4751_v21  ;;  %v396_v10 = vld [vmem:[#allocation2 + $0x167] sm:$0xff] }
  0x4c   : > { %4298 = vmatpush3.bf16.msra.mxu0 %v4751_v21  ;;  %v5170_v21 = vpack.c.bf16 %v383_v12, %v382_v11  ;;  %v397_v11 = vld [vmem:[#allocation2 + $0x16f] sm:$0xff]  ;;  %v398_v12 = vld [vmem:[#allocation2 + $0x187] sm:$0xff] }
  0x4d   : > { %4299 = vmatprep.subr.bf16.mxu0 %v4753_v28 }
  0x4e   : > { %4044 = vmatmul.mubr.bf16.gmra.mrb[20].mxu1 %v481_v29  ;;  %v386_v29 = vld [vmem:[#allocation2 + $0xc7] sm:$0xff] }
  0x4f   : > { %4268 = vmatmul.mubr.bf16.gmra.mrb[4].mxu0 %v5091_v30  ;;  %4047 = vmatprep.mubr.bf16.mxu1 %v482_v31  ;;  %v387_v31 = vld [vmem:[#allocation2 + $0xcf] sm:$0xff] }
  0x50   : > { %4271 = vmatprep.mubr.bf16.mxu0 %v5095_v32  ;;  %4300 = vmatpush3.bf16.msra.mxu0 %v4753_v28  ;;  %v1866_v28 = vld [vmem:[#allocation2 + $0x1d1] sm:$0xff] }
  0x51   : > { %4301 = vmatprep.subr.bf16.mxu0 %v4755_v33  ;;  %v5186_v37 = vpack.c.bf16 %v1866_v28, %v1865_v25  ;;  %v402_v25 = vld [vmem:[#allocation2 + $0x1c7] sm:$0xff]  ;;  %v403_v28 = vld [vmem:[#allocation2 + $0x1cf] sm:$0xff] }
  0x54   : > { %4302 = vmatpush3.bf16.msra.mxu0 %v4755_v33  ;;  %v1867_v33 = vld [vmem:[#allocation2 + $0x1e9] sm:$0xff] }
  0x55   : > { %4303 = vmatprep.subr.bf16.mxu0 %v4757_v38 }
  0x56   : > { %4048 = vmatmul.mubr.bf16.gmra.mrb[24].mxu1 %v5107_v39 }
  0x57   : > { %4272 = vmatmul.mubr.bf16.gmra.mrb[8].mxu0 %v5109_v40  ;;  %4051 = vmatprep.mubr.bf16.mxu1 %v5113_v41 }
  0x58   : > { %4275 = vmatprep.mubr.bf16.mxu0 %v5115_v42  ;;  %4304 = vmatpush3.bf16.msra.mxu0 %v4757_v38  ;;  %v5188_v38 = vpack.c.bf16 %v387_v31, %v386_v29  ;;  %v4773_v29 = vld [vmem:[%s5448_s1 + $0x1e0] sm:$0xff]  }
  0x59   : > { %4305 = vmatprep.subr.bf16.mxu0 %v4759_v43 }
  0x5c   : > { %4306 = vmatpush3.bf16.msra.mxu0 %v4759_v43  ;;  %v5190_v43 = vpack.c.bf16 %v1868_v34, %v1867_v33  ;;  %v5251_v33 = vpack.c.bf16 %v403_v28, %v402_v25  ;;  %v4775_v34 = vld [vmem:[%s5448_s1 + $0x1e8] sm:$0xff]   ;;  %v2459_v28 = vld [vmem:[#allocation2 + $0xb0] sm:$0xff] }
  0x5d   : > { %4307 = vmatprep.subr.bf16.mxu0 %v4761_v50  ;;  %v4783_v25 = vld [vmem:[%s5448_s1 + $0x208] sm:$0xff]  }
  0x5e   : > { %4052 = vmatmul.mubr.bf16.gmra.mrb[28].mxu1 %v5129_v51 }
  0x5f   : > { %4276 = vmatmul.mubr.bf16.gmra.mrb[12].mxu0 %v5131_v52  ;;  %4071 = vmatprep.mubr.bf16.mxu1 %v406_v53  ;;  %v391_v53 = vld [vmem:[#allocation2 + $0x10f] sm:$0xff] }
  0x60   : > { %4279 = vmatprep.mubr.bf16.mxu0 %v5133_v54  ;;  %4308 = vmatpush3.bf16.msra.mxu0 %v4761_v50  ;;  %v1870_v50 = vld [vmem:[#allocation2 + $0x211] sm:$0xff]  ;;  %v5206_v58 = vpack.c.bf16 %v391_v53, %v390_v47 }
  0x61   : > { %4309 = vmatprep.subr.bf16.mxu0 %v4763_v57  ;;  %v4777_v47 = vld [vmem:[%s5448_s1 + $0x1f0] sm:$0xff]   ;;  %v4779_v53 = vld [vmem:[%s5448_s1 + $0x1f8] sm:$0xff]  }
  0x64   : > { %4310 = vmatpush3.bf16.msra.mxu0 %v4763_v57  ;;  %v1886_v57 = vpack.c.bf16 %v1870_v50, %v1869_v49  ;;  %v953_v50 = vpack.c.bf16 %v922_v46, %v921_v45  ;;  %v2463_v46 = vld [vmem:[#allocation2 + $0xf0] sm:$0xff] }
  0x65   : > { %4343 = vmatprep.subr.bf16.mxu0 %v5144_v0 }
  0x66   : > { %4072 = vmatmul.mubr.bf16.vlgmr.msra.gmra.mrb[0].mxu1 %v5146_v1 }
  0x67   : > { %4280 = vmatmul.mubr.bf16.gmra.mrb[16].mxu0 %v5148_v2  ;;  %4104 = vmatpush3.bf16.msra.mxu1 %v5064_v17  ;;  %v5172_v17 = vpack.c.bf16 %v1864_v15, %v1863_v13  ;;  %v399_v13 = vld [vmem:[#allocation2 + $0x18f] sm:$0xff]  ;;  %v5235_v15 = vpack.c.bf16 %v397_v11, %v396_v10 }
  0x68   : > { %4075 = vmatprep.mubr.bf16.mxu1 %v5150_v3  ;;  %4283 = vmatprep.mubr.bf16.mxu0 %v5152_v4  ;;  %v5237_v22 = vpack.c.bf16 %v399_v13, %v398_v12  ;;  %v4784_v10 = vld [vmem:[%s5448_s1 + $0xf0] sm:$0xff]  }
  0x69   : > { %4105 = vmatprep.subr.bf16.mxu1 %v4758_v7  ;;  %v2455_v13 = vld [vmem:[#allocation2 + $0x70] sm:$0xff] }
  0x6b   : > { %4106 = vmatpush3.bf16.msra.mxu1 %v4758_v7  ;;  %v5221_v7 = vpack.c.bf16 %v395_v63, %v394_v62  ;;  %v2177_v63 = vld [vmem:[#allocation2 + $0x22f] sm:$0xff] }
  0x6c   : > { %4107 = vmatprep.subr.bf16.mxu1 %v4760_v14 }
  0x6e   : > { %4076 = vmatmul.mubr.bf16.gmra.mrb[4].mxu1 %v5166_v16 }
  0x6f   : > { %4284 = vmatmul.mubr.bf16.gmra.mrb[20].mxu0 %v5168_v19  ;;  %4079 = vmatprep.mubr.bf16.mxu1 %v5170_v21 }
  0x70   : > { %4287 = vmatprep.mubr.bf16.mxu0 %v5172_v17  ;;  %4108 = vmatpush3.bf16.msra.mxu1 %v4760_v14  ;;  %v4769_v14 = vld [vmem:[%s5448_s1 + $0x1d0] sm:$0xff]  }
  0x71   : > { %4109 = vmatprep.subr.bf16.mxu1 %v4762_v23 }
  0x74   : > { %4110 = vmatpush3.bf16.msra.mxu1 %v4762_v23  ;;  %v4771_v23 = vld [vmem:[%s5448_s1 + $0x1d8] sm:$0xff]  }
  0x75   : > { %4111 = vmatprep.subr.bf16.mxu1 %v4764_v35 }
  0x76   : > { %4080 = vmatmul.mubr.bf16.gmra.mrb[8].mxu1 %v5184_v36 }
  0x77   : > { %4288 = vmatmul.mubr.bf16.gmra.mrb[24].mxu0 %v5186_v37  ;;  %4083 = vmatprep.mubr.bf16.mxu1 %v5188_v38 }
  0x78   : > { %4291 = vmatprep.mubr.bf16.mxu0 %v5190_v43  ;;  %4112 = vmatpush3.bf16.msra.mxu1 %v4764_v35  ;;  %v404_v35 = vld [vmem:[#allocation2 + $0x1e7] sm:$0xff] }
  0x79   : > { %4113 = vmatprep.subr.bf16.mxu1 %v4766_v44 }
  0x7c   : > { %4114 = vmatpush3.bf16.msra.mxu1 %v4766_v44  ;;  %v405_v44 = vld [vmem:[#allocation2 + $0x1ef] sm:$0xff] }
  0x7d   : > { %4115 = vmatprep.subr.bf16.mxu1 %v4768_v55  ;;  %v5263_v49 = vpack.c.bf16 %v405_v44, %v404_v35  ;;  %v4785_v35 = vld [vmem:[%s5448_s1 + $0x210] sm:$0xff]  }
  0x7e   : > { %4084 = vmatmul.mubr.bf16.gmra.mrb[12].mxu1 %v5204_v56 }
  0x7f   : > { %4292 = vmatmul.mubr.bf16.gmra.mrb[28].mxu0 %v1886_v57  ;;  %4087 = vmatprep.mubr.bf16.mxu1 %v5206_v58  ;;  %v4774_v57 = vld [vmem:[%s5448_s1 + $0xc8] sm:$0xff]  }
  0x80   : > { %4311 = vmatprep.mubr.bf16.mxu0 %v5150_v3  ;;  %4116 = vmatpush3.bf16.msra.mxu1 %v4768_v55  ;;  %v4781_v55 = vld [vmem:[%s5448_s1 + $0x200] sm:$0xff]  }
  0x81   : > { %4117 = vmatprep.subr.bf16.mxu1 %v4770_v59 }
  0x84   : > { %4118 = vmatpush3.bf16.msra.mxu1 %v4770_v59  ;;  %v4776_v59 = vld [vmem:[%s5448_s1 + $0xd0] sm:$0xff]  }
  0x85   : > { %4151 = vmatprep.subr.bf16.mxu1 %v5217_v5 }
  0x86   : > { %4088 = vmatmul.mubr.bf16.gmra.mrb[16].mxu1 %v5219_v6 }
  0x87   : > { %4312 = vmatmul.mubr.bf16.vlgmr.msra.gmra.mrb[0].mxu0 %v5166_v16  ;;  %4091 = vmatprep.mubr.bf16.mxu1 %v5221_v7 }
  0x88   : > { %4344 = vmatpush3.bf16.msra.mxu0 %v5144_v0  ;;  %4315 = vmatprep.mubr.bf16.mxu0 %v5170_v21  ;;  %v400_v0 = vld [vmem:[#allocation2 + $0x1a7] sm:$0xff] }
  0x89   : > { %4345 = vmatprep.subr.bf16.mxu0 %v4767_v9  ;;  %v5249_v31 = vpack.c.bf16 %v401_v24, %v400_v0 }
  0x8c   : > { %4346 = vmatpush3.bf16.msra.mxu0 %v4767_v9  ;;  %v2453_v9 = vld [vmem:[#allocation2 + $0x50] sm:$0xff] }
  0x8d   : > { %4347 = vmatprep.subr.bf16.mxu0 %v4769_v14 }
  0x8e   : > { %4092 = vmatmul.mubr.bf16.gmra.mrb[20].mxu1 %v5235_v15 }
  0x8f   : > { %4316 = vmatmul.mubr.bf16.gmra.mrb[4].mxu0 %v5184_v36  ;;  %4095 = vmatprep.mubr.bf16.mxu1 %v5237_v22 }
  0x90   : > { %4319 = vmatprep.mubr.bf16.mxu0 %v5188_v38  ;;  %4348 = vmatpush3.bf16.msra.mxu0 %v4769_v14  ;;  %v2456_v14 = vld [vmem:[#allocation2 + $0x88] sm:$0xff] }
  0x91   : > { %4349 = vmatprep.subr.bf16.mxu0 %v4771_v23 }
  0x94   : > { %4350 = vmatpush3.bf16.msra.mxu0 %v4771_v23  ;;  %v2457_v23 = vld [vmem:[#allocation2 + $0x90] sm:$0xff] }
  0x95   : > { %4351 = vmatprep.subr.bf16.mxu0 %v4773_v29  ;;  %v2486_v24 = vpack.c.bf16 %v2457_v23, %v2456_v14  ;;  %v2767_v14 = vld [vmem:[#allocation2 + $0xd1] sm:$0xff] }
  0x96   : > { %4096 = vmatmul.mubr.bf16.gmra.mrb[24].mxu1 %v5249_v31 }
  0x97   : > { %4320 = vmatmul.mubr.bf16.gmra.mrb[8].mxu0 %v5204_v56  ;;  %4099 = vmatprep.mubr.bf16.mxu1 %v5251_v33 }
  0x98   : > { %4323 = vmatprep.mubr.bf16.mxu0 %v5206_v58  ;;  %4352 = vmatpush3.bf16.msra.mxu0 %v4773_v29  ;;  %v2460_v29 = vld [vmem:[#allocation2 + $0xc8] sm:$0xff] }
  0x99   : > { %4353 = vmatprep.subr.bf16.mxu0 %v4775_v34 }
  0x9c   : > { %4354 = vmatpush3.bf16.msra.mxu0 %v4775_v34  ;;  %v2461_v34 = vld [vmem:[#allocation2 + $0xd0] sm:$0xff] }
  0x9d   : > { %4355 = vmatprep.subr.bf16.mxu0 %v4777_v47  ;;  %v2488_v45 = vpack.c.bf16 %v2461_v34, %v2460_v29  ;;  %v2773_v29 = vld [vmem:[#allocation2 + $0x131] sm:$0xff]  ;;  %v2774_v34 = vld [vmem:[#allocation2 + $0x149] sm:$0xff] }
  0x9e   : > { %4100 = vmatmul.mubr.bf16.gmra.mrb[28].mxu1 %v5263_v49 }
  0x9f   : > { %4324 = vmatmul.mubr.bf16.gmra.mrb[12].mxu0 %v5219_v6  ;;  %4119 = vmatprep.mubr.bf16.mxu1 %v953_v50  ;;  %v2465_v50 = vld [vmem:[#allocation2 + $0x110] sm:$0xff] }
  0xa0   : > { %4327 = vmatprep.mubr.bf16.mxu0 %v5221_v7  ;;  %4356 = vmatpush3.bf16.msra.mxu0 %v4777_v47  ;;  %v2464_v47 = vld [vmem:[#allocation2 + $0x108] sm:$0xff] }
  0xa1   : > { %4357 = vmatprep.subr.bf16.mxu0 %v4779_v53 }
  0xa4   : > { %4358 = vmatpush3.bf16.msra.mxu0 %v4779_v53  ;;  %v4788_v53 = vld [vmem:[%s5448_s1 + $0x220] sm:$0xff]  }
  0xa5   : > { %4391 = vmatprep.subr.bf16.mxu0 %v4781_v55 }
  0xa6   : > { %4120 = vmatmul.mubr.bf16.vlgmr.msra.gmra.mrb[0].mxu1 %v5047_v8  ;;  %v2174_v8 = vld [vmem:[#allocation2 + $0x207] sm:$0xff] }
  0xa7   : > { %4328 = vmatmul.mubr.bf16.gmra.mrb[16].mxu0 %v5235_v15  ;;  %4152 = vmatpush3.bf16.msra.mxu1 %v5217_v5  ;;  %v2452_v5 = vld [vmem:[#allocation2 + $0x48] sm:$0xff] }
  0xa8   : > { %4123 = vmatprep.mubr.bf16.mxu1 %v5066_v18  ;;  %4331 = vmatprep.mubr.bf16.mxu0 %v5237_v22  ;;  %v2175_v18 = vld [vmem:[#allocation2 + $0x20f] sm:$0xff]  ;;  %v2484_v12 = vpack.c.bf16 %v2453_v9, %v2452_v5 }
  0xa9   : > { %4153 = vmatprep.subr.bf16.mxu1 %v4774_v57  ;;  %v5295_v62 = vpack.c.bf16 %v2175_v18, %v2174_v8  ;;  %v2469_v8 = vld [vmem:[#allocation2 + $0x150] sm:$0xff] }
  0xaa   : > { %v4790_v18 = vld [vmem:[%s5448_s1 + $0x230] sm:$0xff]  }
  0xab   : > { %4154 = vmatpush3.bf16.msra.mxu1 %v4774_v57  ;;  %v2490_v57 = vpack.c.bf16 %v2465_v50, %v2464_v47  ;;  %v2473_v5 = vld [vmem:[#allocation2 + $0x190] sm:$0xff]  ;;  %v1557_v50 = vld [vmem:[#allocation2 + $0x1a8] sm:$0xff] }
  0xac   : > { %4155 = vmatprep.subr.bf16.mxu1 %v4776_v59  ;;  %v2781_v47 = vld [vmem:[#allocation2 + $0x1b1] sm:$0xff] }
  0xae   : > { %4124 = vmatmul.mubr.bf16.gmra.mrb[4].mxu1 %v5070_v20  ;;  %v4782_v20 = vld [vmem:[%s5448_s1 + $0xe8] sm:$0xff]  }
  0xaf   : > { %4332 = vmatmul.mubr.bf16.gmra.mrb[20].mxu0 %v5249_v31  ;;  %4127 = vmatprep.mubr.bf16.mxu1 %v5091_v30  ;;  %v2176_v30 = vld [vmem:[#allocation2 + $0x227] sm:$0xff] }
  0xb0   : > { %4335 = vmatprep.mubr.bf16.mxu0 %v5251_v33  ;;  %4156 = vmatpush3.bf16.msra.mxu1 %v4776_v59  ;;  %v2193_v11 = vpack.c.bf16 %v2177_v63, %v2176_v30  ;;  %v2467_v59 = vld [vmem:[#allocation2 + $0x130] sm:$0xff]  ;;  %v2472_v63 = vld [vmem:[#allocation2 + $0x188] sm:$0xff] }
  0xb1   : > { %4157 = vmatprep.subr.bf16.mxu1 %v4778_v60  ;;  %v2471_v30 = vld [vmem:[#allocation2 + $0x170] sm:$0xff] }
  0xb4   : > { %4158 = vmatpush3.bf16.msra.mxu1 %v4778_v60  ;;  %v2468_v60 = vld [vmem:[#allocation2 + $0x148] sm:$0xff] }
  0xb5   : > { %4159 = vmatprep.subr.bf16.mxu1 %v4780_v61 }
  0xb6   : > { %4128 = vmatmul.mubr.bf16.gmra.mrb[8].mxu1 %v5095_v32  ;;  %v4786_v32 = vld [vmem:[%s5448_s1 + $0xf8] sm:$0xff]  }
  0xb7   : > { %4336 = vmatmul.mubr.bf16.gmra.mrb[24].mxu0 %v5263_v49  ;;  %4131 = vmatprep.mubr.bf16.mxu1 %v5109_v40  ;;  %v2454_v40 = vld [vmem:[#allocation2 + $0x68] sm:$0xff] }
  0xb8   : > { %4339 = vmatprep.mubr.bf16.mxu0 %v5295_v62  ;;  %4160 = vmatpush3.bf16.msra.mxu1 %v4780_v61  ;;  %v2485_v0 = vpack.c.bf16 %v2455_v13, %v2454_v40  ;;  %v2766_v13 = vld [vmem:[#allocation2 + $0xc9] sm:$0xff] }
  0xb9   : > { %4161 = vmatprep.subr.bf16.mxu1 %v4782_v20 }
  0xbc   : > { %4162 = vmatpush3.bf16.msra.mxu1 %v4782_v20  ;;  %v5344_v20 = vpack.c.bf16 %v2469_v8, %v2468_v60  ;;  %v1560_v60 = vld [vmem:[#allocation2 + $0x1d0] sm:$0xff] }
  0xbd   : > { %4163 = vmatprep.subr.bf16.mxu1 %v4784_v10  ;;  %v2784_v8 = vld [vmem:[#allocation2 + $0x1e9] sm:$0xff] }
  0xbe   : > { %4132 = vmatmul.mubr.bf16.gmra.mrb[12].mxu1 %v5115_v42  ;;  %v5318_v42 = vld [vmem:[%s5448_s1 + $0x100] sm:$0xff]  }
  0xbf   : > { %4340 = vmatmul.mubr.bf16.gmra.mrb[28].mxu0 %v2193_v11  ;;  %4135 = vmatprep.mubr.bf16.mxu1 %v5131_v52  ;;  %v2458_v52 = vld [vmem:[#allocation2 + $0xa8] sm:$0xff] }
  0xc0   : > { %4359 = vmatprep.mubr.bf16.mxu0 %v2484_v12  ;;  %4164 = vmatpush3.bf16.msra.mxu1 %v4784_v10  ;;  %v2487_v44 = vpack.c.bf16 %v2459_v28, %v2458_v52  ;;  %v5355_v10 = vpack.c.bf16 %v2473_v5, %v2472_v63 }
  0xc1   : > { %4165 = vmatprep.subr.bf16.mxu1 %v4786_v32 }
  0xc4   : > { %4166 = vmatpush3.bf16.msra.mxu1 %v4786_v32  ;;  %v2791_v32 = vpack.c.bf16 %v2761_v27, %v2760_v26 }
  0xc5   : > { %4439 = vmatprep.subr.bf16.mxu1 %v5318_v42 }
  0xc6   : > { %4136 = vmatmul.mubr.bf16.gmra.mrb[16].mxu1 %v5133_v54  ;;  %v4787_v54 = vld [vmem:[%s5448_s1 + $0x218] sm:$0xff]  }
  0xc7   : > { %4360 = vmatmul.mubr.bf16.vlgmr.msra.gmra.mrb[0].mxu0 %v2485_v0  ;;  %4139 = vmatprep.mubr.bf16.mxu1 %v5148_v2  ;;  %v2462_v2 = vld [vmem:[#allocation2 + $0xe8] sm:$0xff]  ;;  %v2794_v0 = vpack.c.bf16 %v2767_v14, %v2766_v13 }
  0xc8   : > { %4392 = vmatpush3.bf16.msra.mxu0 %v4781_v55  ;;  %4363 = vmatprep.mubr.bf16.mxu0 %v2486_v24  ;;  %v2489_v55 = vpack.c.bf16 %v2463_v46, %v2462_v2  ;;  %v2768_v24 = vld [vmem:[#allocation2 + $0xe9] sm:$0xff] }
  0xc9   : > { %4393 = vmatprep.subr.bf16.mxu0 %v4783_v25 }
  0xcc   : > { %4394 = vmatpush3.bf16.msra.mxu0 %v4783_v25  ;;  %v2769_v25 = vld [vmem:[#allocation2 + $0xf1] sm:$0xff] }
  0xcd   : > { %4395 = vmatprep.subr.bf16.mxu0 %v4785_v35  ;;  %v2795_v52 = vpack.c.bf16 %v2769_v25, %v2768_v24 }
  0xce   : > { %4140 = vmatmul.mubr.bf16.gmra.mrb[20].mxu1 %v5152_v4  ;;  %v4789_v4 = vld [vmem:[%s5448_s1 + $0x228] sm:$0xff]  }
  0xcf   : > { %4364 = vmatmul.mubr.bf16.gmra.mrb[4].mxu0 %v2487_v44  ;;  %4143 = vmatprep.mubr.bf16.mxu1 %v5168_v19  ;;  %v2466_v19 = vld [vmem:[#allocation2 + $0x128] sm:$0xff] }
  0xd0   : > { %4367 = vmatprep.mubr.bf16.mxu0 %v2488_v45  ;;  %4396 = vmatpush3.bf16.msra.mxu0 %v4785_v35  ;;  %v5342_v61 = vpack.c.bf16 %v2467_v59, %v2466_v19  ;;  %v2777_v45 = vld [vmem:[#allocation2 + $0x171] sm:$0xff]  ;;  %v1559_v59 = vld [vmem:[#allocation2 + $0x1c8] sm:$0xff] }
  0xd1   : > { %4397 = vmatprep.subr.bf16.mxu0 %v4787_v54 }
  0xd4   : > { %4398 = vmatpush3.bf16.msra.mxu0 %v4787_v54  ;;  %v2778_v54 = vld [vmem:[#allocation2 + $0x189] sm:$0xff] }
  0xd5   : > { %4399 = vmatprep.subr.bf16.mxu0 %v4788_v53 }
  0xd6   : > { %4144 = vmatmul.mubr.bf16.gmra.mrb[24].mxu1 %v5172_v17  ;;  %v4791_v17 = vld [vmem:[%s5448_s1 + $0x238] sm:$0xff]  }
  0xd7   : > { %4368 = vmatmul.mubr.bf16.gmra.mrb[8].mxu0 %v2489_v55  ;;  %4147 = vmatprep.mubr.bf16.mxu1 %v5186_v37  ;;  %v2470_v37 = vld [vmem:[#allocation2 + $0x168] sm:$0xff]  ;;  %v2783_v55 = vld [vmem:[#allocation2 + $0x1d1] sm:$0xff] }
  0xd8   : > { %4371 = vmatprep.mubr.bf16.mxu0 %v2490_v57  ;;  %4400 = vmatpush3.bf16.msra.mxu0 %v4788_v53  ;;  %v5353_v9 = vpack.c.bf16 %v2471_v30, %v2470_v37  ;;  %v2782_v53 = vld [vmem:[#allocation2 + $0x1c9] sm:$0xff]  ;;  %v2787_v37 = vld [vmem:[#allocation2 + $0x211] sm:$0xff]  ;;  %v1578_v30 = vpack.c.bf16 %v1560_v60, %v1559_v59 }
  0xd9   : > { %4401 = vmatprep.subr.bf16.mxu0 %v4789_v4  ;;  %v2802_v19 = vpack.c.bf16 %v2783_v55, %v2782_v53 }
  0xdc   : > { %4402 = vmatpush3.bf16.msra.mxu0 %v4789_v4 }
  0xdd   : > { %4403 = vmatprep.subr.bf16.mxu0 %v4790_v18 }
  0xde   : > { %4148 = vmatmul.mubr.bf16.gmra.mrb[28].mxu1 %v5190_v43  ;;  %v4794_v43 = vld [vmem:[%s5448_s1 + $0x110] sm:$0xff]  }
  0xdf   : > { %4372 = vmatmul.mubr.bf16.gmra.mrb[12].mxu0 %v5342_v61  ;;  %4167 = vmatprep.mubr.bf16.mxu1 %v5146_v1  ;;  %v4793_v1 = vld [vmem:[%s5448_s1 + $0x108] sm:$0xff]  }
  0xe0   : > { %4375 = vmatprep.mubr.bf16.mxu0 %v5344_v20  ;;  %4404 = vmatpush3.bf16.msra.mxu0 %v4790_v18  ;;  %v2785_v18 = vld [vmem:[#allocation2 + $0x1f1] sm:$0xff] }
  0xe1   : > { %4405 = vmatprep.subr.bf16.mxu0 %v4791_v17  ;;  %v2803_v63 = vpack.c.bf16 %v2785_v18, %v2784_v8 }
  0xe4   : > { %4406 = vmatpush3.bf16.msra.mxu0 %v4791_v17  ;;  %v2786_v17 = vld [vmem:[#allocation2 + $0x209] sm:$0xff] }
  0xe6   : > { %4168 = vmatmul.mubr.bf16.vlgmr.msra.gmra.mrb[0].mxu1 %v5150_v3  ;;  %v4795_v3 = vld [vmem:[%s5448_s1 + $0x118] sm:$0xff]  }
  0xe7   : > { %4376 = vmatmul.mubr.bf16.gmra.mrb[16].mxu0 %v5353_v9  ;;  %4447 = vmatpush3.bf16.msra.mxu1 %v5318_v42  ;;  %v2770_v42 = vld [vmem:[#allocation2 + $0x109] sm:$0xff] }
  0xe8   : > { %4171 = vmatprep.mubr.bf16.mxu1 %v5166_v16  ;;  %4379 = vmatprep.mubr.bf16.mxu0 %v5355_v10  ;;  %v4796_v16 = vld [vmem:[%s5448_s1 + $0x120] sm:$0xff]  }
  0xe9   : > { %4440 = vmatprep.subr.bf16.mxu1 %v4793_v1 }
  0xeb   : > { %4448 = vmatpush3.bf16.msra.mxu1 %v4793_v1  ;;  %v1563_v1 = vld [vmem:[#allocation2 + $0x208] sm:$0xff] }
  0xec   : > { %4441 = vmatprep.subr.bf16.mxu1 %v4794_v43 }
  0xee   : > { %4172 = vmatmul.mubr.bf16.gmra.mrb[4].mxu1 %v5170_v21  ;;  %v4797_v21 = vld [vmem:[%s5448_s1 + $0x128] sm:$0xff]  }
  0xef   : > { %4380 = vmatmul.mubr.bf16.gmra.mrb[20].mxu0 %v5107_v39  ;;  %4175 = vmatprep.mubr.bf16.mxu1 %v5184_v36  ;;  %v2758_v39 = vld [vmem:[#allocation2 + $0x49] sm:$0xff] }
  0xf0   : > { %4383 = vmatprep.mubr.bf16.mxu0 %v5113_v41  ;;  %4449 = vmatpush3.bf16.msra.mxu1 %v4794_v43  ;;  %v2759_v41 = vld [vmem:[#allocation2 + $0x51] sm:$0xff]  ;;  %v4798_v36 = vld [vmem:[#allocation2 + $0x8] sm:$0xff] }
  0xf1   : > { %4442 = vmatprep.subr.bf16.mxu1 %v4795_v3  ;;  %v2499_v11 = vpack.c.bf16 %v4798_v36, %v4798_v36  ;;  %v2790_v12 = vpack.c.bf16 %v2759_v41, %v2758_v39  ;;  %v2788_v43 = vld [vmem:[#allocation2 + $0x229] sm:$0xff] }
  0xf4   : > { %4450 = vmatpush3.bf16.msra.mxu1 %v4795_v3  ;;  %v2789_v3 = vld [vmem:[#allocation2 + $0x231] sm:$0xff] }
  0xf5   : > { %4443 = vmatprep.subr.bf16.mxu1 %v4796_v16  ;;  %v2805_v39 = vpack.c.bf16 %v2789_v3, %v2788_v43 }
  0xf6   : > { %4176 = vmatmul.mubr.bf16.gmra.mrb[8].mxu1 %v5188_v38  ;;  %v2762_v38 = vld [vmem:[#allocation2 + $0x89] sm:$0xff] }
  0xf7   : > { %4384 = vmatmul.mubr.bf16.gmra.mrb[24].mxu0 %v5129_v51  ;;  %4179 = vmatprep.mubr.bf16.mxu1 %v5204_v56  ;;  %v4799_v51 = vld [vmem:[%s5448_s1 + $0x130] sm:$0xff]   ;;  %v4800_v56 = vld [vmem:[%s5448_s1 + $0x138] sm:$0xff]  }
  0xf8   : > { %4387 = vmatprep.mubr.bf16.mxu0 %v2498_v48  ;;  %4451 = vmatpush3.bf16.msra.mxu1 %v4796_v16  ;;  %v2763_v48 = vld [vmem:[#allocation2 + $0x91] sm:$0xff] }
  0xf9   : > { %4444 = vmatprep.subr.bf16.mxu1 %v4797_v21  ;;  %v2792_v40 = vpack.c.bf16 %v2763_v48, %v2762_v38 }
  0xfc   : > { %4452 = vmatpush3.bf16.msra.mxu1 %v4797_v21 }
  0xfd   : > { %4445 = vmatprep.subr.bf16.mxu1 %v4799_v51 }
  0xfe   : > { %4180 = vmatmul.mubr.bf16.gmra.mrb[12].mxu1 %v5206_v58  ;;  %v2764_v58 = vld [vmem:[#allocation2 + $0xa9] sm:$0xff] }
  0xff   : > { %4388 = vmatmul.mubr.bf16.gmra.mrb[28].mxu0 %v2499_v11  ;;  %4183 = vmatprep.mubr.bf16.mxu1 %v5219_v6  ;;  %v2765_v6 = vld [vmem:[#allocation2 + $0xb1] sm:$0xff] }
 0x100   : > { %4407 = vmatprep.mubr.bf16.mxu0 %v2790_v12  ;;  %4453 = vmatpush3.bf16.msra.mxu1 %v4799_v51  ;;  %v2793_v23 = vpack.c.bf16 %v2765_v6, %v2764_v58 }
 0x101   : > { %4446 = vmatprep.subr.bf16.mxu1 %v4800_v56 }
 0x104   : > { %4454 = vmatpush3.bf16.msra.mxu1 %v4800_v56 }
 0x106   : > { %4184 = vmatmul.mubr.bf16.gmra.mrb[16].mxu1 %v5221_v7  ;;  %v2771_v7 = vld [vmem:[#allocation2 + $0x111] sm:$0xff] }
 0x107   : > { %4408 = vmatmul.mubr.bf16.vlgmr.msra.gmra.mrb[0].mxu0 %v2791_v32  ;;  %4187 = vmatprep.mubr.bf16.mxu1 %v5235_v15  ;;  %v2796_v28 = vpack.c.bf16 %v2771_v7, %v2770_v42  ;;  %v2772_v15 = vld [vmem:[#allocation2 + $0x129] sm:$0xff] }
 0x108   : > { %4411 = vmatprep.mubr.bf16.mxu0 %v2792_v40  ;;  %v2797_v35 = vpack.c.bf16 %v2773_v29, %v2772_v15 }
 0x10e   : > { %4188 = vmatmul.mubr.bf16.gmra.mrb[20].mxu1 %v5237_v22  ;;  %v2775_v22 = vld [vmem:[#allocation2 + $0x151] sm:$0xff] }
 0x10f   : > { %4412 = vmatmul.mubr.bf16.gmra.mrb[4].mxu0 %v2793_v23  ;;  %4191 = vmatprep.mubr.bf16.mxu1 %v5249_v31  ;;  %v2798_v44 = vpack.c.bf16 %v2775_v22, %v2774_v34  ;;  %v2776_v31 = vld [vmem:[#allocation2 + $0x169] sm:$0xff] }
 0x110   : > { %4415 = vmatprep.mubr.bf16.mxu0 %v2794_v0  ;;  %v2799_v2 = vpack.c.bf16 %v2777_v45, %v2776_v31 }
 0x116   : > { %4192 = vmatmul.mubr.bf16.gmra.mrb[24].mxu1 %v5251_v33  ;;  %v2779_v33 = vld [vmem:[#allocation2 + $0x191] sm:$0xff] }
 0x117   : > { %4416 = vmatmul.mubr.bf16.gmra.mrb[8].mxu0 %v2795_v52  ;;  %4195 = vmatprep.mubr.bf16.mxu1 %v5263_v49  ;;  %v2800_v46 = vpack.c.bf16 %v2779_v33, %v2778_v54  ;;  %v2780_v49 = vld [vmem:[#allocation2 + $0x1a9] sm:$0xff] }
 0x118   : > { %4419 = vmatprep.mubr.bf16.mxu0 %v2796_v28  ;;  %v2801_v57 = vpack.c.bf16 %v2781_v47, %v2780_v49 }
 0x11e   : > { %4196 = vmatmul.mubr.bf16.gmra.mrb[28].mxu1 %v5295_v62  ;;  %v1558_v62 = vld [vmem:[#allocation2 + $0x1b0] sm:$0xff] }
 0x11f   : > { %4420 = vmatmul.mubr.bf16.gmra.mrb[12].mxu0 %v2797_v35  ;;  %4231 = vmatprep.mubr.bf16.mxu1 %v5342_v61  ;;  %v1577_v4 = vpack.c.bf16 %v1558_v62, %v1557_v50  ;;  %v1561_v61 = vld [vmem:[#allocation2 + $0x1e8] sm:$0xff] }
 0x120   : > { %4423 = vmatprep.mubr.bf16.mxu0 %v2798_v44 }
 0x126   : > { %4232 = vmatmul.mubr.bf16.vlgmr.msra.gmra.mrb[16].mxu1 %v5344_v20  ;;  %v1562_v20 = vld [vmem:[#allocation2 + $0x1f0] sm:$0xff] }
 0x127   : > { %4424 = vmatmul.mubr.bf16.gmra.mrb[16].mxu0 %v2799_v2  ;;  %4235 = vmatprep.mubr.bf16.mxu1 %v5353_v9  ;;  %v1579_v5 = vpack.c.bf16 %v1562_v20, %v1561_v61  ;;  %v2804_v9 = vpack.c.bf16 %v2787_v37, %v2786_v17 }
 0x128   : > { %4427 = vmatprep.mubr.bf16.mxu0 %v2800_v46 }
 0x12e   : > { %4236 = vmatmul.mubr.bf16.gmra.mrb[20].mxu1 %v5355_v10  ;;  %v1564_v10 = vld [vmem:[#allocation2 + $0x210] sm:$0xff] }
 0x12f   : > { %4428 = vmatmul.mubr.bf16.gmra.mrb[20].mxu0 %v2801_v57  ;;  %4239 = vmatprep.mubr.bf16.mxu1 %v1577_v4  ;;  %v1580_v16 = vpack.c.bf16 %v1564_v10, %v1563_v1 }
 0x130   : > { %4431 = vmatprep.mubr.bf16.mxu0 %v2802_v19 }
 0x136   : > { %4240 = vmatmul.mubr.bf16.gmra.mrb[24].mxu1 %v1578_v30 }
 0x137   : > { %4432 = vmatmul.mubr.bf16.gmra.mrb[24].mxu0 %v2803_v63  ;;  %4243 = vmatprep.mubr.bf16.mxu1 %v1579_v5 }
 0x138   : > { %4435 = vmatprep.mubr.bf16.mxu0 %v2804_v9 }
 0x13e   : > { %4244 = vmatmul.mubr.bf16.gmra.mrb[28].mxu1 %v1580_v16 }
 0x13f   : > { %4436 = vmatmul.mubr.bf16.gmra.mrb[28].mxu0 %v2805_v39 }
 0x1b9   : > { %v4169_v41 = vpop.f32.mrb[0].mxu1 }
 0x1ba   : > { %v1374_v21 = vpop.f32.mrb[1].mxu1 }
 0x1bb   : > { %v4170_v36 = vpop.f32.mrb[2].mxu1 }
 0x1bc   : > { %v1377_v11 = vpop.f32.mrb[3].mxu1 }
 0x1c1   : > { %v4173_v12 = vpop.f32.mrb[4].mxu1 }
 0x1c2   : > { %v1390_v51 = vpop.f32.mrb[5].mxu1 }
 0x1c3   : > { %v4174_v26 = vpop.f32.mrb[6].mxu1 }
 0x1c4   : > { %v1393_v27 = vpop.f32.mrb[7].mxu1 }
 0x1c9   : > { %v4177_v38 = vpop.f32.mrb[8].mxu1 }
 0x1ca   : > { %v1406_v48 = vpop.f32.mrb[9].mxu1 }
 0x1cb   : > { %v4178_v56 = vpop.f32.mrb[10].mxu1 }
 0x1cc   : > { %v1409_v32 = vpop.f32.mrb[11].mxu1 }
 0x1d1   : > { %v5406_v40 = vpop.f32.mrb[12].mxu1 }
 0x1d2   : > { %v5408_v58 = vpop.f32.mrb[13].mxu1 }
 0x1d3   : > { %v5410_v6 = vpop.f32.mrb[14].mxu1 }
 0x1d4   : > { %v5412_v13 = vpop.f32.mrb[15].mxu1 }
 0x1da   : > { %v4409_v14 = vpop.f32.mrb[0].mxu0 }
 0x1db   : > { %v4455_v23 = vadd.f32 %v4409_v14, %v4169_v41  ;;  %v2905_v0 = vpop.f32.mrb[1].mxu0 }
 0x1dc   : > { %v4456_v24 = vadd.f32 %v2905_v0, %v1374_v21  ;;  %v4410_v25 = vpop.f32.mrb[2].mxu0 }
 0x1dd   : > { %v4457_v42 = vadd.f32 %v4410_v25, %v4170_v36  ;;  %v2908_v7 = vpop.f32.mrb[3].mxu0  ;;  %v3104_v35 = vmul.f32 %v4455_v23, %v4455_v23 }
 0x1de   : > { %v4458_v52 = vadd.f32 %v2908_v7, %v1377_v11  ;;  %v3102_v15 = vmul.f32 %v4456_v24, %v4456_v24 }
 0x1df   : > { %v3704_v28 = vpack.c.bf16 %v4457_v42, %v4455_v23  ;;  %v3105_v2 = vmul.f32 %v4457_v42, %v4457_v42 }
 0x1e0   : > { %v3064_v29 = vadd.f32 %v4458_v52, %v4456_v24  ;;  %v3103_v34 = vmul.f32 %v4458_v52, %v4458_v52  ;;  %v3699_v22 = vpack.c.bf16 %v4458_v52, %v4456_v24 }
 0x1e1   : > { %3776 = vst [vmem:[%s5418_s11 + $0x8] sm:$0xff] %v3704_v28  }
 0x1e2   : > { %v3065_v44 = vadd.f32 %v4455_v23, %v3064_v29  ;;  %v3134_v31 = vadd.f32 %v3103_v34, %v3102_v15  ;;  %3700 = vst [vmem:[%s5418_s11] sm:$0xff] %v3699_v22   ;;  %v4413_v45 = vpop.f32.mrb[4].mxu0 }
 0x1e3   : > { %v4459_v54 = vadd.f32 %v4413_v45, %v4173_v12  ;;  %v2921_v33 = vpop.f32.mrb[5].mxu0 }
 0x1e4   : > { %v3135_v46 = vadd.f32 %v3134_v31, %v3104_v35  ;;  %v4460_v49 = vadd.f32 %v2921_v33, %v1390_v51  ;;  %v3066_v47 = vadd.f32 %v4457_v42, %v3065_v44  ;;  %v4414_v50 = vpop.f32.mrb[6].mxu0 }
 0x1e5   : > { %v4461_v62 = vadd.f32 %v4414_v50, %v4174_v26  ;;  %v2924_v53 = vpop.f32.mrb[7].mxu0  ;;  %v3108_v20 = vmul.f32 %v4459_v54, %v4459_v54 }
 0x1e6   : > { %v3067_v55 = vadd.f32 %v4460_v49, %v3066_v47  ;;  %v3106_v57 = vmul.f32 %v4460_v49, %v4460_v49  ;;  %v3136_v4 = vadd.f32 %v3135_v46, %v3105_v2  ;;  %v4462_v19 = vadd.f32 %v2924_v53, %v1393_v27 }
 0x1e7   : > { %v3714_v59 = vpack.c.bf16 %v4461_v62, %v4459_v54  ;;  %v3109_v9 = vmul.f32 %v4461_v62, %v4461_v62 }
 0x1e8   : > { %v3137_v60 = vadd.f32 %v3136_v4, %v3106_v57  ;;  %v3068_v8 = vadd.f32 %v4462_v19, %v3067_v55  ;;  %v3107_v18 = vmul.f32 %v4462_v19, %v4462_v19  ;;  %v3709_v61 = vpack.c.bf16 %v4462_v19, %v4460_v49 }
 0x1e9   : > { %3778 = vst [vmem:[%s5418_s11 + $0x18] sm:$0xff] %v3714_v59  }
 0x1ea   : > { %v3069_v17 = vadd.f32 %v4459_v54, %v3068_v8  ;;  %v3138_v37 = vadd.f32 %v3137_v60, %v3107_v18  ;;  %3777 = vst [vmem:[%s5418_s11 + $0x10] sm:$0xff] %v3709_v61   ;;  %v4417_v30 = vpop.f32.mrb[8].mxu0 }
 0x1eb   : > { %v4463_v63 = vadd.f32 %v4417_v30, %v4177_v38  ;;  %v2937_v5 = vpop.f32.mrb[9].mxu0 }
 0x1ec   : > { %v3139_v1 = vadd.f32 %v3138_v37, %v3108_v20  ;;  %v4464_v10 = vadd.f32 %v2937_v5, %v1406_v48  ;;  %v3070_v43 = vadd.f32 %v4461_v62, %v3069_v17  ;;  %v4418_v3 = vpop.f32.mrb[10].mxu0 }
 0x1ed   : > { %v4465_v16 = vadd.f32 %v4418_v3, %v4178_v56  ;;  %v2940_v39 = vpop.f32.mrb[11].mxu0  ;;  %v3112_v38 = vmul.f32 %v4463_v63, %v4463_v63 }
 0x1ee   : > { %v3071_v41 = vadd.f32 %v4464_v10, %v3070_v43  ;;  %v3110_v21 = vmul.f32 %v4464_v10, %v4464_v10  ;;  %v3140_v36 = vadd.f32 %v3139_v1, %v3109_v9  ;;  %v4466_v11 = vadd.f32 %v2940_v39, %v1409_v32 }
 0x1ef   : > { %v3724_v12 = vpack.c.bf16 %v4465_v16, %v4463_v63  ;;  %v3113_v56 = vmul.f32 %v4465_v16, %v4465_v16 }
 0x1f0   : > { %v3141_v51 = vadd.f32 %v3140_v36, %v3110_v21  ;;  %v3072_v26 = vadd.f32 %v4466_v11, %v3071_v41  ;;  %v3111_v27 = vmul.f32 %v4466_v11, %v4466_v11  ;;  %v3719_v14 = vpack.c.bf16 %v4466_v11, %v4464_v10 }
 0x1f1   : > { %3780 = vst [vmem:[%s5418_s11 + $0x28] sm:$0xff] %v3724_v12  }
 0x1f2   : > { %v3073_v23 = vadd.f32 %v4463_v63, %v3072_v26  ;;  %v3142_v0 = vadd.f32 %v3141_v51, %v3111_v27  ;;  %3779 = vst [vmem:[%s5418_s11 + $0x20] sm:$0xff] %v3719_v14   ;;  %v4421_v48 = vpop.f32.mrb[12].mxu0 }
 0x1f3   : > { %v4467_v24 = vadd.f32 %v4421_v48, %v5406_v40  ;;  %v2953_v25 = vpop.f32.mrb[13].mxu0 }
 0x1f4   : > { %v3143_v42 = vadd.f32 %v3142_v0, %v3112_v38  ;;  %v4468_v7 = vadd.f32 %v2953_v25, %v5408_v58  ;;  %v3074_v32 = vadd.f32 %v4465_v16, %v3073_v23  ;;  %v4422_v52 = vpop.f32.mrb[14].mxu0 }
 0x1f5   : > { %v4469_v28 = vadd.f32 %v4422_v52, %v5410_v6  ;;  %v2956_v15 = vpop.f32.mrb[15].mxu0  ;;  %v3116_v2 = vmul.f32 %v4467_v24, %v4467_v24 }
 0x1f6   : > { %v3075_v29 = vadd.f32 %v4468_v7, %v3074_v32  ;;  %v3114_v34 = vmul.f32 %v4468_v7, %v4468_v7  ;;  %v3144_v22 = vadd.f32 %v3143_v42, %v3113_v56  ;;  %v4470_v35 = vadd.f32 %v2956_v15, %v5412_v13 }
 0x1f7   : > { %v3734_v44 = vpack.c.bf16 %v4469_v28, %v4467_v24  ;;  %v3117_v53 = vmul.f32 %v4469_v28, %v4469_v28 }
 0x1f8   : > { %v3145_v31 = vadd.f32 %v3144_v22, %v3114_v34  ;;  %v3076_v40 = vadd.f32 %v4470_v35, %v3075_v29  ;;  %v3115_v45 = vmul.f32 %v4470_v35, %v4470_v35  ;;  %v3729_v54 = vpack.c.bf16 %v4470_v35, %v4468_v7 }
 0x1f9   : > { %3782 = vst [vmem:[%s5418_s11 + $0x38] sm:$0xff] %v3734_v44   ;;  %v4233_v33 = vpop.f32.mrb[16].mxu1 }
 0x1fa   : > { %v3077_v58 = vadd.f32 %v4467_v24, %v3076_v40  ;;  %v3146_v46 = vadd.f32 %v3145_v31, %v3115_v45  ;;  %3781 = vst [vmem:[%s5418_s11 + $0x30] sm:$0xff] %v3729_v54   ;;  %v4425_v49 = vpop.f32.mrb[16].mxu0  ;;  %v1744_v6 = vpop.f32.mrb[17].mxu1 }
 0x1fb   : > { %v4471_v47 = vadd.f32 %v4425_v49, %v4233_v33  ;;  %v2969_v50 = vpop.f32.mrb[17].mxu0  ;;  %v4234_v62 = vpop.f32.mrb[18].mxu1 }
 0x1fc   : > { %v3147_v55 = vadd.f32 %v3146_v46, %v3116_v2  ;;  %v4472_v13 = vadd.f32 %v2969_v50, %v1744_v6  ;;  %v3078_v57 = vadd.f32 %v4469_v28, %v3077_v58  ;;  %v4426_v4 = vpop.f32.mrb[18].mxu0  ;;  %v1747_v19 = vpop.f32.mrb[19].mxu1 }
 0x1fd   : > { %v4473_v59 = vadd.f32 %v4426_v4, %v4234_v62  ;;  %v2972_v60 = vpop.f32.mrb[19].mxu0  ;;  %v3120_v1 = vmul.f32 %v4471_v47, %v4471_v47 }
 0x1fe   : > { %v3079_v8 = vadd.f32 %v4472_v13, %v3078_v57  ;;  %v3118_v18 = vmul.f32 %v4472_v13, %v4472_v13  ;;  %v3148_v61 = vadd.f32 %v3147_v55, %v3117_v53  ;;  %v4474_v20 = vadd.f32 %v2972_v60, %v1747_v19 }
 0x1ff   : > { %v3744_v17 = vpack.c.bf16 %v4473_v59, %v4471_v47  ;;  %v3121_v36 = vmul.f32 %v4473_v59, %v4473_v59 }
 0x200   : > { %v3149_v37 = vadd.f32 %v3148_v61, %v3118_v18  ;;  %v3080_v30 = vadd.f32 %v4474_v20, %v3079_v8  ;;  %v3119_v63 = vmul.f32 %v4474_v20, %v4474_v20  ;;  %v3739_v5 = vpack.c.bf16 %v4474_v20, %v4472_v13 }
 0x201   : > { %3784 = vst [vmem:[%s5418_s11 + $0x48] sm:$0xff] %v3744_v17   ;;  %v4237_v9 = vpop.f32.mrb[20].mxu1 }
 0x202   : > { %v3081_v10 = vadd.f32 %v4471_v47, %v3080_v30  ;;  %v3150_v43 = vadd.f32 %v3149_v37, %v3119_v63  ;;  %3783 = vst [vmem:[%s5418_s11 + $0x40] sm:$0xff] %v3739_v5   ;;  %v4429_v3 = vpop.f32.mrb[20].mxu0  ;;  %v1760_v16 = vpop.f32.mrb[21].mxu1 }
 0x203   : > { %v4475_v39 = vadd.f32 %v4429_v3, %v4237_v9  ;;  %v2985_v41 = vpop.f32.mrb[21].mxu0  ;;  %v4238_v21 = vpop.f32.mrb[22].mxu1 }
 0x204   : > { %v3151_v11 = vadd.f32 %v3150_v43, %v3120_v1  ;;  %v4476_v12 = vadd.f32 %v2985_v41, %v1760_v16  ;;  %v3082_v51 = vadd.f32 %v4473_v59, %v3081_v10  ;;  %v4430_v26 = vpop.f32.mrb[22].mxu0  ;;  %v1763_v27 = vpop.f32.mrb[23].mxu1 }
 0x205   : > { %v4477_v14 = vadd.f32 %v4430_v26, %v4238_v21  ;;  %v2988_v38 = vpop.f32.mrb[23].mxu0  ;;  %v3124_v28 = vmul.f32 %v4475_v39, %v4475_v39 }
 0x206   : > { %v3083_v23 = vadd.f32 %v4476_v12, %v3082_v51  ;;  %v3122_v0 = vmul.f32 %v4476_v12, %v4476_v12  ;;  %v3152_v48 = vadd.f32 %v3151_v11, %v3121_v36  ;;  %v4478_v24 = vadd.f32 %v2988_v38, %v1763_v27 }
 0x207   : > { %v3754_v25 = vpack.c.bf16 %v4477_v14, %v4475_v39  ;;  %v3125_v40 = vmul.f32 %v4477_v14, %v4477_v14 }
 0x208   : > { %v3153_v56 = vadd.f32 %v3152_v48, %v3122_v0  ;;  %v3084_v42 = vadd.f32 %v4478_v24, %v3083_v23  ;;  %v3123_v7 = vmul.f32 %v4478_v24, %v4478_v24  ;;  %v3749_v32 = vpack.c.bf16 %v4478_v24, %v4476_v12 }
 0x209   : > { %3786 = vst [vmem:[%s5418_s11 + $0x58] sm:$0xff] %v3754_v25   ;;  %v4241_v52 = vpop.f32.mrb[24].mxu1 }
 0x20a   : > { %v3085_v15 = vadd.f32 %v4475_v39, %v3084_v42  ;;  %v3154_v29 = vadd.f32 %v3153_v56, %v3123_v7  ;;  %3785 = vst [vmem:[%s5418_s11 + $0x50] sm:$0xff] %v3749_v32   ;;  %v4433_v34 = vpop.f32.mrb[24].mxu0  ;;  %v1776_v22 = vpop.f32.mrb[25].mxu1 }
 0x20b   : > { %v4479_v35 = vadd.f32 %v4433_v34, %v4241_v52  ;;  %v3001_v44 = vpop.f32.mrb[25].mxu0  ;;  %v4242_v31 = vpop.f32.mrb[26].mxu1 }
 0x20c   : > { %v3155_v45 = vadd.f32 %v3154_v29, %v3124_v28  ;;  %v4480_v54 = vadd.f32 %v3001_v44, %v1776_v22  ;;  %v3086_v33 = vadd.f32 %v4477_v14, %v3085_v15  ;;  %v4434_v2 = vpop.f32.mrb[26].mxu0  ;;  %v1779_v58 = vpop.f32.mrb[27].mxu1 }
 0x20d   : > { %v4481_v46 = vadd.f32 %v4434_v2, %v4242_v31  ;;  %v3004_v49 = vpop.f32.mrb[27].mxu0  ;;  %v3128_v59 = vmul.f32 %v4479_v35, %v4479_v35 }
 0x20e   : > { %v3087_v6 = vadd.f32 %v4480_v54, %v3086_v33  ;;  %v3126_v47 = vmul.f32 %v4480_v54, %v4480_v54  ;;  %v3156_v50 = vadd.f32 %v3155_v45, %v3125_v40  ;;  %v4482_v62 = vadd.f32 %v3004_v49, %v1779_v58 }
 0x20f   : > { %v3764_v53 = vpack.c.bf16 %v4481_v46, %v4479_v35  ;;  %v3129_v30 = vmul.f32 %v4481_v46, %v4481_v46 }
 0x210   : > { %v3157_v55 = vadd.f32 %v3156_v50, %v3126_v47  ;;  %v3088_v13 = vadd.f32 %v4482_v62, %v3087_v6  ;;  %v3127_v57 = vmul.f32 %v4482_v62, %v4482_v62  ;;  %v3759_v4 = vpack.c.bf16 %v4482_v62, %v4480_v54 }
 0x211   : > { %3788 = vst [vmem:[%s5418_s11 + $0x68] sm:$0xff] %v3764_v53   ;;  %v4245_v19 = vpop.f32.mrb[28].mxu1 }
 0x212   : > { %v3089_v60 = vadd.f32 %v4479_v35, %v3088_v13  ;;  %v3158_v8 = vadd.f32 %v3157_v55, %v3127_v57  ;;  %3787 = vst [vmem:[%s5418_s11 + $0x60] sm:$0xff] %v3759_v4   ;;  %v4437_v18 = vpop.f32.mrb[28].mxu0  ;;  %v1792_v61 = vpop.f32.mrb[29].mxu1 }
 0x213   : > { %v4483_v20 = vadd.f32 %v4437_v18, %v4245_v19  ;;  %v3017_v17 = vpop.f32.mrb[29].mxu0  ;;  %v4246_v37 = vpop.f32.mrb[30].mxu1 }
 0x214   : > { %v3159_v63 = vadd.f32 %v3158_v8, %v3128_v59  ;;  %v4484_v5 = vadd.f32 %v3017_v17, %v1792_v61  ;;  %v3090_v9 = vadd.f32 %v4481_v46, %v3089_v60  ;;  %v4438_v1 = vpop.f32.mrb[30].mxu0  ;;  %v1795_v10 = vpop.f32.mrb[31].mxu1 }
 0x215   : > { %v4485_v43 = vadd.f32 %v4438_v1, %v4246_v37  ;;  %v3020_v3 = vpop.f32.mrb[31].mxu0  ;;  %v3132_v27 = vmul.f32 %v4483_v20, %v4483_v20 }
 0x216   : > { %v3091_v16 = vadd.f32 %v4484_v5, %v3090_v9  ;;  %v3130_v39 = vmul.f32 %v4484_v5, %v4484_v5  ;;  %v3160_v41 = vadd.f32 %v3159_v63, %v3129_v30  ;;  %v4486_v21 = vadd.f32 %v3020_v3, %v1795_v10 }
 0x217   : > { %v3774_v36 = vpack.c.bf16 %v4485_v43, %v4483_v20  ;;  %v3133_v23 = vmul.f32 %v4485_v43, %v4485_v43 }
 0x218   : > { %v3161_v11 = vadd.f32 %v3160_v41, %v3130_v39  ;;  %v3092_v12 = vadd.f32 %v4486_v21, %v3091_v16  ;;  %v3131_v51 = vmul.f32 %v4486_v21, %v4486_v21  ;;  %v3769_v26 = vpack.c.bf16 %v4486_v21, %v4484_v5 }
 0x219   : > { %3790 = vst [vmem:[%s5418_s11 + $0x78] sm:$0xff] %v3774_v36  }
 0x21a   : > { %v3093_v14 = vadd.f32 %v4483_v20, %v3092_v12  ;;  %v3162_v38 = vadd.f32 %v3161_v11, %v3131_v51  ;;  %3789 = vst [vmem:[%s5418_s11 + $0x70] sm:$0xff] %v3769_v26  }
 0x21c   : > { %v3094_v0 = vadd.f32 %v4485_v43, %v3093_v14  ;;  %v3163_v48 = vadd.f32 %v3162_v38, %v3132_v27 }
 0x21e   : > { %v3095_v24 = vrot.slane %v3094_v0, 4  ;;  %v3164_v25 = vadd.f32 %v3163_v48, %v3133_v23 }
 0x220   : > { %v3096_v56 = vadd.f32 %v3095_v24, %v3094_v0  ;;  %v3165_v42 = vrot.slane %v3164_v25, 4 }
 0x222   : > { %v3097_v7 = vrot.slane %v3096_v56, 2  ;;  %v3166_v32 = vadd.f32 %v3165_v42, %v3164_v25 }
 0x224   : > { %v3098_v52 = vadd.f32 %v3097_v7, %v3096_v56  ;;  %v3167_v28 = vrot.slane %v3166_v32, 2 }
 0x226   : > { %v3099_v15 = vrot.slane %v3098_v52, 1  ;;  %v3168_v29 = vadd.f32 %v3167_v28, %v3166_v32 }
 0x228   : > { %v3100_v34 = vadd.f32 %v3099_v15, %v3098_v52  ;;  %v3169_v22 = vrot.slane %v3168_v29, 1 }
 0x22a   : > { %3101 = vst [vmem:[%s235_s15] sm:$0x1] %v3100_v34  ;;  %v3170_v35 = vadd.f32 %v3169_v22, %v3168_v29 }
 0x22c   : > { %3171 = vst [vmem:[%s235_s15 + $0x1] sm:$0x1] %v3170_v35 }
 0x22d PF: > { %s16_s18 = sadd.s32 1, %s4807_s18  }
 0x22e   : > { %p13_p4 = scmp.ge.s32.totalorder %s16_s18, 4  }
 0x230   :  { %15 = sbr.rel (!%p13_p4) target bundleno = 1 (0x1), region = 88 }

// kernel: decoder_block_forward.4
= control target key start
LH: loop header
LB: loop body
LE: loop exit
PB: predicated region body
PF: predicated region fallthrough
CT: control target
= control target key end

     0   :  { %s5064_s18 = smov 0   ;;  %s5814_s0 = inlined_call_operand.vmem [shape: bf16[2,16,16,128], index: 0, kind: input, shape index: {}]   ;;  %s5815_s1 = inlined_call_operand.vmem [shape: bf16[9,128,128], index: 1, kind: input, shape index: {}]   ;;  %s5816_s2 = inlined_call_operand.vmem [shape: f32[1,128], index: 2, kind: input, shape index: {}]   ;;  %s5817_s3 = inlined_call_operand.vmem [shape: f32[1,128], index: 3, kind: input, shape index: {}]   ;;  %s5818_s4 = inlined_call_operand.vmem [shape: bf16[2,16,16,128], index: 4, kind: output, shape index: {0}]   ;;  %s5819_s5 = inlined_call_operand.vmem [shape: f32[2,2,128], index: 5, kind: output, shape index: {1}]  }
   0x1 LB: > { %s3560_s19 = sadd.s32 4294967295, %s5030_s18   ;;  %p3564_p0 = scmp.ge.s32.totalorder %s5030_s18, 1  ;;  %s5030_s18 = sphi %s5064_s18, %s16_s18  }
   0x2   : > { %p190_p1 = scmp.lt.s32.totalorder %s5030_s18, 3 }
   0x4   : > { %p191_p2 = pnand %p3564_p0, %p190_p1 }
   0x5   : > { %v4943_v0 = vld [vmem:[%s5815_s1 + $0x40] sm:$0xff] (!%p191_p2)   ;;  %v5032_v2 = vmov (!%p191_p2), 0.0   ;;  %v4945_v3 = vld [vmem:[%s5815_s1 + $0x48] sm:$0xff] (!%p191_p2)   ;;  %p222_p3 = scmp.lt.s32.totalorder (!%p191_p2), %s3560_s19, 1  ;;  %v4947_v5 = vld [vmem:[%s5815_s1 + $0x50] sm:$0xff] (!%p191_p2)   ;;  %v5033_v7 = vmov (!%p191_p2), 0.0|0.0  }
   0x6   : > { %194 = sbr.rel (%p191_p2) target bundleno = 557 (0x22d), region = 36  ;;  %v4944_v1 = vld [vmem:[%s5815_s1 + $0x100] sm:$0xff] (!%p191_p2)   ;;  %412 = vst [vmem:[#allocation2 + $0x8] sm:$0xff] (!%p191_p2), %v5032_v2  ;;  %413 = vst [vmem:[#allocation2 + $0x10] sm:$0xff] (!%p191_p2), %v5032_v2  ;;  %4230 = vmatprep.subr.bf16.mxu1 (!%p191_p2), %v4943_v0  ;;  %v4946_v4 = vld [vmem:[%s5815_s1 + $0x108] sm:$0xff] (!%p191_p2)   ;;  %4246 = vmatprep.mubr.bf16.mxu1 (!%p191_p2), %v5033_v7 }
   0x7   : > { %411 = vst [vmem:[#allocation2] sm:$0xff] (!%p191_p2), %v5032_v2  ;;  %414 = vst [vmem:[#allocation2 + $0x18] sm:$0x1] (!%p191_p2), %v5032_v2  ;;  %4422 = vmatprep.subr.bf16.mxu0 (!%p191_p2), %v4944_v1  ;;  %4231 = vmatpush3.bf16.msra.mxu1 (!%p191_p2), %v4943_v0  ;;  %v4948_v6 = vld [vmem:[%s5815_s1 + $0x110] sm:$0xff] (!%p191_p2)   ;;  %v4949_v8 = vld [vmem:[%s5815_s1 + $0x58] sm:$0xff] (!%p191_p2)  }
   0x8   : > { %415 = vst [vmem:[#allocation2 + $0x20] sm:$0xff] (!%p191_p2), %v5032_v2  ;;  %418 = vst [vmem:[#allocation2 + $0x38] sm:$0x1] (!%p191_p2), %v5032_v2  ;;  %4423 = vmatpush3.bf16.msra.mxu0 (!%p191_p2), %v4944_v1  ;;  %4232 = vmatprep.subr.bf16.mxu1 (!%p191_p2), %v4945_v3  ;;  %v4950_v9 = vld [vmem:[%s5815_s1 + $0x118] sm:$0xff] (!%p191_p2)   ;;  %v4951_v10 = vld [vmem:[%s5815_s1 + $0x60] sm:$0xff] (!%p191_p2)  }
   0x9   : > { %419 = vst [vmem:[#allocation2 + $0x40] sm:$0xff] (!%p191_p2), %v5032_v2  ;;  %422 = vst [vmem:[#allocation2 + $0x58] sm:$0x1] (!%p191_p2), %v5032_v2  ;;  %4424 = vmatprep.subr.bf16.mxu0 (!%p191_p2), %v4946_v4  ;;  %v4952_v11 = vld [vmem:[%s5815_s1 + $0x120] sm:$0xff] (!%p191_p2)   ;;  %v4953_v12 = vld [vmem:[%s5815_s1 + $0x68] sm:$0xff] (!%p191_p2)  }
   0xa   : > { %423 = vst [vmem:[#allocation2 + $0x60] sm:$0xff] (!%p191_p2), %v5032_v2  ;;  %426 = vst [vmem:[#allocation2 + $0x78] sm:$0x1] (!%p191_p2), %v5032_v2  ;;  %v4954_v13 = vld [vmem:[%s5815_s1 + $0x128] sm:$0xff] (!%p191_p2)   ;;  %v5126_v15 = vld [vmem:[%s5816_s2] ss:$0 sm:$0xff] (!%p191_p2) }
   0xb   : > { %427 = vst [vmem:[#allocation2 + $0x80] sm:$0xff] (!%p191_p2), %v5032_v2  ;;  %430 = vst [vmem:[#allocation2 + $0x98] sm:$0x1] (!%p191_p2), %v5032_v2  ;;  %4233 = vmatpush3.bf16.msra.mxu1 (!%p191_p2), %v4945_v3  ;;  %v5131_v18 = vld [vmem:[%s5817_s3] ss:$0 sm:$0xff] (!%p191_p2)  ;;  %v4955_v24 = vld [vmem:[%s5815_s1 + $0x70] sm:$0xff] (!%p191_p2)  }
   0xc   : > { %431 = vst [vmem:[#allocation2 + $0xa0] sm:$0xff] (!%p191_p2), %v5032_v2  ;;  %434 = vst [vmem:[#allocation2 + $0xb8] sm:$0x1] (!%p191_p2), %v5032_v2  ;;  %4425 = vmatpush3.bf16.msra.mxu0 (!%p191_p2), %v4946_v4  ;;  %4234 = vmatprep.subr.bf16.mxu1 (!%p191_p2), %v4947_v5  ;;  %v4956_v26 = vld [vmem:[%s5815_s1 + $0x130] sm:$0xff] (!%p191_p2)   ;;  %v4957_v40 = vld [vmem:[%s5815_s1 + $0x78] sm:$0xff] (!%p191_p2)  }
   0xd   : > { %435 = vst [vmem:[#allocation2 + $0xc0] sm:$0xff] %v5032_v2  ;;  %438 = vst [vmem:[#allocation2 + $0xd8] sm:$0x1] %v5032_v2  ;;  %s5821_s19 = smov (!%p222_p3, %s3560_s19), 1  ;;  %4426 = vmatprep.subr.bf16.mxu0 %v4948_v6  ;;  %v4958_v45 = vld [vmem:[%s5815_s1 + $0x138] sm:$0xff]   ;;  %v4959_v55 = vld [vmem:[%s5815_s1] sm:$0xff]  }
   0xe   : > { %439 = vst [vmem:[#allocation2 + $0xe0] sm:$0xff] %v5032_v2  ;;  %442 = vst [vmem:[#allocation2 + $0xf8] sm:$0x1] %v5032_v2  ;;  %s3806_s11 = sshll.u32 %s5821_s19, 7  ;;  %v4960_v0 = vld [vmem:[%s5815_s1 + $0x140] sm:$0xff]  }
   0xf   : > { %443 = vst [vmem:[#allocation2 + $0x100] sm:$0xff] %v5032_v2  ;;  %446 = vst [vmem:[#allocation2 + $0x118] sm:$0x1] %v5032_v2  ;;  %4235 = vmatpush3.bf16.msra.mxu1 %v4947_v5  ;;  %s5114_s20 = scalar_lea.vmem %s5814_s0, %s3806_s11  ;;  %s5785_s12 = scalar_lea.vmem %s5818_s4, %s3806_s11 }
  0x10   : > { %447 = vst [vmem:[#allocation2 + $0x120] sm:$0xff] %v5032_v2  ;;  %450 = vst [vmem:[#allocation2 + $0x138] sm:$0x1] %v5032_v2  ;;  %4427 = vmatpush3.bf16.msra.mxu0 %v4948_v6  ;;  %4236 = vmatprep.subr.bf16.mxu1 %v4949_v8  ;;  %v3841_v14 = vld [vmem:[%s5114_s20] sm:$0xff]   ;;  %v3984_v19 = vld [vmem:[%s5114_s20 + $0x8] sm:$0xff]   ;;  %s3569_s11 = sshll.u32 %s5821_s19, 1 }
  0x11   : > { %451 = vst [vmem:[#allocation2 + $0x140] sm:$0xff] %v5032_v2  ;;  %454 = vst [vmem:[#allocation2 + $0x158] sm:$0x1] %v5032_v2  ;;  %4428 = vmatprep.subr.bf16.mxu0 %v4950_v9  ;;  %v3842_v16 = vunpack.c.l.bf16 %v3841_v14  ;;  %v3843_v17 = vunpack.c.h.bf16 %v3841_v14  ;;  %v3846_v22 = vunpack.c.l.bf16 %v3984_v19  ;;  %v3847_v23 = vunpack.c.h.bf16 %v3984_v19  ;;  %v3985_v25 = vld [vmem:[%s5114_s20 + $0x10] sm:$0xff]   ;;  %v3986_v31 = vld [vmem:[%s5114_s20 + $0x18] sm:$0xff]   ;;  %s235_s15 = scalar_lea.vmem %s5819_s5, %s3569_s11 }
  0x12   : > { %455 = vst [vmem:[#allocation2 + $0x160] sm:$0xff] %v5032_v2  ;;  %458 = vst [vmem:[#allocation2 + $0x178] sm:$0x1] %v5032_v2  ;;  %v3850_v32 = vunpack.c.l.bf16 %v3985_v25  ;;  %v3851_v33 = vunpack.c.h.bf16 %v3985_v25  ;;  %v3854_v34 = vunpack.c.l.bf16 %v3986_v31  ;;  %v3855_v35 = vunpack.c.h.bf16 %v3986_v31  ;;  %v3987_v44 = vld [vmem:[%s5114_s20 + $0x20] sm:$0xff]   ;;  %v3988_v50 = vld [vmem:[%s5114_s20 + $0x28] sm:$0xff]  }
  0x13   : > { %459 = vst [vmem:[#allocation2 + $0x180] sm:$0xff] %v5032_v2  ;;  %462 = vst [vmem:[#allocation2 + $0x198] sm:$0x1] %v5032_v2  ;;  %4237 = vmatpush3.bf16.msra.mxu1 %v4949_v8  ;;  %v308_v20 = vmul.f32 %v3842_v16, %v5126_v15  ;;  %v309_v21 = vmul.f32 %v3843_v17, %v5126_v15  ;;  %v310_v29 = vmul.f32 %v3846_v22, %v5126_v15  ;;  %v3989_v63 = vld [vmem:[%s5114_s20 + $0x30] sm:$0xff]   ;;  %v3990_v5 = vld [vmem:[%s5114_s20 + $0x38] sm:$0xff]  }
  0x14   : > { %463 = vst [vmem:[#allocation2 + $0x1a0] sm:$0xff] %v5032_v2  ;;  %466 = vst [vmem:[#allocation2 + $0x1b8] sm:$0x1] %v5032_v2  ;;  %4429 = vmatpush3.bf16.msra.mxu0 %v4950_v9  ;;  %4238 = vmatprep.subr.bf16.mxu1 %v4951_v10  ;;  %v311_v30 = vmul.f32 %v3847_v23, %v5126_v15  ;;  %v312_v41 = vmul.f32 %v3850_v32, %v5126_v15  ;;  %v3858_v54 = vunpack.c.l.bf16 %v3987_v44  ;;  %v4961_v14 = vld [vmem:[%s5815_s1 + $0x148] sm:$0xff]  }
  0x15   : > { %467 = vst [vmem:[#allocation2 + $0x1c0] sm:$0xff] %v5032_v2  ;;  %470 = vst [vmem:[#allocation2 + $0x1d8] sm:$0x1] %v5032_v2  ;;  %4430 = vmatprep.subr.bf16.mxu0 %v4952_v11  ;;  %v347_v27 = vadd.f32 %v5131_v18, %v308_v20  ;;  %v348_v28 = vadd.f32 %v5131_v18, %v309_v21  ;;  %v349_v38 = vadd.f32 %v5131_v18, %v310_v29  ;;  %v3991_v21 = vld [vmem:[%s5114_s20 + $0x40] sm:$0xff]  }
  0x16   : > { %471 = vst [vmem:[#allocation2 + $0x1e0] sm:$0xff] %v5032_v2  ;;  %474 = vst [vmem:[#allocation2 + $0x1f8] sm:$0x1] %v5032_v2  ;;  %v350_v39 = vadd.f32 %v5131_v18, %v311_v30  ;;  %v313_v42 = vmul.f32 %v3851_v33, %v5126_v15  ;;  %v314_v43 = vmul.f32 %v3854_v34, %v5126_v15  ;;  %v3859_v57 = vunpack.c.h.bf16 %v3987_v44  ;;  %v4965_v33 = vld [vmem:[%s5815_s1 + $0x10] sm:$0xff]  }
  0x17   : > { %475 = vst [vmem:[#allocation2 + $0x200] sm:$0xff] %v5032_v2  ;;  %478 = vst [vmem:[#allocation2 + $0x218] sm:$0x1] %v5032_v2  ;;  %4239 = vmatpush3.bf16.msra.mxu1 %v4951_v10  ;;  %v379_v36 = vmax.f32 %v347_v27, 0.0  ;;  %v380_v37 = vmax.f32 %v348_v28, 0.0  ;;  %v381_v47 = vmax.f32 %v349_v38, 0.0  ;;  %v315_v49 = vmul.f32 %v3855_v35, %v5126_v15 }
  0x18   : > { %479 = vst [vmem:[#allocation2 + $0x220] sm:$0xff] %v5032_v2  ;;  %480 = vst [vmem:[#allocation2 + $0x228] sm:$0xff] %v5032_v2  ;;  %4431 = vmatpush3.bf16.msra.mxu0 %v4952_v11  ;;  %4240 = vmatprep.subr.bf16.mxu1 %v4953_v12  ;;  %v382_v48 = vmax.f32 %v350_v39, 0.0  ;;  %v351_v51 = vadd.f32 %v5131_v18, %v312_v41  ;;  %v352_v52 = vadd.f32 %v5131_v18, %v313_v42  ;;  %v3992_v38 = vld [vmem:[%s5114_s20 + $0x48] sm:$0xff]   ;;  %v4963_v39 = vld [vmem:[%s5815_s1 + $0x150] sm:$0xff]  }
  0x19   : > { %481 = vst [vmem:[#allocation2 + $0x230] sm:$0xff] %v5032_v2  ;;  %482 = vst [vmem:[#allocation2 + $0x238] sm:$0x1] %v5032_v2  ;;  %4432 = vmatprep.subr.bf16.mxu0 %v4954_v13  ;;  %v1707_v46 = vpack.c.bf16 %v380_v37, %v379_v36  ;;  %v5165_v53 = vadd.f32 %v5131_v18, %v314_v43  ;;  %v5171_v56 = vadd.f32 %v5131_v18, %v315_v49  ;;  %v3993_v43 = vld [vmem:[%s5114_s20 + $0x50] sm:$0xff]  }
  0x1a   : > { %484 = vst [vmem:[#allocation2 + $0x28] sm:$0xff] %v379_v36  ;;  %485 = vst [vmem:[#allocation2 + $0x30] sm:$0xff] %v380_v37  ;;  %v3862_v58 = vunpack.c.l.bf16 %v3988_v50  ;;  %v383_v59 = vmax.f32 %v351_v51, 0.0  ;;  %v384_v60 = vmax.f32 %v352_v52, 0.0  ;;  %v316_v62 = vmul.f32 %v3858_v54, %v5126_v15  ;;  %v4964_v51 = vld [vmem:[%s5815_s1 + $0x158] sm:$0xff]  }
  0x1b   : > { %4241 = vmatpush3.bf16.msra.mxu1 %v4953_v12  ;;  %4438 = vmatprep.mubr.bf16.mxu0 %v1707_v46  ;;  %486 = vst [vmem:[#allocation2 + $0x48] sm:$0xff] %v381_v47  ;;  %487 = vst [vmem:[#allocation2 + $0x50] sm:$0xff] %v382_v48  ;;  %v385_v61 = vmax.f32 %v5165_v53, 0.0  ;;  %v386_v1 = vmax.f32 %v5171_v56, 0.0  ;;  %v317_v2 = vmul.f32 %v3859_v57, %v5126_v15  ;;  %v3863_v3 = vunpack.c.h.bf16 %v3988_v50  ;;  %v3994_v56 = vld [vmem:[%s5114_s20 + $0x58] sm:$0xff]  }
  0x1c   : > { %4433 = vmatpush3.bf16.msra.mxu0 %v4954_v13  ;;  %4242 = vmatprep.subr.bf16.mxu1 %v4955_v24  ;;  %v318_v4 = vmul.f32 %v3862_v58, %v5126_v15  ;;  %v1708_v6 = vpack.c.bf16 %v382_v48, %v381_v47  ;;  %488 = vst [vmem:[#allocation2 + $0x68] sm:$0xff] %v383_v59  ;;  %489 = vst [vmem:[#allocation2 + $0x70] sm:$0xff] %v384_v60  ;;  %v3866_v8 = vunpack.c.l.bf16 %v3989_v63 }
  0x1d   : > { %4434 = vmatprep.subr.bf16.mxu0 %v4956_v26  ;;  %490 = vst [vmem:[#allocation2 + $0x88] sm:$0xff] %v385_v61  ;;  %v5186_v7 = vadd.f32 %v5131_v18, %v316_v62  ;;  %v3867_v9 = vunpack.c.h.bf16 %v3989_v63  ;;  %v5188_v10 = vpack.c.bf16 %v384_v60, %v383_v59  ;;  %491 = vst [vmem:[#allocation2 + $0x90] sm:$0xff] %v386_v1  ;;  %v3870_v20 = vunpack.c.l.bf16 %v3990_v5  ;;  %v3995_v60 = vld [vmem:[%s5114_s20 + $0x60] sm:$0xff]  }
  0x1e   : > { %v356_v11 = vadd.f32 %v5131_v18, %v317_v2  ;;  %v319_v12 = vmul.f32 %v3863_v3, %v5126_v15  ;;  %v5193_v13 = vadd.f32 %v5131_v18, %v318_v4  ;;  %v320_v17 = vmul.f32 %v3866_v8, %v5126_v15  ;;  %v4966_v8 = vld [vmem:[%s5815_s1 + $0x160] sm:$0xff]  }
  0x1f   : > { %4243 = vmatpush3.bf16.msra.mxu1 %v4955_v24  ;;  %v387_v16 = vmax.f32 %v5186_v7, 0.0  ;;  %v321_v19 = vmul.f32 %v3867_v9, %v5126_v15  ;;  %v3871_v25 = vunpack.c.h.bf16 %v3990_v5  ;;  %v322_v29 = vmul.f32 %v3870_v20, %v5126_v15 }
  0x20   : > { %4435 = vmatpush3.bf16.msra.mxu0 %v4956_v26  ;;  %4244 = vmatprep.subr.bf16.mxu1 %v4957_v40  ;;  %v388_v22 = vmax.f32 %v356_v11, 0.0  ;;  %v5203_v23 = vadd.f32 %v5131_v18, %v319_v12  ;;  %v389_v24 = vmax.f32 %v5193_v13, 0.0  ;;  %v4962_v26 = vld [vmem:[%s5815_s1 + $0x8] sm:$0xff]   ;;  %v5210_v27 = vadd.f32 %v5131_v18, %v320_v17 }
  0x21   : > { %4436 = vmatprep.subr.bf16.mxu0 %v4958_v45  ;;  %492 = vst [vmem:[#allocation2 + $0xa8] sm:$0xff] %v387_v16  ;;  %v5213_v28 = vadd.f32 %v5131_v18, %v321_v19  ;;  %v323_v31 = vmul.f32 %v3871_v25, %v5126_v15  ;;  %v3874_v32 = vunpack.c.l.bf16 %v3991_v21  ;;  %v5226_v36 = vadd.f32 %v5131_v18, %v322_v29  ;;  %v3996_v12 = vld [vmem:[%s5114_s20 + $0x68] sm:$0xff]  }
  0x22   : > { %493 = vst [vmem:[#allocation2 + $0xb0] sm:$0xff] %v388_v22  ;;  %v390_v30 = vmax.f32 %v5203_v23, 0.0  ;;  %494 = vst [vmem:[#allocation2 + $0xc8] sm:$0xff] %v389_v24  ;;  %v391_v34 = vmax.f32 %v5210_v27, 0.0  ;;  %v3875_v37 = vunpack.c.h.bf16 %v3991_v21  ;;  %v3878_v42 = vunpack.c.l.bf16 %v3992_v38  ;;  %v4967_v27 = vld [vmem:[%s5815_s1 + $0x168] sm:$0xff]  }
  0x23   : > { %4245 = vmatpush3.bf16.msra.mxu1 %v4957_v40  ;;  %v392_v35 = vmax.f32 %v5213_v28, 0.0  ;;  %v5236_v40 = vadd.f32 %v5131_v18, %v323_v31  ;;  %v324_v41 = vmul.f32 %v3874_v32, %v5126_v15  ;;  %v1710_v44 = vpack.c.bf16 %v386_v1, %v385_v61  ;;  %v4968_v61 = vld [vmem:[%s5815_s1 + $0x18] sm:$0xff]   ;;  %v4973_v32 = vld [vmem:[%s5815_s1 + $0x28] sm:$0xff]  }
  0x24   : > { %4437 = vmatpush3.bf16.msra.mxu0 %v4958_v45  ;;  %4278 = vmatprep.subr.bf16.mxu1 %v4959_v55  ;;  %495 = vst [vmem:[#allocation2 + $0xd0] sm:$0xff] %v390_v30  ;;  %496 = vst [vmem:[#allocation2 + $0xe8] sm:$0xff] %v391_v34  ;;  %v393_v45 = vmax.f32 %v5226_v36, 0.0  ;;  %v3879_v49 = vunpack.c.h.bf16 %v3992_v38  ;;  %v326_v50 = vmul.f32 %v3878_v42, %v5126_v15  ;;  %v3882_v54 = vunpack.c.l.bf16 %v3993_v43  ;;  %v1981_v42 = vld [vmem:[#allocation2 + $0x29] sm:$0xff]  ;;  %v4970_v36 = vld [vmem:[%s5815_s1 + $0x178] sm:$0xff]  }
  0x25   : > { %4470 = vmatprep.subr.bf16.mxu0 %v4960_v0  ;;  %497 = vst [vmem:[#allocation2 + $0xf0] sm:$0xff] %v392_v35  ;;  %v394_v47 = vmax.f32 %v5236_v40, 0.0  ;;  %v5250_v48 = vadd.f32 %v5131_v18, %v324_v41  ;;  %v1711_v52 = vpack.c.bf16 %v388_v22, %v387_v16  ;;  %v3886_v3 = vunpack.c.l.bf16 %v3994_v56  ;;  %v4969_v41 = vld [vmem:[%s5815_s1 + $0x170] sm:$0xff]  }
  0x26   : > { %4247 = vmatmul.mubr.bf16.vlgmr.msra.gmra.mrb[0].mxu1 %v1707_v46  ;;  %v325_v46 = vmul.f32 %v3875_v37, %v5126_v15  ;;  %498 = vst [vmem:[#allocation2 + $0x108] sm:$0xff] %v393_v45  ;;  %v327_v58 = vmul.f32 %v3879_v49, %v5126_v15  ;;  %v5267_v59 = vadd.f32 %v5131_v18, %v326_v50  ;;  %v3887_v4 = vunpack.c.h.bf16 %v3994_v56  ;;  %v1982_v49 = vld [vmem:[#allocation2 + $0x31] sm:$0xff] }
  0x27   : > { %4439 = vmatmul.mubr.bf16.vlgmr.msra.gmra.mrb[0].mxu0 %v1708_v6  ;;  %4279 = vmatpush3.bf16.msra.mxu1 %v4959_v55  ;;  %v3883_v55 = vunpack.c.h.bf16 %v3993_v43  ;;  %499 = vst [vmem:[#allocation2 + $0x110] sm:$0xff] %v394_v47  ;;  %v395_v57 = vmax.f32 %v5250_v48, 0.0  ;;  %v328_v63 = vmul.f32 %v3882_v54, %v5126_v15  ;;  %v3890_v7 = vunpack.c.l.bf16 %v3995_v60 }
  0x28   : > { %4471 = vmatpush3.bf16.msra.mxu0 %v4960_v0  ;;  %4250 = vmatprep.mubr.bf16.mxu1 %v1708_v6  ;;  %v5259_v53 = vadd.f32 %v5131_v18, %v325_v46  ;;  %v5280_v1 = vadd.f32 %v5131_v18, %v327_v58  ;;  %v397_v2 = vmax.f32 %v5267_v59, 0.0  ;;  %v331_v11 = vmul.f32 %v3887_v4, %v5126_v15  ;;  %v1985_v4 = vld [vmem:[#allocation2 + $0x69] sm:$0xff] }
  0x29   : > { %4472 = vmatprep.subr.bf16.mxu0 %v4961_v14  ;;  %4442 = vmatprep.mubr.bf16.mxu0 %v5188_v10  ;;  %v329_v0 = vmul.f32 %v3883_v55, %v5126_v15  ;;  %500 = vst [vmem:[#allocation2 + $0x128] sm:$0xff] %v395_v57  ;;  %v5286_v5 = vadd.f32 %v5131_v18, %v328_v63  ;;  %v3891_v19 = vunpack.c.h.bf16 %v3995_v60  ;;  %v3895_v31 = vunpack.c.h.bf16 %v3996_v12 }
  0x2a   : > { %4280 = vmatprep.subr.bf16.mxu1 %v4962_v26  ;;  %v396_v62 = vmax.f32 %v5259_v53, 0.0  ;;  %v398_v9 = vmax.f32 %v5280_v1, 0.0  ;;  %502 = vst [vmem:[#allocation2 + $0x148] sm:$0xff] %v397_v2  ;;  %v332_v20 = vmul.f32 %v3890_v7, %v5126_v15  ;;  %v1712_v21 = vpack.c.bf16 %v390_v30, %v389_v24  ;;  %v1986_v7 = vld [vmem:[#allocation2 + $0x71] sm:$0xff]  ;;  %v1987_v1 = vld [vmem:[#allocation2 + $0x89] sm:$0xff] }
  0x2b   : > { %4281 = vmatpush3.bf16.msra.mxu1 %v4962_v26  ;;  %v5289_v6 = vadd.f32 %v5131_v18, %v329_v0  ;;  %v399_v16 = vmax.f32 %v5286_v5, 0.0  ;;  %v5316_v25 = vadd.f32 %v5131_v18, %v331_v11  ;;  %v3997_v26 = vld [vmem:[%s5114_s20 + $0x70] sm:$0xff]   ;;  %v1713_v29 = vpack.c.bf16 %v392_v35, %v391_v34  ;;  %v4978_v5 = vld [vmem:[%s5815_s1 + $0x198] sm:$0xff]  }
  0x2c   : > { %4473 = vmatpush3.bf16.msra.mxu0 %v4961_v14  ;;  %4282 = vmatprep.subr.bf16.mxu1 %v4965_v33  ;;  %501 = vst [vmem:[#allocation2 + $0x130] sm:$0xff] %v396_v62  ;;  %v4971_v14 = vld [vmem:[%s5815_s1 + $0x20] sm:$0xff]   ;;  %503 = vst [vmem:[#allocation2 + $0x150] sm:$0xff] %v398_v9  ;;  %v333_v13 = vmul.f32 %v3891_v19, %v5126_v15  ;;  %v5329_v23 = vadd.f32 %v5131_v18, %v332_v20  ;;  %v3894_v24 = vunpack.c.l.bf16 %v3996_v12  ;;  %v1984_v0 = vld [vmem:[#allocation2 + $0x51] sm:$0xff] }
  0x2d   : > { %4474 = vmatprep.subr.bf16.mxu0 %v4963_v39  ;;  %v400_v17 = vmax.f32 %v5289_v6, 0.0  ;;  %504 = vst [vmem:[#allocation2 + $0x168] sm:$0xff] %v399_v16  ;;  %v402_v30 = vmax.f32 %v5316_v25, 0.0  ;;  %v3898_v37 = vunpack.c.l.bf16 %v3997_v26  ;;  %v335_v38 = vmul.f32 %v3895_v31, %v5126_v15  ;;  %v1991_v6 = vld [vmem:[#allocation2 + $0xc9] sm:$0xff]  ;;  %v4980_v25 = vld [vmem:[%s5815_s1 + $0x1a0] sm:$0xff]  }
  0x2e   : > { %4251 = vmatmul.mubr.bf16.gmra.mrb[4].mxu1 %v5188_v10  ;;  %v330_v10 = vmul.f32 %v3886_v3, %v5126_v15  ;;  %v403_v34 = vmax.f32 %v5329_v23, 0.0  ;;  %v334_v35 = vmul.f32 %v3894_v24, %v5126_v15  ;;  %v1714_v56 = vpack.c.bf16 %v394_v47, %v393_v45  ;;  %v4977_v45 = vld [vmem:[%s5815_s1 + $0x38] sm:$0xff]   ;;  %v1983_v47 = vld [vmem:[#allocation2 + $0x49] sm:$0xff]  ;;  %v4972_v3 = vld [vmem:[%s5815_s1 + $0x180] sm:$0xff]  }
  0x2f   : > { %4443 = vmatmul.mubr.bf16.gmra.mrb[4].mxu0 %v1710_v44  ;;  %4254 = vmatprep.mubr.bf16.mxu1 %v1710_v44  ;;  %505 = vst [vmem:[#allocation2 + $0x170] sm:$0xff] %v400_v17  ;;  %507 = vst [vmem:[#allocation2 + $0x190] sm:$0xff] %v402_v30  ;;  %v336_v46 = vmul.f32 %v3898_v37, %v5126_v15  ;;  %v5360_v50 = vadd.f32 %v5131_v18, %v335_v38  ;;  %v4982_v37 = vld [vmem:[%s5815_s1 + $0x1a8] sm:$0xff]   ;;  %v1996_v38 = vld [vmem:[#allocation2 + $0x111] sm:$0xff] }
  0x30   : > { %4475 = vmatpush3.bf16.msra.mxu0 %v4963_v39  ;;  %4446 = vmatprep.mubr.bf16.mxu0 %v1711_v52  ;;  %v5313_v22 = vadd.f32 %v5131_v18, %v330_v10  ;;  %v3899_v39 = vunpack.c.h.bf16 %v3997_v26  ;;  %508 = vst [vmem:[#allocation2 + $0x1a8] sm:$0xff] %v403_v34  ;;  %v5356_v44 = vadd.f32 %v5131_v18, %v334_v35  ;;  %v5409_v10 = vld [vmem:[%s5815_s1 + $0x80] sm:$0xff]   ;;  %v1990_v26 = vld [vmem:[#allocation2 + $0xb1] sm:$0xff]  ;;  %v1995_v23 = vld [vmem:[#allocation2 + $0x109] sm:$0xff] }
  0x31   : > { %4476 = vmatprep.subr.bf16.mxu0 %v4964_v51  ;;  %4283 = vmatpush3.bf16.msra.mxu1 %v4965_v33  ;;  %v5340_v33 = vadd.f32 %v5131_v18, %v333_v13  ;;  %v5370_v55 = vadd.f32 %v5131_v18, %v336_v46  ;;  %v406_v58 = vmax.f32 %v5360_v50, 0.0  ;;  %v5411_v11 = vpack.c.bf16 %v1984_v0, %v1983_v47  ;;  %v4986_v50 = vld [vmem:[%s5815_s1 + $0x1b8] sm:$0xff]  }
  0x32   : > { %4284 = vmatprep.subr.bf16.mxu1 %v4968_v61  ;;  %v401_v28 = vmax.f32 %v5313_v22, 0.0  ;;  %v405_v54 = vmax.f32 %v5356_v44, 0.0  ;;  %v622_v12 = vpack.c.bf16 %v398_v9, %v397_v2  ;;  %v5418_v19 = vpack.c.bf16 %v1986_v7, %v1985_v4  ;;  %v1988_v2 = vld [vmem:[#allocation2 + $0x91] sm:$0xff]  ;;  %v1989_v9 = vld [vmem:[#allocation2 + $0xa9] sm:$0xff] }
  0x33   : > { %v404_v43 = vmax.f32 %v5340_v33, 0.0  ;;  %v407_v63 = vmax.f32 %v5370_v55, 0.0  ;;  %511 = vst [vmem:[#allocation2 + $0x1d0] sm:$0xff] %v406_v58  ;;  %v5449_v31 = vpack.c.bf16 %v1990_v26, %v1989_v9  ;;  %v1994_v22 = vld [vmem:[#allocation2 + $0xf1] sm:$0xff]  ;;  %v516_v33 = vld [vmem:[#allocation2 + $0x7] sm:$0xff]  ;;  %v5489_v44 = vpack.c.bf16 %v1996_v38, %v1995_v23 }
  0x34   : > { %4477 = vmatpush3.bf16.msra.mxu0 %v4964_v51  ;;  %506 = vst [vmem:[#allocation2 + $0x188] sm:$0xff] %v401_v28  ;;  %v337_v51 = vmul.f32 %v3899_v39, %v5126_v15  ;;  %510 = vst [vmem:[#allocation2 + $0x1c8] sm:$0xff] %v405_v54  ;;  %v1997_v39 = vld [vmem:[#allocation2 + $0x129] sm:$0xff] }
  0x35   : > { %4478 = vmatprep.subr.bf16.mxu0 %v4966_v8  ;;  %4285 = vmatpush3.bf16.msra.mxu1 %v4968_v61  ;;  %509 = vst [vmem:[#allocation2 + $0x1b0] sm:$0xff] %v404_v43  ;;  %v5380_v61 = vpack.c.bf16 %v1982_v49, %v1981_v42  ;;  %512 = vst [vmem:[#allocation2 + $0x1e8] sm:$0xff] %v407_v63  ;;  %v4984_v42 = vld [vmem:[%s5815_s1 + $0x1b0] sm:$0xff]   ;;  %v520_v55 = vld [vmem:[#allocation2 + $0x47] sm:$0xff] }
  0x36   : > { %4255 = vmatmul.mubr.bf16.gmra.mrb[8].mxu1 %v1711_v52  ;;  %4286 = vmatprep.subr.bf16.mxu1 %v4971_v14  ;;  %v4975_v52 = vld [vmem:[%s5815_s1 + $0x30] sm:$0xff]   ;;  %v5378_v60 = vadd.f32 %v5131_v18, %v337_v51  ;;  %v518_v51 = vld [vmem:[#allocation2 + $0x27] sm:$0xff] }
  0x37   : > { %4447 = vmatmul.mubr.bf16.gmra.mrb[8].mxu0 %v1712_v21  ;;  %4258 = vmatprep.mubr.bf16.mxu1 %v1712_v21  ;;  %v523_v4 = vld [vmem:[#allocation2 + $0x6f] sm:$0xff]  ;;  %v526_v9 = vld [vmem:[#allocation2 + $0xa7] sm:$0xff] }
  0x38   : > { %4479 = vmatpush3.bf16.msra.mxu0 %v4966_v8  ;;  %4450 = vmatprep.mubr.bf16.mxu0 %v1713_v29  ;;  %v408_v40 = vmax.f32 %v5378_v60, 0.0  ;;  %v621_v8 = vpack.c.bf16 %v396_v62, %v395_v57  ;;  %v4974_v57 = vld [vmem:[%s5815_s1 + $0x188] sm:$0xff]  }
  0x39   : > { %4480 = vmatprep.subr.bf16.mxu0 %v4967_v27  ;;  %4287 = vmatpush3.bf16.msra.mxu1 %v4971_v14  ;;  %v3998_v14 = vld [vmem:[%s5114_s20 + $0x78] sm:$0xff]   ;;  %v2001_v60 = vld [vmem:[#allocation2 + $0x169] sm:$0xff] }
  0x3a   : > { %4288 = vmatprep.subr.bf16.mxu1 %v4973_v32  ;;  %513 = vst [vmem:[#allocation2 + $0x1f0] sm:$0xff] %v408_v40  ;;  %v3902_v48 = vunpack.c.l.bf16 %v3998_v14  ;;  %v3903_v53 = vunpack.c.h.bf16 %v3998_v14  ;;  %v4981_v7 = vld [vmem:[%s5815_s1 + $0x88] sm:$0xff]  }
  0x3b   : > { %v2003_v14 = vld [vmem:[#allocation2 + $0x189] sm:$0xff] }
  0x3c   : > { %4481 = vmatpush3.bf16.msra.mxu0 %v4967_v27  ;;  %v338_v59 = vmul.f32 %v3902_v48, %v5126_v15  ;;  %v339_v62 = vmul.f32 %v3903_v53, %v5126_v15  ;;  %v4976_v15 = vld [vmem:[%s5815_s1 + $0x190] sm:$0xff]   ;;  %v5443_v27 = vpack.c.bf16 %v1988_v2, %v1987_v1  ;;  %v4989_v23 = vld [vmem:[%s5815_s1 + $0xa8] sm:$0xff]  }
  0x3d   : > { %4482 = vmatprep.subr.bf16.mxu0 %v4969_v41  ;;  %4289 = vmatpush3.bf16.msra.mxu1 %v4973_v32  ;;  %v626_v32 = vpack.c.bf16 %v406_v58, %v405_v54  ;;  %v1999_v54 = vld [vmem:[#allocation2 + $0x149] sm:$0xff]  ;;  %v2000_v58 = vld [vmem:[#allocation2 + $0x151] sm:$0xff] }
  0x3e   : > { %4259 = vmatmul.mubr.bf16.gmra.mrb[12].mxu1 %v1713_v29  ;;  %4290 = vmatprep.subr.bf16.mxu1 %v4975_v52  ;;  %v5429_v20 = vadd.f32 %v5131_v18, %v338_v59  ;;  %v5432_v21 = vadd.f32 %v5131_v18, %v339_v62  ;;  %v623_v29 = vpack.c.bf16 %v400_v17, %v399_v16  ;;  %v1992_v16 = vld [vmem:[#allocation2 + $0xd1] sm:$0xff]  ;;  %v1993_v17 = vld [vmem:[#allocation2 + $0xe9] sm:$0xff] }
  0x3f   : > { %4451 = vmatmul.mubr.bf16.gmra.mrb[12].mxu0 %v1714_v56  ;;  %4262 = vmatprep.mubr.bf16.mxu1 %v1714_v56  ;;  %v624_v18 = vpack.c.bf16 %v402_v30, %v401_v28  ;;  %v625_v28 = vpack.c.bf16 %v404_v43, %v403_v34  ;;  %v5467_v30 = vpack.c.bf16 %v1992_v16, %v1991_v6  ;;  %v517_v34 = vld [vmem:[#allocation2 + $0xf] sm:$0xff]  ;;  %v530_v38 = vld [vmem:[#allocation2 + $0xe7] sm:$0xff] }
  0x40   : > { %4483 = vmatpush3.bf16.msra.mxu0 %v4969_v41  ;;  %4486 = vmatprep.mubr.bf16.mxu0 %v5380_v61  ;;  %v409_v13 = vmax.f32 %v5429_v20, 0.0  ;;  %v410_v24 = vmax.f32 %v5432_v21, 0.0  ;;  %v5473_v35 = vpack.c.bf16 %v1994_v22, %v1993_v17  ;;  %v1998_v41 = vld [vmem:[#allocation2 + $0x131] sm:$0xff]  ;;  %v5487_v43 = vpack.c.bf16 %v408_v40, %v407_v63  ;;  %v2005_v53 = vld [vmem:[#allocation2 + $0x1a9] sm:$0xff]  ;;  %v4987_v22 = vld [vmem:[%s5815_s1 + $0xa0] sm:$0xff]  }
  0x41   : > { %4484 = vmatprep.subr.bf16.mxu0 %v4970_v36  ;;  %4291 = vmatpush3.bf16.msra.mxu1 %v4975_v52  ;;  %v548_v46 = vpack.c.bf16 %v517_v34, %v516_v33  ;;  %v5491_v49 = vpack.c.bf16 %v1998_v41, %v1997_v39  ;;  %v519_v52 = vld [vmem:[#allocation2 + $0x2f] sm:$0xff]  ;;  %v532_v34 = vld [vmem:[#allocation2 + $0x107] sm:$0xff]  ;;  %v4993_v20 = vld [vmem:[%s5815_s1 + $0xb8] sm:$0xff]  }
  0x42   : > { %4292 = vmatprep.subr.bf16.mxu1 %v4977_v45  ;;  %514 = vst [vmem:[#allocation2 + $0x208] sm:$0xff] %v409_v13  ;;  %515 = vst [vmem:[#allocation2 + $0x210] sm:$0xff] %v410_v24  ;;  %v521_v56 = vld [vmem:[#allocation2 + $0x4f] sm:$0xff]  ;;  %v5504_v40 = vpack.c.bf16 %v519_v52, %v518_v51  ;;  %v5560_v39 = vpack.c.bf16 %v410_v24, %v409_v13  ;;  %v534_v21 = vld [vmem:[#allocation2 + $0x127] sm:$0xff] }
  0x43   : > { %v2002_v63 = vld [vmem:[#allocation2 + $0x171] sm:$0xff]  ;;  %v5508_v47 = vpack.c.bf16 %v521_v56, %v520_v55  ;;  %v2009_v16 = vld [vmem:[#allocation2 + $0x1e9] sm:$0xff]  ;;  %v5579_v56 = vld [vmem:[%s5815_s1 + $0xc0] sm:$0xff]  }
  0x44   : > { %4485 = vmatpush3.bf16.msra.mxu0 %v4970_v36  ;;  %v5502_v36 = vld [vmem:[%s5815_s1 + $0x1c0] sm:$0xff]   ;;  %v5510_v0 = vpack.c.bf16 %v2002_v63, %v2001_v60  ;;  %v2004_v48 = vld [vmem:[#allocation2 + $0x191] sm:$0xff]  ;;  %v4990_v63 = vld [vmem:[%s5815_s1 + $0x1c8] sm:$0xff]  }
  0x45   : > { %4518 = vmatprep.subr.bf16.mxu0 %v4972_v3  ;;  %4293 = vmatpush3.bf16.msra.mxu1 %v4977_v45  ;;  %v5506_v45 = vpack.c.bf16 %v2000_v58, %v1999_v54  ;;  %v2006_v59 = vld [vmem:[#allocation2 + $0x1b1] sm:$0xff]  ;;  %v5526_v1 = vpack.c.bf16 %v2004_v48, %v2003_v14  ;;  %v536_v24 = vld [vmem:[#allocation2 + $0x147] sm:$0xff] }
  0x46   : > { %4263 = vmatmul.mubr.bf16.gmra.mrb[16].mxu1 %v621_v8  ;;  %4326 = vmatprep.subr.bf16.mxu1 %v5409_v10  ;;  %v524_v8 = vld [vmem:[#allocation2 + $0x87] sm:$0xff]  ;;  %v527_v26 = vld [vmem:[#allocation2 + $0xaf] sm:$0xff] }
  0x47   : > { %4487 = vmatmul.mubr.bf16.vlgmr.msra.gmra.mrb[0].mxu0 %v5411_v11  ;;  %4266 = vmatprep.mubr.bf16.mxu1 %v622_v12  ;;  %v525_v12 = vld [vmem:[#allocation2 + $0x8f] sm:$0xff] }
  0x48   : > { %4519 = vmatpush3.bf16.msra.mxu0 %v4972_v3  ;;  %4490 = vmatprep.mubr.bf16.mxu0 %v5418_v19  ;;  %v522_v3 = vld [vmem:[#allocation2 + $0x67] sm:$0xff]  ;;  %v5528_v2 = vpack.c.bf16 %v525_v12, %v524_v8  ;;  %v2008_v6 = vld [vmem:[#allocation2 + $0x1d1] sm:$0xff] }
  0x49   : > { %4520 = vmatprep.subr.bf16.mxu0 %v4974_v57  ;;  %v5524_v62 = vpack.c.bf16 %v523_v4, %v522_v3  ;;  %v2010_v17 = vld [vmem:[#allocation2 + $0x1f1] sm:$0xff]  ;;  %v2011_v41 = vld [vmem:[#allocation2 + $0x209] sm:$0xff] }
  0x4a   : > { %v531_v33 = vld [vmem:[#allocation2 + $0xef] sm:$0xff]  ;;  %v538_v3 = vld [vmem:[#allocation2 + $0x167] sm:$0xff] }
  0x4b   : > { %v5566_v51 = vpack.c.bf16 %v531_v33, %v530_v38  ;;  %v535_v13 = vld [vmem:[#allocation2 + $0x12f] sm:$0xff]  ;;  %v5002_v33 = vld [vmem:[%s5815_s1 + $0x1f8] sm:$0xff]  }
  0x4c   : > { %4521 = vmatpush3.bf16.msra.mxu0 %v4974_v57  ;;  %v4983_v57 = vld [vmem:[%s5815_s1 + $0x90] sm:$0xff]   ;;  %v5581_v58 = vpack.c.bf16 %v535_v13, %v534_v21  ;;  %v2594_v21 = vld [vmem:[#allocation2 + $0x48] sm:$0xff] }
  0x4d   : > { %4522 = vmatprep.subr.bf16.mxu0 %v4976_v15  ;;  %v537_v55 = vld [vmem:[#allocation2 + $0x14f] sm:$0xff] }
  0x4e   : > { %4267 = vmatmul.mubr.bf16.gmra.mrb[20].mxu1 %v623_v29  ;;  %v2007_v29 = vld [vmem:[#allocation2 + $0x1c9] sm:$0xff]  ;;  %v5583_v60 = vpack.c.bf16 %v537_v55, %v536_v24 }
  0x4f   : > { %4491 = vmatmul.mubr.bf16.gmra.mrb[4].mxu0 %v5443_v27  ;;  %4270 = vmatprep.mubr.bf16.mxu1 %v624_v18  ;;  %v528_v18 = vld [vmem:[#allocation2 + $0xc7] sm:$0xff]  ;;  %v539_v4 = vld [vmem:[#allocation2 + $0x16f] sm:$0xff] }
  0x50   : > { %4494 = vmatprep.mubr.bf16.mxu0 %v5449_v31  ;;  %4523 = vmatpush3.bf16.msra.mxu0 %v4976_v15  ;;  %v4985_v15 = vld [vmem:[%s5815_s1 + $0x98] sm:$0xff]   ;;  %v541_v8 = vld [vmem:[#allocation2 + $0x18f] sm:$0xff]  ;;  %v5597_v14 = vpack.c.bf16 %v539_v4, %v538_v3 }
  0x51   : > { %4524 = vmatprep.subr.bf16.mxu0 %v4978_v5  ;;  %v4992_v12 = vld [vmem:[%s5815_s1 + $0x1d0] sm:$0xff]   ;;  %v2598_v3 = vld [vmem:[#allocation2 + $0x88] sm:$0xff] }
  0x52   : > { %v2595_v13 = vld [vmem:[#allocation2 + $0x50] sm:$0xff] }
  0x53   : > { %v5007_v24 = vld [vmem:[%s5815_s1 + $0xf0] sm:$0xff]  }
  0x54   : > { %4525 = vmatpush3.bf16.msra.mxu0 %v4978_v5  ;;  %v529_v5 = vld [vmem:[#allocation2 + $0xcf] sm:$0xff] }
  0x55   : > { %4526 = vmatprep.subr.bf16.mxu0 %v4980_v25  ;;  %v2599_v4 = vld [vmem:[#allocation2 + $0x90] sm:$0xff] }
  0x56   : > { %4271 = vmatmul.mubr.bf16.gmra.mrb[24].mxu1 %v625_v28  ;;  %v5544_v28 = vpack.c.bf16 %v2008_v6, %v2007_v29  ;;  %v547_v6 = vld [vmem:[#allocation2 + $0x1ef] sm:$0xff] }
  0x57   : > { %4495 = vmatmul.mubr.bf16.gmra.mrb[8].mxu0 %v5467_v30  ;;  %4274 = vmatprep.mubr.bf16.mxu1 %v626_v32  ;;  %v5546_v32 = vpack.c.bf16 %v529_v5, %v528_v18  ;;  %v4998_v18 = vld [vmem:[%s5815_s1 + $0x1e8] sm:$0xff]  }
  0x58   : > { %4498 = vmatprep.mubr.bf16.mxu0 %v5473_v35  ;;  %4527 = vmatpush3.bf16.msra.mxu0 %v4980_v25  ;;  %v5542_v25 = vpack.c.bf16 %v527_v26, %v526_v9  ;;  %v545_v9 = vld [vmem:[#allocation2 + $0x1cf] sm:$0xff]  ;;  %v4996_v26 = vld [vmem:[%s5815_s1 + $0x1e0] sm:$0xff]  }
  0x59   : > { %4528 = vmatprep.subr.bf16.mxu0 %v4982_v37  ;;  %v546_v5 = vld [vmem:[#allocation2 + $0x1e7] sm:$0xff] }
  0x5c   : > { %4529 = vmatpush3.bf16.msra.mxu0 %v4982_v37  ;;  %v5548_v37 = vpack.c.bf16 %v2010_v17, %v2009_v16  ;;  %v1063_v16 = vld [vmem:[#allocation2 + $0x9] sm:$0xff]  ;;  %v1064_v17 = vld [vmem:[#allocation2 + $0x11] sm:$0xff] }
  0x5d   : > { %4530 = vmatprep.subr.bf16.mxu0 %v4984_v42  ;;  %v1095_v38 = vpack.c.bf16 %v1064_v17, %v1063_v16  ;;  %v5011_v16 = vld [vmem:[%s5815_s1 + $0x220] sm:$0xff]  }
  0x5e   : > { %4275 = vmatmul.mubr.bf16.gmra.mrb[28].mxu1 %v5487_v43 }
  0x5f   : > { %4499 = vmatmul.mubr.bf16.gmra.mrb[12].mxu0 %v5489_v44  ;;  %4294 = vmatprep.mubr.bf16.mxu1 %v548_v46  ;;  %v533_v46 = vld [vmem:[#allocation2 + $0x10f] sm:$0xff] }
  0x60   : > { %4502 = vmatprep.mubr.bf16.mxu0 %v5491_v49  ;;  %4531 = vmatpush3.bf16.msra.mxu0 %v4984_v42  ;;  %v2012_v42 = vld [vmem:[#allocation2 + $0x211] sm:$0xff]  ;;  %v5568_v54 = vpack.c.bf16 %v533_v46, %v532_v34  ;;  %v5004_v34 = vld [vmem:[%s5815_s1 + $0x200] sm:$0xff]  }
  0x61   : > { %4532 = vmatprep.subr.bf16.mxu0 %v4986_v50  ;;  %v2028_v52 = vpack.c.bf16 %v2012_v42, %v2011_v41  ;;  %v4997_v41 = vld [vmem:[%s5815_s1 + $0xc8] sm:$0xff]   ;;  %v4999_v42 = vld [vmem:[%s5815_s1 + $0xd0] sm:$0xff]   ;;  %v5001_v46 = vld [vmem:[%s5815_s1 + $0xd8] sm:$0xff]  }
  0x64   : > { %4533 = vmatpush3.bf16.msra.mxu0 %v4986_v50  ;;  %v4991_v50 = vld [vmem:[%s5815_s1 + $0xb0] sm:$0xff]  }
  0x65   : > { %4566 = vmatprep.subr.bf16.mxu0 %v5502_v36 }
  0x66   : > { %4295 = vmatmul.mubr.bf16.vlgmr.msra.gmra.mrb[0].mxu1 %v5504_v40 }
  0x67   : > { %4503 = vmatmul.mubr.bf16.gmra.mrb[16].mxu0 %v5506_v45  ;;  %4327 = vmatpush3.bf16.msra.mxu1 %v5409_v10  ;;  %v5530_v10 = vpack.c.bf16 %v2006_v59, %v2005_v53  ;;  %v4994_v53 = vld [vmem:[%s5815_s1 + $0x1d8] sm:$0xff]   ;;  %v544_v59 = vld [vmem:[#allocation2 + $0x1c7] sm:$0xff] }
  0x68   : > { %4298 = vmatprep.mubr.bf16.mxu1 %v5508_v47  ;;  %4506 = vmatprep.mubr.bf16.mxu0 %v5510_v0  ;;  %v5613_v29 = vpack.c.bf16 %v545_v9, %v544_v59  ;;  %v5008_v59 = vld [vmem:[%s5815_s1 + $0x210] sm:$0xff]  }
  0x69   : > { %4328 = vmatprep.subr.bf16.mxu1 %v4981_v7 }
  0x6b   : > { %4329 = vmatpush3.bf16.msra.mxu1 %v4981_v7  ;;  %v540_v7 = vld [vmem:[#allocation2 + $0x187] sm:$0xff] }
  0x6c   : > { %4330 = vmatprep.subr.bf16.mxu1 %v4983_v57  ;;  %v5599_v48 = vpack.c.bf16 %v541_v8, %v540_v7  ;;  %v2628_v8 = vpack.c.bf16 %v2599_v4, %v2598_v3  ;;  %v2905_v4 = vld [vmem:[#allocation2 + $0x91] sm:$0xff] }
  0x6e   : > { %4299 = vmatmul.mubr.bf16.gmra.mrb[4].mxu1 %v5524_v62 }
  0x6f   : > { %4507 = vmatmul.mubr.bf16.gmra.mrb[20].mxu0 %v5526_v1  ;;  %4302 = vmatprep.mubr.bf16.mxu1 %v5528_v2 }
  0x70   : > { %4510 = vmatprep.mubr.bf16.mxu0 %v5530_v10  ;;  %4331 = vmatpush3.bf16.msra.mxu1 %v4983_v57  ;;  %v543_v57 = vld [vmem:[#allocation2 + $0x1af] sm:$0xff] }
  0x71   : > { %4332 = vmatprep.subr.bf16.mxu1 %v4985_v15 }
  0x74   : > { %4333 = vmatpush3.bf16.msra.mxu1 %v4985_v15 }
  0x75   : > { %4334 = vmatprep.subr.bf16.mxu1 %v4987_v22 }
  0x76   : > { %4303 = vmatmul.mubr.bf16.gmra.mrb[8].mxu1 %v5542_v25 }
  0x77   : > { %4511 = vmatmul.mubr.bf16.gmra.mrb[24].mxu0 %v5544_v28  ;;  %4306 = vmatprep.mubr.bf16.mxu1 %v5546_v32 }
  0x78   : > { %4514 = vmatprep.mubr.bf16.mxu0 %v5548_v37  ;;  %4335 = vmatpush3.bf16.msra.mxu1 %v4987_v22  ;;  %v5000_v22 = vld [vmem:[%s5815_s1 + $0x1f0] sm:$0xff]  }
  0x79   : > { %4336 = vmatprep.subr.bf16.mxu1 %v4989_v23 }
  0x7c   : > { %4337 = vmatpush3.bf16.msra.mxu1 %v4989_v23  ;;  %v5625_v23 = vpack.c.bf16 %v547_v6, %v546_v5  ;;  %v2606_v5 = vld [vmem:[#allocation2 + $0x108] sm:$0xff]  ;;  %v2607_v6 = vld [vmem:[#allocation2 + $0x110] sm:$0xff] }
  0x7d   : > { %4338 = vmatprep.subr.bf16.mxu1 %v4991_v50 }
  0x7e   : > { %4307 = vmatmul.mubr.bf16.gmra.mrb[12].mxu1 %v5566_v51 }
  0x7f   : > { %4515 = vmatmul.mubr.bf16.gmra.mrb[28].mxu0 %v2028_v52  ;;  %4310 = vmatprep.mubr.bf16.mxu1 %v5568_v54 }
  0x80   : > { %4534 = vmatprep.mubr.bf16.mxu0 %v5508_v47  ;;  %4339 = vmatpush3.bf16.msra.mxu1 %v4991_v50  ;;  %v5003_v50 = vld [vmem:[%s5815_s1 + $0xe0] sm:$0xff]  }
  0x81   : > { %4340 = vmatprep.subr.bf16.mxu1 %v4993_v20 }
  0x84   : > { %4341 = vmatpush3.bf16.msra.mxu1 %v4993_v20  ;;  %v2319_v20 = vld [vmem:[#allocation2 + $0x22f] sm:$0xff] }
  0x85   : > { %4374 = vmatprep.subr.bf16.mxu1 %v5579_v56 }
  0x86   : > { %4311 = vmatmul.mubr.bf16.gmra.mrb[16].mxu1 %v5581_v58 }
  0x87   : > { %4535 = vmatmul.mubr.bf16.vlgmr.msra.gmra.mrb[0].mxu0 %v5524_v62  ;;  %4314 = vmatprep.mubr.bf16.mxu1 %v5583_v60 }
  0x88   : > { %4567 = vmatpush3.bf16.msra.mxu0 %v5502_v36  ;;  %4538 = vmatprep.mubr.bf16.mxu0 %v5528_v2  ;;  %v542_v36 = vld [vmem:[#allocation2 + $0x1a7] sm:$0xff] }
  0x89   : > { %4568 = vmatprep.subr.bf16.mxu0 %v4990_v63  ;;  %v5611_v15 = vpack.c.bf16 %v543_v57, %v542_v36  ;;  %v2602_v36 = vld [vmem:[#allocation2 + $0xc8] sm:$0xff]  ;;  %v2603_v57 = vld [vmem:[#allocation2 + $0xd0] sm:$0xff] }
  0x8c   : > { %4569 = vmatpush3.bf16.msra.mxu0 %v4990_v63  ;;  %v2597_v63 = vld [vmem:[#allocation2 + $0x70] sm:$0xff] }
  0x8d   : > { %4570 = vmatprep.subr.bf16.mxu0 %v4992_v12 }
  0x8e   : > { %4315 = vmatmul.mubr.bf16.gmra.mrb[20].mxu1 %v5597_v14 }
  0x8f   : > { %4539 = vmatmul.mubr.bf16.gmra.mrb[4].mxu0 %v5542_v25  ;;  %4318 = vmatprep.mubr.bf16.mxu1 %v5599_v48 }
  0x90   : > { %4542 = vmatprep.mubr.bf16.mxu0 %v5546_v32  ;;  %4571 = vmatpush3.bf16.msra.mxu0 %v4992_v12  ;;  %v5006_v12 = vld [vmem:[%s5815_s1 + $0x208] sm:$0xff]  }
  0x91   : > { %4572 = vmatprep.subr.bf16.mxu0 %v4994_v53 }
  0x94   : > { %4573 = vmatpush3.bf16.msra.mxu0 %v4994_v53  ;;  %v2601_v53 = vld [vmem:[#allocation2 + $0xb0] sm:$0xff] }
  0x95   : > { %4574 = vmatprep.subr.bf16.mxu0 %v4996_v26 }
  0x96   : > { %4319 = vmatmul.mubr.bf16.gmra.mrb[24].mxu1 %v5611_v15 }
  0x97   : > { %4543 = vmatmul.mubr.bf16.gmra.mrb[8].mxu0 %v5566_v51  ;;  %4322 = vmatprep.mubr.bf16.mxu1 %v5613_v29 }
  0x98   : > { %4546 = vmatprep.mubr.bf16.mxu0 %v5568_v54  ;;  %4575 = vmatpush3.bf16.msra.mxu0 %v4996_v26  ;;  %v2630_v26 = vpack.c.bf16 %v2603_v57, %v2602_v36  ;;  %v2910_v57 = vld [vmem:[#allocation2 + $0xe9] sm:$0xff] }
  0x99   : > { %4576 = vmatprep.subr.bf16.mxu0 %v4998_v18 }
  0x9c   : > { %4577 = vmatpush3.bf16.msra.mxu0 %v4998_v18  ;;  %v2605_v18 = vld [vmem:[#allocation2 + $0xf0] sm:$0xff] }
  0x9d   : > { %4578 = vmatprep.subr.bf16.mxu0 %v5000_v22 }
  0x9e   : > { %4323 = vmatmul.mubr.bf16.gmra.mrb[28].mxu1 %v5625_v23 }
  0x9f   : > { %4547 = vmatmul.mubr.bf16.gmra.mrb[12].mxu0 %v5581_v58  ;;  %4342 = vmatprep.mubr.bf16.mxu1 %v1095_v38  ;;  %v2609_v38 = vld [vmem:[#allocation2 + $0x130] sm:$0xff] }
  0xa0   : > { %4550 = vmatprep.mubr.bf16.mxu0 %v5583_v60  ;;  %4579 = vmatpush3.bf16.msra.mxu0 %v5000_v22  ;;  %v2632_v22 = vpack.c.bf16 %v2607_v6, %v2606_v5 }
  0xa1   : > { %4580 = vmatprep.subr.bf16.mxu0 %v5002_v33 }
  0xa4   : > { %4581 = vmatpush3.bf16.msra.mxu0 %v5002_v33  ;;  %v2610_v33 = vld [vmem:[#allocation2 + $0x148] sm:$0xff] }
  0xa5   : > { %4614 = vmatprep.subr.bf16.mxu0 %v5004_v34 }
  0xa6   : > { %4343 = vmatmul.mubr.bf16.vlgmr.msra.gmra.mrb[0].mxu1 %v5380_v61  ;;  %v2316_v61 = vld [vmem:[#allocation2 + $0x207] sm:$0xff] }
  0xa7   : > { %4551 = vmatmul.mubr.bf16.gmra.mrb[16].mxu0 %v5597_v14  ;;  %4375 = vmatpush3.bf16.msra.mxu1 %v5579_v56  ;;  %v2626_v56 = vpack.c.bf16 %v2595_v13, %v2594_v21  ;;  %v2618_v21 = vld [vmem:[#allocation2 + $0x1c8] sm:$0xff]  ;;  %v2619_v13 = vld [vmem:[#allocation2 + $0x1d0] sm:$0xff] }
  0xa8   : > { %4346 = vmatprep.mubr.bf16.mxu1 %v5411_v11  ;;  %4554 = vmatprep.mubr.bf16.mxu0 %v5599_v48  ;;  %v2317_v11 = vld [vmem:[#allocation2 + $0x20f] sm:$0xff] }
  0xa9   : > { %4376 = vmatprep.subr.bf16.mxu1 %v4997_v41  ;;  %v5657_v52 = vpack.c.bf16 %v2317_v11, %v2316_v61  ;;  %v2613_v61 = vld [vmem:[#allocation2 + $0x170] sm:$0xff]  ;;  %v2614_v11 = vld [vmem:[#allocation2 + $0x188] sm:$0xff] }
  0xab   : > { %4377 = vmatpush3.bf16.msra.mxu1 %v4997_v41  ;;  %v5013_v41 = vld [vmem:[%s5815_s1 + $0x230] sm:$0xff]  }
  0xac   : > { %4378 = vmatprep.subr.bf16.mxu1 %v4999_v42 }
  0xae   : > { %4347 = vmatmul.mubr.bf16.gmra.mrb[4].mxu1 %v5418_v19  ;;  %v5005_v19 = vld [vmem:[%s5815_s1 + $0xe8] sm:$0xff]  }
  0xaf   : > { %4555 = vmatmul.mubr.bf16.gmra.mrb[20].mxu0 %v5611_v15  ;;  %4350 = vmatprep.mubr.bf16.mxu1 %v5443_v27  ;;  %v2318_v27 = vld [vmem:[#allocation2 + $0x227] sm:$0xff] }
  0xb0   : > { %4558 = vmatprep.mubr.bf16.mxu0 %v5613_v29  ;;  %4379 = vmatpush3.bf16.msra.mxu1 %v4999_v42  ;;  %v2335_v55 = vpack.c.bf16 %v2319_v20, %v2318_v27  ;;  %v5016_v20 = vld [vmem:[%s5815_s1 + $0x108] sm:$0xff]  }
  0xb1   : > { %4380 = vmatprep.subr.bf16.mxu1 %v5001_v46 }
  0xb4   : > { %4381 = vmatpush3.bf16.msra.mxu1 %v5001_v46 }
  0xb5   : > { %4382 = vmatprep.subr.bf16.mxu1 %v5003_v50 }
  0xb6   : > { %4351 = vmatmul.mubr.bf16.gmra.mrb[8].mxu1 %v5449_v31  ;;  %v5009_v31 = vld [vmem:[%s5815_s1 + $0xf8] sm:$0xff]  }
  0xb7   : > { %4559 = vmatmul.mubr.bf16.gmra.mrb[24].mxu0 %v5625_v23  ;;  %4354 = vmatprep.mubr.bf16.mxu1 %v5467_v30  ;;  %v2596_v30 = vld [vmem:[#allocation2 + $0x68] sm:$0xff] }
  0xb8   : > { %4562 = vmatprep.mubr.bf16.mxu0 %v5657_v52  ;;  %4383 = vmatpush3.bf16.msra.mxu1 %v5003_v50  ;;  %v2627_v7 = vpack.c.bf16 %v2597_v63, %v2596_v30  ;;  %v2615_v50 = vld [vmem:[#allocation2 + $0x190] sm:$0xff]  ;;  %v5021_v30 = vld [vmem:[#allocation2 + $0x8] sm:$0xff] }
  0xb9   : > { %4384 = vmatprep.subr.bf16.mxu1 %v5005_v19  ;;  %v5717_v27 = vpack.c.bf16 %v2615_v50, %v2614_v11  ;;  %v2641_v63 = vpack.c.bf16 %v5021_v30, %v5021_v30 }
  0xbc   : > { %4385 = vmatpush3.bf16.msra.mxu1 %v5005_v19 }
  0xbd   : > { %4386 = vmatprep.subr.bf16.mxu1 %v5007_v24 }
  0xbe   : > { %4355 = vmatmul.mubr.bf16.gmra.mrb[12].mxu1 %v5473_v35  ;;  %v5680_v35 = vld [vmem:[%s5815_s1 + $0x100] sm:$0xff]  }
  0xbf   : > { %4563 = vmatmul.mubr.bf16.gmra.mrb[28].mxu0 %v2335_v55  ;;  %4358 = vmatprep.mubr.bf16.mxu1 %v5489_v44  ;;  %v2600_v44 = vld [vmem:[#allocation2 + $0xa8] sm:$0xff]  ;;  %v5018_v55 = vld [vmem:[%s5815_s1 + $0x118] sm:$0xff]  }
  0xc0   : > { %4582 = vmatprep.mubr.bf16.mxu0 %v2626_v56  ;;  %4387 = vmatpush3.bf16.msra.mxu1 %v5007_v24  ;;  %v2629_v9 = vpack.c.bf16 %v2601_v53, %v2600_v44  ;;  %v5019_v56 = vld [vmem:[%s5815_s1 + $0x120] sm:$0xff]   ;;  %v2909_v44 = vld [vmem:[#allocation2 + $0xd1] sm:$0xff] }
  0xc1   : > { %4388 = vmatprep.subr.bf16.mxu1 %v5009_v31 }
  0xc4   : > { %4389 = vmatpush3.bf16.msra.mxu1 %v5009_v31  ;;  %v5020_v31 = vld [vmem:[%s5815_s1 + $0x128] sm:$0xff]  }
  0xc5   : > { %4662 = vmatprep.subr.bf16.mxu1 %v5680_v35 }
  0xc6   : > { %4359 = vmatmul.mubr.bf16.gmra.mrb[16].mxu1 %v5491_v49  ;;  %v5010_v49 = vld [vmem:[%s5815_s1 + $0x218] sm:$0xff]  }
  0xc7   : > { %4583 = vmatmul.mubr.bf16.vlgmr.msra.gmra.mrb[0].mxu0 %v2627_v7  ;;  %4362 = vmatprep.mubr.bf16.mxu1 %v5506_v45  ;;  %v2604_v45 = vld [vmem:[#allocation2 + $0xe8] sm:$0xff]  ;;  %v5023_v7 = vld [vmem:[%s5815_s1 + $0x138] sm:$0xff]  }
  0xc8   : > { %4615 = vmatpush3.bf16.msra.mxu0 %v5004_v34  ;;  %4586 = vmatprep.mubr.bf16.mxu0 %v2628_v8  ;;  %v2631_v17 = vpack.c.bf16 %v2605_v18, %v2604_v45  ;;  %v2611_v34 = vld [vmem:[#allocation2 + $0x150] sm:$0xff] }
  0xc9   : > { %4616 = vmatprep.subr.bf16.mxu0 %v5006_v12  ;;  %v5706_v46 = vpack.c.bf16 %v2611_v34, %v2610_v33  ;;  %v2915_v45 = vld [vmem:[#allocation2 + $0x131] sm:$0xff]  ;;  %v2916_v18 = vld [vmem:[#allocation2 + $0x149] sm:$0xff] }
  0xcc   : > { %4617 = vmatpush3.bf16.msra.mxu0 %v5006_v12 }
  0xcd   : > { %4618 = vmatprep.subr.bf16.mxu0 %v5008_v59 }
  0xce   : > { %4363 = vmatmul.mubr.bf16.gmra.mrb[20].mxu1 %v5510_v0  ;;  %v5012_v0 = vld [vmem:[%s5815_s1 + $0x228] sm:$0xff]  }
  0xcf   : > { %4587 = vmatmul.mubr.bf16.gmra.mrb[4].mxu0 %v2629_v9  ;;  %4366 = vmatprep.mubr.bf16.mxu1 %v5526_v1  ;;  %v2608_v1 = vld [vmem:[#allocation2 + $0x128] sm:$0xff] }
  0xd0   : > { %4590 = vmatprep.mubr.bf16.mxu0 %v2630_v26  ;;  %4619 = vmatpush3.bf16.msra.mxu0 %v5008_v59  ;;  %v5704_v42 = vpack.c.bf16 %v2609_v38, %v2608_v1  ;;  %v2911_v59 = vld [vmem:[#allocation2 + $0xf1] sm:$0xff]  ;;  %v2912_v9 = vld [vmem:[#allocation2 + $0x109] sm:$0xff] }
  0xd1   : > { %4620 = vmatprep.subr.bf16.mxu0 %v5010_v49  ;;  %v2937_v26 = vpack.c.bf16 %v2911_v59, %v2910_v57  ;;  %v2923_v1 = vld [vmem:[#allocation2 + $0x1b1] sm:$0xff]  ;;  %v2924_v38 = vld [vmem:[#allocation2 + $0x1c9] sm:$0xff] }
  0xd4   : > { %4621 = vmatpush3.bf16.msra.mxu0 %v5010_v49 }
  0xd5   : > { %4622 = vmatprep.subr.bf16.mxu0 %v5011_v16 }
  0xd6   : > { %4367 = vmatmul.mubr.bf16.gmra.mrb[24].mxu1 %v5530_v10  ;;  %v5014_v10 = vld [vmem:[%s5815_s1 + $0x238] sm:$0xff]  }
  0xd7   : > { %4591 = vmatmul.mubr.bf16.gmra.mrb[8].mxu0 %v2631_v17  ;;  %4370 = vmatprep.mubr.bf16.mxu1 %v5544_v28  ;;  %v2612_v28 = vld [vmem:[#allocation2 + $0x168] sm:$0xff] }
  0xd8   : > { %4594 = vmatprep.mubr.bf16.mxu0 %v2632_v22  ;;  %4623 = vmatpush3.bf16.msra.mxu0 %v5011_v16  ;;  %v5715_v19 = vpack.c.bf16 %v2613_v61, %v2612_v28  ;;  %v2919_v16 = vld [vmem:[#allocation2 + $0x171] sm:$0xff]  ;;  %v2920_v17 = vld [vmem:[#allocation2 + $0x189] sm:$0xff] }
  0xd9   : > { %4624 = vmatprep.subr.bf16.mxu0 %v5012_v0  ;;  %v2928_v28 = vld [vmem:[#allocation2 + $0x209] sm:$0xff]  ;;  %v2929_v61 = vld [vmem:[#allocation2 + $0x211] sm:$0xff] }
  0xdc   : > { %4625 = vmatpush3.bf16.msra.mxu0 %v5012_v0 }
  0xdd   : > { %4626 = vmatprep.subr.bf16.mxu0 %v5013_v41 }
  0xde   : > { %4371 = vmatmul.mubr.bf16.gmra.mrb[28].mxu1 %v5548_v37  ;;  %v2617_v37 = vld [vmem:[#allocation2 + $0x1b0] sm:$0xff] }
  0xdf   : > { %4595 = vmatmul.mubr.bf16.gmra.mrb[12].mxu0 %v5704_v42  ;;  %4390 = vmatprep.mubr.bf16.mxu1 %v5504_v40  ;;  %v2616_v40 = vld [vmem:[#allocation2 + $0x1a8] sm:$0xff] }
  0xe0   : > { %4598 = vmatprep.mubr.bf16.mxu0 %v5706_v46  ;;  %4627 = vmatpush3.bf16.msra.mxu0 %v5013_v41  ;;  %v5727_v24 = vpack.c.bf16 %v2617_v37, %v2616_v40  ;;  %v2926_v41 = vld [vmem:[#allocation2 + $0x1e9] sm:$0xff] }
  0xe1   : > { %4628 = vmatprep.subr.bf16.mxu0 %v5014_v10  ;;  %v1705_v40 = vld [vmem:[#allocation2 + $0x208] sm:$0xff]  ;;  %v1706_v37 = vld [vmem:[#allocation2 + $0x210] sm:$0xff] }
  0xe4   : > { %4629 = vmatpush3.bf16.msra.mxu0 %v5014_v10  ;;  %v1703_v10 = vld [vmem:[#allocation2 + $0x1e8] sm:$0xff] }
  0xe6   : > { %4391 = vmatmul.mubr.bf16.vlgmr.msra.gmra.mrb[0].mxu1 %v5508_v47  ;;  %v5729_v47 = vpack.c.bf16 %v2619_v13, %v2618_v21  ;;  %v1722_v21 = vpack.c.bf16 %v1706_v37, %v1705_v40 }
  0xe7   : > { %4599 = vmatmul.mubr.bf16.gmra.mrb[16].mxu0 %v5715_v19  ;;  %4670 = vmatpush3.bf16.msra.mxu1 %v5680_v35  ;;  %v2908_v35 = vld [vmem:[#allocation2 + $0xc9] sm:$0xff] }
  0xe8   : > { %4394 = vmatprep.mubr.bf16.mxu1 %v5524_v62  ;;  %4602 = vmatprep.mubr.bf16.mxu0 %v5717_v27  ;;  %v5017_v62 = vld [vmem:[%s5815_s1 + $0x110] sm:$0xff]   ;;  %v2936_v36 = vpack.c.bf16 %v2909_v44, %v2908_v35 }
  0xe9   : > { %4663 = vmatprep.subr.bf16.mxu1 %v5016_v20 }
  0xeb   : > { %4671 = vmatpush3.bf16.msra.mxu1 %v5016_v20  ;;  %v2931_v20 = vld [vmem:[#allocation2 + $0x231] sm:$0xff] }
  0xec   : > { %4664 = vmatprep.subr.bf16.mxu1 %v5017_v62 }
  0xee   : > { %4395 = vmatmul.mubr.bf16.gmra.mrb[4].mxu1 %v5528_v2  ;;  %v2900_v2 = vld [vmem:[#allocation2 + $0x49] sm:$0xff] }
  0xef   : > { %4603 = vmatmul.mubr.bf16.gmra.mrb[20].mxu0 %v5727_v24  ;;  %4398 = vmatprep.mubr.bf16.mxu1 %v5542_v25  ;;  %v2901_v25 = vld [vmem:[#allocation2 + $0x51] sm:$0xff] }
  0xf0   : > { %4606 = vmatprep.mubr.bf16.mxu0 %v5729_v47  ;;  %4672 = vmatpush3.bf16.msra.mxu1 %v5017_v62  ;;  %v2932_v3 = vpack.c.bf16 %v2901_v25, %v2900_v2 }
  0xf1   : > { %4665 = vmatprep.subr.bf16.mxu1 %v5018_v55 }
  0xf4   : > { %4673 = vmatpush3.bf16.msra.mxu1 %v5018_v55 }
  0xf5   : > { %4666 = vmatprep.subr.bf16.mxu1 %v5019_v56 }
  0xf6   : > { %4399 = vmatmul.mubr.bf16.gmra.mrb[8].mxu1 %v5546_v32  ;;  %v2902_v32 = vld [vmem:[#allocation2 + $0x69] sm:$0xff] }
  0xf7   : > { %4607 = vmatmul.mubr.bf16.gmra.mrb[24].mxu0 %v5487_v43  ;;  %4402 = vmatprep.mubr.bf16.mxu1 %v5566_v51  ;;  %v5022_v43 = vld [vmem:[%s5815_s1 + $0x130] sm:$0xff]  }
  0xf8   : > { %4610 = vmatprep.mubr.bf16.mxu0 %v5560_v39  ;;  %4674 = vmatpush3.bf16.msra.mxu1 %v5019_v56  ;;  %v2903_v39 = vld [vmem:[#allocation2 + $0x71] sm:$0xff]  ;;  %v2904_v51 = vld [vmem:[#allocation2 + $0x89] sm:$0xff] }
  0xf9   : > { %4667 = vmatprep.subr.bf16.mxu1 %v5020_v31  ;;  %v2933_v8 = vpack.c.bf16 %v2903_v39, %v2902_v32  ;;  %v2934_v12 = vpack.c.bf16 %v2905_v4, %v2904_v51 }
  0xfc   : > { %4675 = vmatpush3.bf16.msra.mxu1 %v5020_v31 }
  0xfd   : > { %4668 = vmatprep.subr.bf16.mxu1 %v5022_v43 }
  0xfe   : > { %4403 = vmatmul.mubr.bf16.gmra.mrb[12].mxu1 %v5568_v54  ;;  %v2906_v54 = vld [vmem:[#allocation2 + $0xa9] sm:$0xff] }
  0xff   : > { %4611 = vmatmul.mubr.bf16.gmra.mrb[28].mxu0 %v2641_v63  ;;  %4406 = vmatprep.mubr.bf16.mxu1 %v5581_v58  ;;  %v2907_v58 = vld [vmem:[#allocation2 + $0xb1] sm:$0xff] }
 0x100   : > { %4630 = vmatprep.mubr.bf16.mxu0 %v2932_v3  ;;  %4676 = vmatpush3.bf16.msra.mxu1 %v5022_v43  ;;  %v2935_v53 = vpack.c.bf16 %v2907_v58, %v2906_v54 }
 0x101   : > { %4669 = vmatprep.subr.bf16.mxu1 %v5023_v7 }
 0x104   : > { %4677 = vmatpush3.bf16.msra.mxu1 %v5023_v7 }
 0x106   : > { %4407 = vmatmul.mubr.bf16.gmra.mrb[16].mxu1 %v5583_v60  ;;  %v2913_v60 = vld [vmem:[#allocation2 + $0x111] sm:$0xff] }
 0x107   : > { %4631 = vmatmul.mubr.bf16.vlgmr.msra.gmra.mrb[0].mxu0 %v2933_v8  ;;  %4410 = vmatprep.mubr.bf16.mxu1 %v5597_v14  ;;  %v2938_v49 = vpack.c.bf16 %v2913_v60, %v2912_v9  ;;  %v2914_v14 = vld [vmem:[#allocation2 + $0x129] sm:$0xff] }
 0x108   : > { %4634 = vmatprep.mubr.bf16.mxu0 %v2934_v12  ;;  %v2939_v5 = vpack.c.bf16 %v2915_v45, %v2914_v14 }
 0x10e   : > { %4411 = vmatmul.mubr.bf16.gmra.mrb[20].mxu1 %v5599_v48  ;;  %v2917_v48 = vld [vmem:[#allocation2 + $0x151] sm:$0xff] }
 0x10f   : > { %4635 = vmatmul.mubr.bf16.gmra.mrb[4].mxu0 %v2935_v53  ;;  %4414 = vmatprep.mubr.bf16.mxu1 %v5611_v15  ;;  %v2940_v6 = vpack.c.bf16 %v2917_v48, %v2916_v18  ;;  %v2918_v15 = vld [vmem:[#allocation2 + $0x169] sm:$0xff] }
 0x110   : > { %4638 = vmatprep.mubr.bf16.mxu0 %v2936_v36  ;;  %v2941_v22 = vpack.c.bf16 %v2919_v16, %v2918_v15 }
 0x116   : > { %4415 = vmatmul.mubr.bf16.gmra.mrb[24].mxu1 %v5613_v29  ;;  %v2921_v29 = vld [vmem:[#allocation2 + $0x191] sm:$0xff] }
 0x117   : > { %4639 = vmatmul.mubr.bf16.gmra.mrb[8].mxu0 %v2937_v26  ;;  %4418 = vmatprep.mubr.bf16.mxu1 %v5625_v23  ;;  %v2942_v0 = vpack.c.bf16 %v2921_v29, %v2920_v17  ;;  %v2922_v23 = vld [vmem:[#allocation2 + $0x1a9] sm:$0xff] }
 0x118   : > { %4642 = vmatprep.mubr.bf16.mxu0 %v2938_v49  ;;  %v2943_v33 = vpack.c.bf16 %v2923_v1, %v2922_v23 }
 0x11e   : > { %4419 = vmatmul.mubr.bf16.gmra.mrb[28].mxu1 %v5657_v52  ;;  %v2925_v52 = vld [vmem:[#allocation2 + $0x1d1] sm:$0xff] }
 0x11f   : > { %4643 = vmatmul.mubr.bf16.gmra.mrb[12].mxu0 %v2939_v5  ;;  %4454 = vmatprep.mubr.bf16.mxu1 %v5704_v42  ;;  %v2944_v34 = vpack.c.bf16 %v2925_v52, %v2924_v38  ;;  %v2927_v42 = vld [vmem:[#allocation2 + $0x1f1] sm:$0xff] }
 0x120   : > { %4646 = vmatprep.mubr.bf16.mxu0 %v2940_v6  ;;  %v2945_v11 = vpack.c.bf16 %v2927_v42, %v2926_v41 }
 0x126   : > { %4455 = vmatmul.mubr.bf16.vlgmr.msra.gmra.mrb[16].mxu1 %v5706_v46  ;;  %v1704_v46 = vld [vmem:[#allocation2 + $0x1f0] sm:$0xff] }
 0x127   : > { %4647 = vmatmul.mubr.bf16.gmra.mrb[16].mxu0 %v2941_v22  ;;  %4458 = vmatprep.mubr.bf16.mxu1 %v5715_v19  ;;  %v1721_v50 = vpack.c.bf16 %v1704_v46, %v1703_v10  ;;  %v2946_v19 = vpack.c.bf16 %v2929_v61, %v2928_v28 }
 0x128   : > { %4650 = vmatprep.mubr.bf16.mxu0 %v2942_v0 }
 0x12e   : > { %4459 = vmatmul.mubr.bf16.gmra.mrb[20].mxu1 %v5717_v27  ;;  %v2930_v27 = vld [vmem:[#allocation2 + $0x229] sm:$0xff] }
 0x12f   : > { %4651 = vmatmul.mubr.bf16.gmra.mrb[20].mxu0 %v2943_v33  ;;  %4462 = vmatprep.mubr.bf16.mxu1 %v5727_v24  ;;  %v2947_v13 = vpack.c.bf16 %v2931_v20, %v2930_v27 }
 0x130   : > { %4654 = vmatprep.mubr.bf16.mxu0 %v2944_v34 }
 0x136   : > { %4463 = vmatmul.mubr.bf16.gmra.mrb[24].mxu1 %v5729_v47 }
 0x137   : > { %4655 = vmatmul.mubr.bf16.gmra.mrb[24].mxu0 %v2945_v11  ;;  %4466 = vmatprep.mubr.bf16.mxu1 %v1721_v50 }
 0x138   : > { %4658 = vmatprep.mubr.bf16.mxu0 %v2946_v19 }
 0x13e   : > { %4467 = vmatmul.mubr.bf16.gmra.mrb[28].mxu1 %v1722_v21 }
 0x13f   : > { %4659 = vmatmul.mubr.bf16.gmra.mrb[28].mxu0 %v2947_v13 }
 0x1b9   : > { %v4392_v24 = vpop.f32.mrb[0].mxu1 }
 0x1ba   : > { %v1516_v62 = vpop.f32.mrb[1].mxu1 }
 0x1bb   : > { %v4393_v55 = vpop.f32.mrb[2].mxu1 }
 0x1bc   : > { %v1519_v56 = vpop.f32.mrb[3].mxu1 }
 0x1c1   : > { %v4396_v2 = vpop.f32.mrb[4].mxu1 }
 0x1c2   : > { %v1532_v25 = vpop.f32.mrb[5].mxu1 }
 0x1c3   : > { %v4397_v31 = vpop.f32.mrb[6].mxu1 }
 0x1c4   : > { %v1535_v30 = vpop.f32.mrb[7].mxu1 }
 0x1c9   : > { %v4400_v47 = vpop.f32.mrb[8].mxu1 }
 0x1ca   : > { %v1548_v63 = vpop.f32.mrb[9].mxu1 }
 0x1cb   : > { %v4401_v3 = vpop.f32.mrb[10].mxu1 }
 0x1cc   : > { %v1551_v43 = vpop.f32.mrb[11].mxu1 }
 0x1d1   : > { %v5772_v32 = vpop.f32.mrb[12].mxu1 }
 0x1d2   : > { %v5774_v39 = vpop.f32.mrb[13].mxu1 }
 0x1d3   : > { %v5776_v51 = vpop.f32.mrb[14].mxu1 }
 0x1d4   : > { %v5778_v4 = vpop.f32.mrb[15].mxu1 }
 0x1da   : > { %v4632_v7 = vpop.f32.mrb[0].mxu0 }
 0x1db   : > { %v4678_v8 = vadd.f32 %v4632_v7, %v4392_v24  ;;  %v3047_v12 = vpop.f32.mrb[1].mxu0 }
 0x1dc   : > { %v4679_v54 = vadd.f32 %v3047_v12, %v1516_v62  ;;  %v4633_v58 = vpop.f32.mrb[2].mxu0 }
 0x1dd   : > { %v4680_v35 = vadd.f32 %v4633_v58, %v4393_v55  ;;  %v3050_v44 = vpop.f32.mrb[3].mxu0  ;;  %v3246_v26 = vmul.f32 %v4678_v8, %v4678_v8 }
 0x1de   : > { %v4681_v53 = vadd.f32 %v3050_v44, %v1519_v56  ;;  %v3244_v57 = vmul.f32 %v4679_v54, %v4679_v54 }
 0x1df   : > { %v3912_v36 = vpack.c.bf16 %v4680_v35, %v4678_v8  ;;  %v3247_v5 = vmul.f32 %v4680_v35, %v4680_v35 }
 0x1e0   : > { %v3206_v59 = vadd.f32 %v4681_v53, %v4679_v54  ;;  %v3245_v9 = vmul.f32 %v4681_v53, %v4681_v53  ;;  %v3907_v60 = vpack.c.bf16 %v4681_v53, %v4679_v54 }
 0x1e1   : > { %3999 = vst [vmem:[%s5785_s12 + $0x8] sm:$0xff] %v3912_v36  }
 0x1e2   : > { %v3207_v49 = vadd.f32 %v4678_v8, %v3206_v59  ;;  %v3276_v14 = vadd.f32 %v3245_v9, %v3244_v57  ;;  %3908 = vst [vmem:[%s5785_s12] sm:$0xff] %v3907_v60   ;;  %v4636_v45 = vpop.f32.mrb[4].mxu0 }
 0x1e3   : > { %v4682_v18 = vadd.f32 %v4636_v45, %v4396_v2  ;;  %v3063_v48 = vpop.f32.mrb[5].mxu0 }
 0x1e4   : > { %v3277_v6 = vadd.f32 %v3276_v14, %v3246_v26  ;;  %v4683_v15 = vadd.f32 %v3063_v48, %v1532_v25  ;;  %v3208_v16 = vadd.f32 %v4680_v35, %v3207_v49  ;;  %v4637_v17 = vpop.f32.mrb[6].mxu0 }
 0x1e5   : > { %v4684_v29 = vadd.f32 %v4637_v17, %v4397_v31  ;;  %v3066_v22 = vpop.f32.mrb[7].mxu0  ;;  %v3250_v10 = vmul.f32 %v4682_v18, %v4682_v18 }
 0x1e6   : > { %v3209_v0 = vadd.f32 %v4683_v15, %v3208_v16  ;;  %v3248_v23 = vmul.f32 %v4683_v15, %v4683_v15  ;;  %v3278_v1 = vadd.f32 %v3277_v6, %v3247_v5  ;;  %v4685_v38 = vadd.f32 %v3066_v22, %v1535_v30 }
 0x1e7   : > { %v3922_v52 = vpack.c.bf16 %v4684_v29, %v4682_v18  ;;  %v3251_v19 = vmul.f32 %v4684_v29, %v4684_v29 }
 0x1e8   : > { %v3279_v33 = vadd.f32 %v3278_v1, %v3248_v23  ;;  %v3210_v34 = vadd.f32 %v4685_v38, %v3209_v0  ;;  %v3249_v41 = vmul.f32 %v4685_v38, %v4685_v38  ;;  %v3917_v42 = vpack.c.bf16 %v4685_v38, %v4683_v15 }
 0x1e9   : > { %4001 = vst [vmem:[%s5785_s12 + $0x18] sm:$0xff] %v3922_v52  }
 0x1ea   : > { %v3211_v46 = vadd.f32 %v4682_v18, %v3210_v34  ;;  %v3280_v28 = vadd.f32 %v3279_v33, %v3249_v41  ;;  %4000 = vst [vmem:[%s5785_s12 + $0x10] sm:$0xff] %v3917_v42   ;;  %v4640_v61 = vpop.f32.mrb[8].mxu0 }
 0x1eb   : > { %v4686_v11 = vadd.f32 %v4640_v61, %v4400_v47  ;;  %v3079_v50 = vpop.f32.mrb[9].mxu0 }
 0x1ec   : > { %v3281_v40 = vadd.f32 %v3280_v28, %v3250_v10  ;;  %v4687_v37 = vadd.f32 %v3079_v50, %v1548_v63  ;;  %v3212_v27 = vadd.f32 %v4684_v29, %v3211_v46  ;;  %v4641_v20 = vpop.f32.mrb[10].mxu0 }
 0x1ed   : > { %v4688_v21 = vadd.f32 %v4641_v20, %v4401_v3  ;;  %v3082_v13 = vpop.f32.mrb[11].mxu0  ;;  %v3254_v47 = vmul.f32 %v4686_v11, %v4686_v11 }
 0x1ee   : > { %v3213_v24 = vadd.f32 %v4687_v37, %v3212_v27  ;;  %v3252_v62 = vmul.f32 %v4687_v37, %v4687_v37  ;;  %v3282_v55 = vadd.f32 %v3281_v40, %v3251_v19  ;;  %v4689_v56 = vadd.f32 %v3082_v13, %v1551_v43 }
 0x1ef   : > { %v3932_v2 = vpack.c.bf16 %v4688_v21, %v4686_v11  ;;  %v3255_v3 = vmul.f32 %v4688_v21, %v4688_v21 }
 0x1f0   : > { %v3283_v25 = vadd.f32 %v3282_v55, %v3252_v62  ;;  %v3214_v31 = vadd.f32 %v4689_v56, %v3213_v24  ;;  %v3253_v30 = vmul.f32 %v4689_v56, %v4689_v56  ;;  %v3927_v7 = vpack.c.bf16 %v4689_v56, %v4687_v37 }
 0x1f1   : > { %4003 = vst [vmem:[%s5785_s12 + $0x28] sm:$0xff] %v3932_v2  }
 0x1f2   : > { %v3215_v8 = vadd.f32 %v4686_v11, %v3214_v31  ;;  %v3284_v12 = vadd.f32 %v3283_v25, %v3253_v30  ;;  %4002 = vst [vmem:[%s5785_s12 + $0x20] sm:$0xff] %v3927_v7   ;;  %v4644_v63 = vpop.f32.mrb[12].mxu0 }
 0x1f3   : > { %v4690_v54 = vadd.f32 %v4644_v63, %v5772_v32  ;;  %v3095_v58 = vpop.f32.mrb[13].mxu0 }
 0x1f4   : > { %v3285_v35 = vadd.f32 %v3284_v12, %v3254_v47  ;;  %v4691_v44 = vadd.f32 %v3095_v58, %v5774_v39  ;;  %v3216_v43 = vadd.f32 %v4688_v21, %v3215_v8  ;;  %v4645_v53 = vpop.f32.mrb[14].mxu0 }
 0x1f5   : > { %v4692_v36 = vadd.f32 %v4645_v53, %v5776_v51  ;;  %v3098_v57 = vpop.f32.mrb[15].mxu0  ;;  %v3258_v5 = vmul.f32 %v4690_v54, %v4690_v54 }
 0x1f6   : > { %v3217_v59 = vadd.f32 %v4691_v44, %v3216_v43  ;;  %v3256_v9 = vmul.f32 %v4691_v44, %v4691_v44  ;;  %v3286_v60 = vadd.f32 %v3285_v35, %v3255_v3  ;;  %v4693_v26 = vadd.f32 %v3098_v57, %v5778_v4 }
 0x1f7   : > { %v3942_v49 = vpack.c.bf16 %v4692_v36, %v4690_v54  ;;  %v3259_v22 = vmul.f32 %v4692_v36, %v4692_v36 }
 0x1f8   : > { %v3287_v14 = vadd.f32 %v3286_v60, %v3256_v9  ;;  %v3218_v32 = vadd.f32 %v4693_v26, %v3217_v59  ;;  %v3257_v45 = vmul.f32 %v4693_v26, %v4693_v26  ;;  %v3937_v18 = vpack.c.bf16 %v4693_v26, %v4691_v44 }
 0x1f9   : > { %4005 = vst [vmem:[%s5785_s12 + $0x38] sm:$0xff] %v3942_v49   ;;  %v4456_v48 = vpop.f32.mrb[16].mxu1 }
 0x1fa   : > { %v3219_v39 = vadd.f32 %v4690_v54, %v3218_v32  ;;  %v3288_v6 = vadd.f32 %v3287_v14, %v3257_v45  ;;  %4004 = vst [vmem:[%s5785_s12 + $0x30] sm:$0xff] %v3937_v18   ;;  %v4648_v15 = vpop.f32.mrb[16].mxu0  ;;  %v1886_v51 = vpop.f32.mrb[17].mxu1 }
 0x1fb   : > { %v4694_v16 = vadd.f32 %v4648_v15, %v4456_v48  ;;  %v3111_v17 = vpop.f32.mrb[17].mxu0  ;;  %v4457_v29 = vpop.f32.mrb[18].mxu1 }
 0x1fc   : > { %v3289_v0 = vadd.f32 %v3288_v6, %v3258_v5  ;;  %v4695_v4 = vadd.f32 %v3111_v17, %v1886_v51  ;;  %v3220_v23 = vadd.f32 %v4692_v36, %v3219_v39  ;;  %v4649_v1 = vpop.f32.mrb[18].mxu0  ;;  %v1889_v38 = vpop.f32.mrb[19].mxu1 }
 0x1fd   : > { %v4696_v52 = vadd.f32 %v4649_v1, %v4457_v29  ;;  %v3114_v33 = vpop.f32.mrb[19].mxu0  ;;  %v3262_v40 = vmul.f32 %v4694_v16, %v4694_v16 }
 0x1fe   : > { %v3221_v34 = vadd.f32 %v4695_v4, %v3220_v23  ;;  %v3260_v41 = vmul.f32 %v4695_v4, %v4695_v4  ;;  %v3290_v42 = vadd.f32 %v3289_v0, %v3259_v22  ;;  %v4697_v10 = vadd.f32 %v3114_v33, %v1889_v38 }
 0x1ff   : > { %v3952_v46 = vpack.c.bf16 %v4696_v52, %v4694_v16  ;;  %v3263_v55 = vmul.f32 %v4696_v52, %v4696_v52 }
 0x200   : > { %v3291_v28 = vadd.f32 %v3290_v42, %v3260_v41  ;;  %v3222_v61 = vadd.f32 %v4697_v10, %v3221_v34  ;;  %v3261_v11 = vmul.f32 %v4697_v10, %v4697_v10  ;;  %v3947_v50 = vpack.c.bf16 %v4697_v10, %v4695_v4 }
 0x201   : > { %4007 = vst [vmem:[%s5785_s12 + $0x48] sm:$0xff] %v3952_v46   ;;  %v4460_v19 = vpop.f32.mrb[20].mxu1 }
 0x202   : > { %v3223_v37 = vadd.f32 %v4694_v16, %v3222_v61  ;;  %v3292_v27 = vadd.f32 %v3291_v28, %v3261_v11  ;;  %4006 = vst [vmem:[%s5785_s12 + $0x40] sm:$0xff] %v3947_v50   ;;  %v4652_v20 = vpop.f32.mrb[20].mxu0  ;;  %v1902_v21 = vpop.f32.mrb[21].mxu1 }
 0x203   : > { %v4698_v13 = vadd.f32 %v4652_v20, %v4460_v19  ;;  %v3127_v24 = vpop.f32.mrb[21].mxu0  ;;  %v4461_v62 = vpop.f32.mrb[22].mxu1 }
 0x204   : > { %v3293_v56 = vadd.f32 %v3292_v27, %v3262_v40  ;;  %v4699_v2 = vadd.f32 %v3127_v24, %v1902_v21  ;;  %v3224_v25 = vadd.f32 %v4696_v52, %v3223_v37  ;;  %v4653_v31 = vpop.f32.mrb[22].mxu0  ;;  %v1905_v30 = vpop.f32.mrb[23].mxu1 }
 0x205   : > { %v4700_v7 = vadd.f32 %v4653_v31, %v4461_v62  ;;  %v3130_v47 = vpop.f32.mrb[23].mxu0  ;;  %v3266_v36 = vmul.f32 %v4698_v13, %v4698_v13 }
 0x206   : > { %v3225_v8 = vadd.f32 %v4699_v2, %v3224_v25  ;;  %v3264_v12 = vmul.f32 %v4699_v2, %v4699_v2  ;;  %v3294_v63 = vadd.f32 %v3293_v56, %v3263_v55  ;;  %v4701_v54 = vadd.f32 %v3130_v47, %v1905_v30 }
 0x207   : > { %v3962_v58 = vpack.c.bf16 %v4700_v7, %v4698_v13  ;;  %v3267_v32 = vmul.f32 %v4700_v7, %v4700_v7 }
 0x208   : > { %v3295_v3 = vadd.f32 %v3294_v63, %v3264_v12  ;;  %v3226_v35 = vadd.f32 %v4701_v54, %v3225_v8  ;;  %v3265_v44 = vmul.f32 %v4701_v54, %v4701_v54  ;;  %v3957_v43 = vpack.c.bf16 %v4701_v54, %v4699_v2 }
 0x209   : > { %4009 = vst [vmem:[%s5785_s12 + $0x58] sm:$0xff] %v3962_v58   ;;  %v4464_v53 = vpop.f32.mrb[24].mxu1 }
 0x20a   : > { %v3227_v57 = vadd.f32 %v4698_v13, %v3226_v35  ;;  %v3296_v59 = vadd.f32 %v3295_v3, %v3265_v44  ;;  %4008 = vst [vmem:[%s5785_s12 + $0x50] sm:$0xff] %v3957_v43   ;;  %v4656_v9 = vpop.f32.mrb[24].mxu0  ;;  %v1918_v60 = vpop.f32.mrb[25].mxu1 }
 0x20b   : > { %v4702_v26 = vadd.f32 %v4656_v9, %v4464_v53  ;;  %v3143_v49 = vpop.f32.mrb[25].mxu0  ;;  %v4465_v14 = vpop.f32.mrb[26].mxu1 }
 0x20c   : > { %v3297_v45 = vadd.f32 %v3296_v59, %v3266_v36  ;;  %v4703_v18 = vadd.f32 %v3143_v49, %v1918_v60  ;;  %v3228_v48 = vadd.f32 %v4700_v7, %v3227_v57  ;;  %v4657_v5 = vpop.f32.mrb[26].mxu0  ;;  %v1921_v39 = vpop.f32.mrb[27].mxu1 }
 0x20d   : > { %v4704_v6 = vadd.f32 %v4657_v5, %v4465_v14  ;;  %v3146_v15 = vpop.f32.mrb[27].mxu0  ;;  %v3270_v52 = vmul.f32 %v4702_v26, %v4702_v26 }
 0x20e   : > { %v3229_v51 = vadd.f32 %v4703_v18, %v3228_v48  ;;  %v3268_v16 = vmul.f32 %v4703_v18, %v4703_v18  ;;  %v3298_v17 = vadd.f32 %v3297_v45, %v3267_v32  ;;  %v4705_v29 = vadd.f32 %v3146_v15, %v1921_v39 }
 0x20f   : > { %v3972_v22 = vpack.c.bf16 %v4704_v6, %v4702_v26  ;;  %v3271_v61 = vmul.f32 %v4704_v6, %v4704_v6 }
 0x210   : > { %v3299_v0 = vadd.f32 %v3298_v17, %v3268_v16  ;;  %v3230_v4 = vadd.f32 %v4705_v29, %v3229_v51  ;;  %v3269_v23 = vmul.f32 %v4705_v29, %v4705_v29  ;;  %v3967_v1 = vpack.c.bf16 %v4705_v29, %v4703_v18 }
 0x211   : > { %4011 = vst [vmem:[%s5785_s12 + $0x68] sm:$0xff] %v3972_v22   ;;  %v4468_v38 = vpop.f32.mrb[28].mxu1 }
 0x212   : > { %v3231_v33 = vadd.f32 %v4702_v26, %v3230_v4  ;;  %v3300_v34 = vadd.f32 %v3299_v0, %v3269_v23  ;;  %4010 = vst [vmem:[%s5785_s12 + $0x60] sm:$0xff] %v3967_v1   ;;  %v4660_v41 = vpop.f32.mrb[28].mxu0  ;;  %v1934_v42 = vpop.f32.mrb[29].mxu1 }
 0x213   : > { %v4706_v10 = vadd.f32 %v4660_v41, %v4468_v38  ;;  %v3159_v46 = vpop.f32.mrb[29].mxu0  ;;  %v4469_v28 = vpop.f32.mrb[30].mxu1 }
 0x214   : > { %v3301_v11 = vadd.f32 %v3300_v34, %v3270_v52  ;;  %v4707_v50 = vadd.f32 %v3159_v46, %v1934_v42  ;;  %v3232_v19 = vadd.f32 %v4704_v6, %v3231_v33  ;;  %v4661_v40 = vpop.f32.mrb[30].mxu0  ;;  %v1937_v37 = vpop.f32.mrb[31].mxu1 }
 0x215   : > { %v4708_v27 = vadd.f32 %v4661_v40, %v4469_v28  ;;  %v3162_v20 = vpop.f32.mrb[31].mxu0  ;;  %v3274_v30 = vmul.f32 %v4706_v10, %v4706_v10 }
 0x216   : > { %v3233_v21 = vadd.f32 %v4707_v50, %v3232_v19  ;;  %v3272_v13 = vmul.f32 %v4707_v50, %v4707_v50  ;;  %v3302_v24 = vadd.f32 %v3301_v11, %v3271_v61  ;;  %v4709_v62 = vadd.f32 %v3162_v20, %v1937_v37 }
 0x217   : > { %v3982_v55 = vpack.c.bf16 %v4708_v27, %v4706_v10  ;;  %v3275_v8 = vmul.f32 %v4708_v27, %v4708_v27 }
 0x218   : > { %v3303_v56 = vadd.f32 %v3302_v24, %v3272_v13  ;;  %v3234_v2 = vadd.f32 %v4709_v62, %v3233_v21  ;;  %v3273_v25 = vmul.f32 %v4709_v62, %v4709_v62  ;;  %v3977_v31 = vpack.c.bf16 %v4709_v62, %v4707_v50 }
 0x219   : > { %4013 = vst [vmem:[%s5785_s12 + $0x78] sm:$0xff] %v3982_v55  }
 0x21a   : > { %v3235_v7 = vadd.f32 %v4706_v10, %v3234_v2  ;;  %v3304_v47 = vadd.f32 %v3303_v56, %v3273_v25  ;;  %4012 = vst [vmem:[%s5785_s12 + $0x70] sm:$0xff] %v3977_v31  }
 0x21c   : > { %v3236_v12 = vadd.f32 %v4708_v27, %v3235_v7  ;;  %v3305_v63 = vadd.f32 %v3304_v47, %v3274_v30 }
 0x21e   : > { %v3237_v54 = vrot.slane %v3236_v12, 4  ;;  %v3306_v58 = vadd.f32 %v3305_v63, %v3275_v8 }
 0x220   : > { %v3238_v3 = vadd.f32 %v3237_v54, %v3236_v12  ;;  %v3307_v35 = vrot.slane %v3306_v58, 4 }
 0x222   : > { %v3239_v44 = vrot.slane %v3238_v3, 2  ;;  %v3308_v43 = vadd.f32 %v3307_v35, %v3306_v58 }
 0x224   : > { %v3240_v53 = vadd.f32 %v3239_v44, %v3238_v3  ;;  %v3309_v36 = vrot.slane %v3308_v43, 2 }
 0x226   : > { %v3241_v57 = vrot.slane %v3240_v53, 1  ;;  %v3310_v59 = vadd.f32 %v3309_v36, %v3308_v43 }
 0x228   : > { %v3242_v9 = vadd.f32 %v3241_v57, %v3240_v53  ;;  %v3311_v60 = vrot.slane %v3310_v59, 1 }
 0x22a   : > { %3243 = vst [vmem:[%s235_s15] sm:$0x1] %v3242_v9  ;;  %v3312_v26 = vadd.f32 %v3311_v60, %v3310_v59 }
 0x22c   : > { %3313 = vst [vmem:[%s235_s15 + $0x1] sm:$0x1] %v3312_v26 }
 0x22d PF: > { %s16_s18 = sadd.s32 1, %s5030_s18  }
 0x22e   : > { %p13_p4 = scmp.ge.s32.totalorder %s16_s18, 4  }
 0x230   :  { %15 = sbr.rel (!%p13_p4) target bundleno = 1 (0x1), region = 88 }

</bundles_post_ra>
